<compile_context>
chip_gen: v7x
topology: tpu7x:2x2x1
jax: 0.10.0
libtpu: 0.0.40
codegen_flags: <defaults>
</compile_context>

<pallas_src>
import functools

import numpy as np

import jax
import jax.numpy as jnp
from jax.experimental import pallas as pl
from jax.experimental.pallas import tpu as pltpu


# Row indices inside the packed bias table `b_misc` (9, B*C):
#   rows 0..4 : trunk conv biases (BN folded), full B*C width
_BROW_HCONV = 5   # policy+value 1x1-conv bias  (first 3*B lanes)
_BROW_PFC = 6     # policy FC bias              (first n_actions lanes)
_BROW_VFC1 = 7    # value FC1 bias              (first 64 lanes)
_BROW_VFC2 = 8    # value FC2 bias              (first lane)


# ----------------------------------------------------------------------------
# Geometry constants (pure numpy, computed at prepare time)
# ----------------------------------------------------------------------------
@functools.lru_cache(maxsize=None)
def _geometry(board_h, board_w):
    """Interior-row mask and FC scatter matrix for the padded "halo" layout.

    Activations are (rows, channels) matrices with rows = (H+2)*(W+2); halo
    rows are kept at zero so a 3x3 'same' conv becomes 9 constant row shifts.
    `gather` scatters an (i*W+j)-indexed FC weight into the halo row layout.
    """
    hp, wp = board_h + 2, board_w + 2
    rows = hp * wp
    interior = np.zeros((rows, 1), np.float32)
    gather = np.zeros((rows, board_h * board_w), np.float32)
    for i in range(board_h):
        for j in range(board_w):
            p = (i + 1) * wp + (j + 1)
            interior[p, 0] = 1.0
            gather[p, i * board_w + j] = 1.0
    return interior, gather


# ----------------------------------------------------------------------------
# Parameter construction (deterministic, synthetic) + BN folding
# ----------------------------------------------------------------------------
def _init(key, shape, scale=0.1):
    return scale * jax.random.normal(key, shape, jnp.float32)


def init_params(key, input_channels=3, board_h=6, board_w=7, n_actions=7):
    keys = iter(jax.random.split(key, 64))
    nk = lambda: next(keys)

    def conv_bn(cin, cout, k):
        return dict(
            w=_init(nk(), (k, k, cin, cout)),          # HWIO
            b=_init(nk(), (cout,)),
            gamma=1.0 + _init(nk(), (cout,)),
            beta=_init(nk(), (cout,)),
            mean=_init(nk(), (cout,)),
            var=1.0 + 0.1 * jax.random.uniform(nk(), (cout,), jnp.float32),
        )

    hw = board_h * board_w
    return dict(
        conv_in=conv_bn(input_channels, 64, 3),
        res1_c1=conv_bn(64, 64, 3), res1_c2=conv_bn(64, 64, 3),
        res2_c1=conv_bn(64, 64, 3), res2_c2=conv_bn(64, 64, 3),
        policy_conv=conv_bn(64, 2, 1),
        policy_fc_w=_init(nk(), (2 * hw, n_actions)),   # (in, out), NCHW-flatten
        policy_fc_b=_init(nk(), (n_actions,)),
        value_conv=conv_bn(64, 1, 1),
        value_fc1_w=_init(nk(), (hw, 64)),
        value_fc1_b=_init(nk(), (64,)),
        value_fc2_w=_init(nk(), (64, 1)),
        value_fc2_b=_init(nk(), (1,)),
    )


def _fold_bn(p, eps=1e-5):
    # Eval-mode BatchNorm: y = gamma*(conv + b - mean)/sqrt(var+eps) + beta.
    # TODO(synk): training-mode BatchNorm (batch statistics) not reproduced;
    # inference/running-stats semantics are used instead.
    s = p["gamma"] / jnp.sqrt(p["var"] + eps)
    b = p["beta"] - p["mean"] * s + p["b"] * s
    return s, b


def prepare_params(params, board_h=6, board_w=7, batch=2,
                   mxu_dtype=jnp.bfloat16):
    """One-time folding so the kernel only does roll + matmul + relu chains.

    * BatchNorm (eval mode) folded into conv weights/biases.
    * Conv weights made block-diagonal over the batch (batch lives on the lane
      axis in the kernel); the 9 taps are concatenated along K so every conv
      is a single MXU matmul of K = 9*batch*64.
    * Head Linear weights pre-scattered into the halo row layout.
    * MXU operands stored in bf16 (f32 accumulation in the kernel); pass
      mxu_dtype=jnp.float32 to disable.
    """
    c = 64
    hw = board_h * board_w
    interior, gather_np = _geometry(board_h, board_w)
    gather = jnp.asarray(gather_np)
    eye_b = jnp.eye(batch, dtype=jnp.float32)

    def fold3(p):
        s, b = _fold_bn(p)
        w = p["w"].astype(jnp.float32)                    # (3,3,Cin,Cout) HWIO
        cin, cout = w.shape[2], w.shape[3]
        w = w.reshape(9, cin, cout) * s.reshape(1, 1, cout)
        if cin < c:                                       # conv_in: pad Cin->64
            w = jnp.pad(w, ((0, 0), (0, c - cin), (0, 0)))
        taps = [jnp.kron(eye_b, w[k]) for k in range(9)]  # block-diag per tap
        wcat = jnp.concatenate(taps, axis=0)              # (9*B*64, B*Cout)
        bias = jnp.tile(b.reshape(1, cout).astype(jnp.float32), (1, batch))
        return wcat, bias

    def fold1(p):
        s, b = _fold_bn(p)
        w = p["w"].astype(jnp.float32).reshape(p["w"].shape[2], p["w"].shape[3])
        w = w * s.reshape(1, -1)
        wbd = jnp.kron(eye_b, w)                          # (B*64, B*Cout)
        bias = jnp.tile(b.reshape(1, -1).astype(jnp.float32), (1, batch))
        return wbd, bias

    trunk = [fold3(params[k]) for k in
             ("conv_in", "res1_c1", "res1_c2", "res2_c1", "res2_c2")]
    w_trunk = jnp.stack([w for w, _ in trunk], axis=0).astype(mxu_dtype)

    wp_bd, bp_bd = fold1(params["policy_conv"])           # (B*64, 2B), (1, 2B)
    wv_bd, bv_bd = fold1(params["value_conv"])            # (B*64, B),  (1, B)
    w_hconv = jnp.concatenate([wp_bd, wv_bd], axis=1)     # (B*64, 3B)
    b_hconv = jnp.concatenate([bp_bd, bv_bd], axis=1)     # (1, 3B)

    n_actions = params["policy_fc_b"].shape[0]
    nv = params["value_fc1_b"].shape[0]
    bc = batch * c
    for width in (3 * batch, n_actions, nv, 1):
        if width > bc:
            raise ValueError("bias table width exceeds batch*64 lanes")

    def pad_row(v):
        v = jnp.asarray(v, jnp.float32).reshape(-1)
        return jnp.pad(v, (0, bc - v.shape[0])).reshape(1, bc)

    b_misc = jnp.concatenate(
        [b for _, b in trunk]                     # rows 0..4: trunk biases
        + [pad_row(b_hconv),                      # row 5: head 1x1-conv bias
           pad_row(params["policy_fc_b"]),        # row 6: policy FC bias
           pad_row(params["value_fc1_b"]),        # row 7: value FC1 bias
           pad_row(params["value_fc2_b"])],       # row 8: value FC2 bias
        axis=0)                                   # (9, B*64)

    # FC weights scattered into the halo row layout (zero at halo rows), so
    # the PyTorch NCHW-flatten needs no runtime transpose / gather.
    wfc = params["policy_fc_w"].astype(jnp.float32)       # (2*hw, A)
    rpol = jnp.stack([gather @ wfc[:hw], gather @ wfc[hw:2 * hw]], axis=0)
    rval = gather @ params["value_fc1_w"].astype(jnp.float32)   # (rows, 64)

    mask = jnp.asarray(np.tile(interior, (1, bc)), jnp.float32)  # (rows, B*64)

    return dict(mask=mask, w_trunk=w_trunk, b_misc=b_misc, w_hconv=w_hconv,
                rpol=rpol, rval=rval,
                wv2=params["value_fc2_w"].astype(jnp.float32))


# ----------------------------------------------------------------------------
# The single fused Pallas kernel (whole network)
# ----------------------------------------------------------------------------
def _connectx_kernel(x0_ref, mask_ref, w_trunk_ref, b_misc_ref, w_hc_ref,
                     rpol_ref, rval_ref, wv2_ref,
                     logits_ref, value_ref, *, offsets):
    f32 = jnp.float32
    rows = mask_ref.shape[0]
    batch, n_actions = logits_ref.shape
    nv = wv2_ref.shape[0]
    mxu_dtype = w_trunk_ref.dtype
    mask = mask_ref[...]                      # (rows, B*C): 1.0 on interior rows

    def conv3x3(a, layer, res=None):
        """mask * relu(3x3 'same' conv (BN folded) [+ res]); halo layout."""
        pieces = []
        for off in offsets:
            # S[k] @ a  ==  roll rows by -off (XLU); wrap-around only reaches
            # halo rows, which `mask` re-zeroes below.
            s = a if off == 0 else pltpu.roll(a, shift=(-off) % rows, axis=0)
            pieces.append(s.astype(mxu_dtype))
        xcat = jnp.concatenate(pieces, axis=-1)           # (rows, 9*B*C) bf16
        acc = jnp.dot(xcat, w_trunk_ref[layer],
                      preferred_element_type=f32)         # (rows, B*C) f32
        acc = acc + b_misc_ref[pl.ds(layer, 1), :]
        if res is not None:
            acc = acc + res
        return mask * jnp.maximum(acc, 0.0)

    # trunk: conv_in + two residual blocks, fully resident in VMEM
    a = conv3x3(x0_ref[...], 0)
    t = conv3x3(a, 1)
    a = conv3x3(t, 2, res=a)
    t = conv3x3(a, 3)
    a = conv3x3(t, 4, res=a)

    # heads: fused policy/value 1x1 conv (+BN+ReLU) as one (B*C, 3B) matmul.
    b_hc = b_misc_ref[pl.ds(_BROW_HCONV, 1), pl.ds(0, 3 * batch)]
    hc = jnp.maximum(
        jnp.dot(a, w_hc_ref[...], preferred_element_type=f32) + b_hc, 0.0)
    pol = hc[:, :2 * batch]                   # (rows, 2B) policy conv channels
    vcv = hc[:, 2 * batch:3 * batch]          # (rows, B)  value conv channel

    # Linear layers: FC weights were pre-scattered into the halo row layout
    # (zero at halo rows), so they reduce to broadcast-multiply + row sums.
    rp0, rp1, rv = rpol_ref[0], rpol_ref[1], rval_ref[...]
    logit_rows, value_rows = [], []
    for b in range(batch):
        qb = (pol[:, 2 * b:2 * b + 1] * rp0
              + pol[:, 2 * b + 1:2 * b + 2] * rp1)        # (rows, A)
        logit_rows.append(jnp.sum(qb, axis=0, keepdims=True))
        value_rows.append(
            jnp.sum(vcv[:, b:b + 1] * rv, axis=0, keepdims=True))

    bpfc = b_misc_ref[pl.ds(_BROW_PFC, 1), pl.ds(0, n_actions)]
    bv1 = b_misc_ref[pl.ds(_BROW_VFC1, 1), pl.ds(0, nv)]
    bv2 = b_misc_ref[pl.ds(_BROW_VFC2, 1), pl.ds(0, 1)]

    logits = jnp.concatenate(logit_rows, axis=0) + bpfc            # (B, A)
    h = jnp.maximum(jnp.concatenate(value_rows, axis=0) + bv1, 0.0)
    v = jnp.tanh(jnp.dot(h, wv2_ref[...], preferred_element_type=f32) + bv2)

    logits_ref[...] = logits.astype(logits_ref.dtype)
    value_ref[...] = v.astype(value_ref.dtype)


# ----------------------------------------------------------------------------
# Public forward pass (one pallas_call)
# ----------------------------------------------------------------------------
def connectx_forward(prep, x_nchw):
    """NCHW input (like the PyTorch module) -> (policy_logits, value)."""
    B, cin, H, W = x_nchw.shape
    hp, wp = H + 2, W + 2
    rows = hp * wp
    bc = prep["mask"].shape[1]
    if prep["mask"].shape[0] != rows or bc % B != 0:
        raise ValueError("prepared params do not match the input shape")
    c = bc // B
    if cin > c:
        raise ValueError("too many input channels for the prepared params")
    n_actions = prep["rpol"].shape[2]

    # boundary glue: NCHW -> (halo rows, batch*channels) with zero halo rows
    xt = jnp.transpose(x_nchw, (2, 3, 0, 1)).astype(jnp.float32)  # (H,W,B,Cin)
    xt = jnp.pad(xt, ((1, 1), (1, 1), (0, 0), (0, c - cin)))
    x0 = xt.reshape(rows, bc)

    offsets = tuple((di - 1) * wp + (dj - 1)
                    for di in range(3) for dj in range(3))
    kernel = functools.partial(_connectx_kernel, offsets=offsets)

    n_inputs = 8
    logits, value = pl.pallas_call(
        kernel,
        out_shape=(jax.ShapeDtypeStruct((B, n_actions), jnp.float32),
                   jax.ShapeDtypeStruct((B, 1), jnp.float32)),
        in_specs=[pl.BlockSpec(memory_space=pltpu.MemorySpace.VMEM)] * n_inputs,
        out_specs=(pl.BlockSpec(memory_space=pltpu.MemorySpace.VMEM),
                   pl.BlockSpec(memory_space=pltpu.MemorySpace.VMEM)),
    )(x0, prep["mask"], prep["w_trunk"], prep["b_misc"], prep["w_hconv"],
      prep["rpol"], prep["rval"], prep["wv2"])
    return logits, value


# ----------------------------------------------------------------------------
# Pure-JAX reference of the original module semantics (for verification)
# ----------------------------------------------------------------------------
def _reference_forward(params, x_nchw):
    hp = jax.lax.Precision.HIGHEST
    x = jnp.transpose(x_nchw, (0, 2, 3, 1)).astype(jnp.float32)
    B, H, W, _ = x.shape

    def conv_bn_act(x, p, ksize, residual=None, act="relu"):
        Bq, Hq, Wq, Cin = x.shape
        Cout = p["w"].shape[-1]
        s, b = _fold_bn(p)
        if ksize == 3:
            xp = jnp.pad(x, ((0, 0), (1, 1), (1, 1), (0, 0)))
            patches = jnp.concatenate(
                [xp[:, i:i + Hq, j:j + Wq, :] for i in range(3) for j in range(3)],
                axis=-1).reshape(Bq * Hq * Wq, 9 * Cin)
            wmat = p["w"].reshape(9 * Cin, Cout)
        else:
            patches = x.reshape(Bq * Hq * Wq, Cin)
            wmat = p["w"].reshape(Cin, Cout)
        out = jnp.dot(patches, wmat, precision=hp) * s[None, :] + b[None, :]
        if residual is not None:
            out = out + residual.reshape(Bq * Hq * Wq, Cout)
        if act == "relu":
            out = jnp.maximum(out, 0.0)
        return out.reshape(Bq, Hq, Wq, Cout)

    def res_block(x, p1, p2):
        out = conv_bn_act(x, p1, 3)
        return conv_bn_act(out, p2, 3, residual=x)

    h = conv_bn_act(x, params["conv_in"], 3)
    h = res_block(h, params["res1_c1"], params["res1_c2"])
    h = res_block(h, params["res2_c1"], params["res2_c2"])

    p = conv_bn_act(h, params["policy_conv"], 1)
    p = jnp.transpose(p, (0, 3, 1, 2)).reshape(B, 2 * H * W)
    logits = jnp.dot(p, params["policy_fc_w"], precision=hp) + params["policy_fc_b"]

    v = conv_bn_act(h, params["value_conv"], 1)
    v = jnp.transpose(v, (0, 3, 1, 2)).reshape(B, H * W)
    v = jnp.maximum(jnp.dot(v, params["value_fc1_w"], precision=hp)
                    + params["value_fc1_b"], 0.0)
    v = jnp.tanh(jnp.dot(v, params["value_fc2_w"], precision=hp)
                 + params["value_fc2_b"])
    return logits, v


# ----------------------------------------------------------------------------
if __name__ == "__main__":
    key = jax.random.PRNGKey(0)
    k_params, k_x = jax.random.split(key)

    params = init_params(k_params, input_channels=3, board_h=6, board_w=7,
                         n_actions=7)
    # input matches the PyTorch module: NCHW, (batch=2, channels=3, 6, 7)
    x = jax.random.normal(k_x, (2, 3, 6, 7), jnp.float32)

    prep = prepare_params(params, board_h=6, board_w=7, batch=2)
    fwd = jax.jit(connectx_forward)
    policy_logits, value = fwd(prep, x)
    jax.block_until_ready((policy_logits, value))

    assert policy_logits.shape == (2, 7)
    assert value.shape == (2, 1)

    # The kernel uses bf16 MXU operands (f32 accumulation) per the perf
    # review; the reference runs at Precision.HIGHEST, so we explicitly accept
    # bf16-class error here.
    ref_logits, ref_value = jax.jit(_reference_forward)(params, x)
    np.testing.assert_allclose(np.asarray(policy_logits), np.asarray(ref_logits),
                               rtol=5e-2, atol=5e-2)
    np.testing.assert_allclose(np.asarray(value), np.asarray(ref_value),
                               rtol=5e-2, atol=5e-2)

    print("KERNEL_OK")
</pallas_src>

<mosaic_0001>
module attributes {stable_mosaic.version = 11 : i64} {
  func.func @_connectx_kernel(%arg0: memref<72x128xf32, #tpu.memory_space<vmem>>, %arg1: memref<72x128xf32, #tpu.memory_space<vmem>>, %arg2: memref<5x1152x128xbf16, #tpu.memory_space<vmem>>, %arg3: memref<9x128xf32, #tpu.memory_space<vmem>>, %arg4: memref<128x6xf32, #tpu.memory_space<vmem>>, %arg5: memref<2x72x7xf32, #tpu.memory_space<vmem>>, %arg6: memref<72x64xf32, #tpu.memory_space<vmem>>, %arg7: memref<64x1xf32, #tpu.memory_space<vmem>>, %arg8: memref<2x7xf32, #tpu.memory_space<vmem>>, %arg9: memref<2x1xf32, #tpu.memory_space<vmem>>) attributes {dimension_semantics = [], scalar_prefetch = 0 : i64, scratch_operands = 0 : i64, tpu.core_type = #tpu.core_type<tc>} {
    %c0 = arith.constant 0 : index
    %c0_0 = arith.constant 0 : index
    %0 = vector.load %arg1[%c0, %c0_0] : memref<72x128xf32, #tpu.memory_space<vmem>>, vector<72x128xf32>
    %c0_1 = arith.constant 0 : index
    %c0_2 = arith.constant 0 : index
    %1 = vector.load %arg0[%c0_1, %c0_2] : memref<72x128xf32, #tpu.memory_space<vmem>>, vector<72x128xf32>
    %c10_i32 = arith.constant 10 : i32
    %2 = tpu.dynamic_rotate %1 by %c10_i32 dim 0 : vector<72x128xf32>, i32 -> vector<72x128xf32>
    %3 = arith.truncf %2 : vector<72x128xf32> to vector<72x128xbf16>
    %c9_i32 = arith.constant 9 : i32
    %4 = tpu.dynamic_rotate %1 by %c9_i32 dim 0 : vector<72x128xf32>, i32 -> vector<72x128xf32>
    %5 = arith.truncf %4 : vector<72x128xf32> to vector<72x128xbf16>
    %c8_i32 = arith.constant 8 : i32
    %6 = tpu.dynamic_rotate %1 by %c8_i32 dim 0 : vector<72x128xf32>, i32 -> vector<72x128xf32>
    %7 = arith.truncf %6 : vector<72x128xf32> to vector<72x128xbf16>
    %c1_i32 = arith.constant 1 : i32
    %8 = tpu.dynamic_rotate %1 by %c1_i32 dim 0 : vector<72x128xf32>, i32 -> vector<72x128xf32>
    %9 = arith.truncf %8 : vector<72x128xf32> to vector<72x128xbf16>
    %10 = arith.truncf %1 : vector<72x128xf32> to vector<72x128xbf16>
    %c71_i32 = arith.constant 71 : i32
    %11 = tpu.dynamic_rotate %1 by %c71_i32 dim 0 : vector<72x128xf32>, i32 -> vector<72x128xf32>
    %12 = arith.truncf %11 : vector<72x128xf32> to vector<72x128xbf16>
    %c64_i32 = arith.constant 64 : i32
    %13 = tpu.dynamic_rotate %1 by %c64_i32 dim 0 : vector<72x128xf32>, i32 -> vector<72x128xf32>
    %14 = arith.truncf %13 : vector<72x128xf32> to vector<72x128xbf16>
    %c63_i32 = arith.constant 63 : i32
    %15 = tpu.dynamic_rotate %1 by %c63_i32 dim 0 : vector<72x128xf32>, i32 -> vector<72x128xf32>
    %16 = arith.truncf %15 : vector<72x128xf32> to vector<72x128xbf16>
    %c62_i32 = arith.constant 62 : i32
    %17 = tpu.dynamic_rotate %1 by %c62_i32 dim 0 : vector<72x128xf32>, i32 -> vector<72x128xf32>
    %18 = arith.truncf %17 : vector<72x128xf32> to vector<72x128xbf16>
    %19 = tpu.concatenate %3, %5, %7, %9, %10, %12, %14, %16, %18 in 1 : vector<72x128xbf16>, vector<72x128xbf16>, vector<72x128xbf16>, vector<72x128xbf16>, vector<72x128xbf16>, vector<72x128xbf16>, vector<72x128xbf16>, vector<72x128xbf16>, vector<72x128xbf16> -> vector<72x1152xbf16>
    %c0_3 = arith.constant 0 : index
    %c0_4 = arith.constant 0 : index
    %c0_5 = arith.constant 0 : index
    %20 = vector.load %arg2[%c0_3, %c0_4, %c0_5] : memref<5x1152x128xbf16, #tpu.memory_space<vmem>>, vector<1x1152x128xbf16>
    %21 = vector.shape_cast %20 : vector<1x1152x128xbf16> to vector<1152x128xbf16>
    %cst = arith.constant dense<0.000000e+00> : vector<72x128xf32>
    %22 = tpu.matmul %19, %21, %cst {dimension_numbers = #tpu.dot_dimension_numbers<[1], [0], [0], [1], [0, 0, 1, 1], [], []>} : vector<72x1152xbf16>, vector<1152x128xbf16>, vector<72x128xf32> -> vector<72x128xf32>
    %c0_6 = arith.constant 0 : index
    %c0_7 = arith.constant 0 : index
    %23 = vector.load %arg3[%c0_6, %c0_7] : memref<9x128xf32, #tpu.memory_space<vmem>>, vector<1x128xf32>
    %24 = vector.broadcast %23 : vector<1x128xf32> to vector<72x128xf32>
    %25 = arith.addf %22, %24 : vector<72x128xf32>
    %cst_8 = arith.constant 0.000000e+00 : f32
    %26 = vector.broadcast %cst_8 : f32 to vector<72x128xf32>
    %27 = arith.maximumf %25, %26 : vector<72x128xf32>
    %28 = arith.mulf %0, %27 : vector<72x128xf32>
    %c10_i32_9 = arith.constant 10 : i32
    %29 = tpu.dynamic_rotate %28 by %c10_i32_9 dim 0 : vector<72x128xf32>, i32 -> vector<72x128xf32>
    %30 = arith.truncf %29 : vector<72x128xf32> to vector<72x128xbf16>
    %c9_i32_10 = arith.constant 9 : i32
    %31 = tpu.dynamic_rotate %28 by %c9_i32_10 dim 0 : vector<72x128xf32>, i32 -> vector<72x128xf32>
    %32 = arith.truncf %31 : vector<72x128xf32> to vector<72x128xbf16>
    %c8_i32_11 = arith.constant 8 : i32
    %33 = tpu.dynamic_rotate %28 by %c8_i32_11 dim 0 : vector<72x128xf32>, i32 -> vector<72x128xf32>
    %34 = arith.truncf %33 : vector<72x128xf32> to vector<72x128xbf16>
    %c1_i32_12 = arith.constant 1 : i32
    %35 = tpu.dynamic_rotate %28 by %c1_i32_12 dim 0 : vector<72x128xf32>, i32 -> vector<72x128xf32>
    %36 = arith.truncf %35 : vector<72x128xf32> to vector<72x128xbf16>
    %37 = arith.truncf %28 : vector<72x128xf32> to vector<72x128xbf16>
    %c71_i32_13 = arith.constant 71 : i32
    %38 = tpu.dynamic_rotate %28 by %c71_i32_13 dim 0 : vector<72x128xf32>, i32 -> vector<72x128xf32>
    %39 = arith.truncf %38 : vector<72x128xf32> to vector<72x128xbf16>
    %c64_i32_14 = arith.constant 64 : i32
    %40 = tpu.dynamic_rotate %28 by %c64_i32_14 dim 0 : vector<72x128xf32>, i32 -> vector<72x128xf32>
    %41 = arith.truncf %40 : vector<72x128xf32> to vector<72x128xbf16>
    %c63_i32_15 = arith.constant 63 : i32
    %42 = tpu.dynamic_rotate %28 by %c63_i32_15 dim 0 : vector<72x128xf32>, i32 -> vector<72x128xf32>
    %43 = arith.truncf %42 : vector<72x128xf32> to vector<72x128xbf16>
    %c62_i32_16 = arith.constant 62 : i32
    %44 = tpu.dynamic_rotate %28 by %c62_i32_16 dim 0 : vector<72x128xf32>, i32 -> vector<72x128xf32>
    %45 = arith.truncf %44 : vector<72x128xf32> to vector<72x128xbf16>
    %46 = tpu.concatenate %30, %32, %34, %36, %37, %39, %41, %43, %45 in 1 : vector<72x128xbf16>, vector<72x128xbf16>, vector<72x128xbf16>, vector<72x128xbf16>, vector<72x128xbf16>, vector<72x128xbf16>, vector<72x128xbf16>, vector<72x128xbf16>, vector<72x128xbf16> -> vector<72x1152xbf16>
    %c1 = arith.constant 1 : index
    %c0_17 = arith.constant 0 : index
    %c0_18 = arith.constant 0 : index
    %47 = vector.load %arg2[%c1, %c0_17, %c0_18] : memref<5x1152x128xbf16, #tpu.memory_space<vmem>>, vector<1x1152x128xbf16>
    %48 = vector.shape_cast %47 : vector<1x1152x128xbf16> to vector<1152x128xbf16>
    %cst_19 = arith.constant dense<0.000000e+00> : vector<72x128xf32>
    %49 = tpu.matmul %46, %48, %cst_19 {dimension_numbers = #tpu.dot_dimension_numbers<[1], [0], [0], [1], [0, 0, 1, 1], [], []>} : vector<72x1152xbf16>, vector<1152x128xbf16>, vector<72x128xf32> -> vector<72x128xf32>
    %c1_20 = arith.constant 1 : index
    %c0_21 = arith.constant 0 : index
    %50 = vector.load %arg3[%c1_20, %c0_21] : memref<9x128xf32, #tpu.memory_space<vmem>>, vector<1x128xf32>
    %51 = vector.broadcast %50 : vector<1x128xf32> to vector<72x128xf32>
    %52 = arith.addf %49, %51 : vector<72x128xf32>
    %cst_22 = arith.constant 0.000000e+00 : f32
    %53 = vector.broadcast %cst_22 : f32 to vector<72x128xf32>
    %54 = arith.maximumf %52, %53 : vector<72x128xf32>
    %55 = arith.mulf %0, %54 : vector<72x128xf32>
    %c10_i32_23 = arith.constant 10 : i32
    %56 = tpu.dynamic_rotate %55 by %c10_i32_23 dim 0 : vector<72x128xf32>, i32 -> vector<72x128xf32>
    %57 = arith.truncf %56 : vector<72x128xf32> to vector<72x128xbf16>
    %c9_i32_24 = arith.constant 9 : i32
    %58 = tpu.dynamic_rotate %55 by %c9_i32_24 dim 0 : vector<72x128xf32>, i32 -> vector<72x128xf32>
    %59 = arith.truncf %58 : vector<72x128xf32> to vector<72x128xbf16>
    %c8_i32_25 = arith.constant 8 : i32
    %60 = tpu.dynamic_rotate %55 by %c8_i32_25 dim 0 : vector<72x128xf32>, i32 -> vector<72x128xf32>
    %61 = arith.truncf %60 : vector<72x128xf32> to vector<72x128xbf16>
    %c1_i32_26 = arith.constant 1 : i32
    %62 = tpu.dynamic_rotate %55 by %c1_i32_26 dim 0 : vector<72x128xf32>, i32 -> vector<72x128xf32>
    %63 = arith.truncf %62 : vector<72x128xf32> to vector<72x128xbf16>
    %64 = arith.truncf %55 : vector<72x128xf32> to vector<72x128xbf16>
    %c71_i32_27 = arith.constant 71 : i32
    %65 = tpu.dynamic_rotate %55 by %c71_i32_27 dim 0 : vector<72x128xf32>, i32 -> vector<72x128xf32>
    %66 = arith.truncf %65 : vector<72x128xf32> to vector<72x128xbf16>
    %c64_i32_28 = arith.constant 64 : i32
    %67 = tpu.dynamic_rotate %55 by %c64_i32_28 dim 0 : vector<72x128xf32>, i32 -> vector<72x128xf32>
    %68 = arith.truncf %67 : vector<72x128xf32> to vector<72x128xbf16>
    %c63_i32_29 = arith.constant 63 : i32
    %69 = tpu.dynamic_rotate %55 by %c63_i32_29 dim 0 : vector<72x128xf32>, i32 -> vector<72x128xf32>
    %70 = arith.truncf %69 : vector<72x128xf32> to vector<72x128xbf16>
    %c62_i32_30 = arith.constant 62 : i32
    %71 = tpu.dynamic_rotate %55 by %c62_i32_30 dim 0 : vector<72x128xf32>, i32 -> vector<72x128xf32>
    %72 = arith.truncf %71 : vector<72x128xf32> to vector<72x128xbf16>
    %73 = tpu.concatenate %57, %59, %61, %63, %64, %66, %68, %70, %72 in 1 : vector<72x128xbf16>, vector<72x128xbf16>, vector<72x128xbf16>, vector<72x128xbf16>, vector<72x128xbf16>, vector<72x128xbf16>, vector<72x128xbf16>, vector<72x128xbf16>, vector<72x128xbf16> -> vector<72x1152xbf16>
    %c2 = arith.constant 2 : index
    %c0_31 = arith.constant 0 : index
    %c0_32 = arith.constant 0 : index
    %74 = vector.load %arg2[%c2, %c0_31, %c0_32] : memref<5x1152x128xbf16, #tpu.memory_space<vmem>>, vector<1x1152x128xbf16>
    %75 = vector.shape_cast %74 : vector<1x1152x128xbf16> to vector<1152x128xbf16>
    %cst_33 = arith.constant dense<0.000000e+00> : vector<72x128xf32>
    %76 = tpu.matmul %73, %75, %cst_33 {dimension_numbers = #tpu.dot_dimension_numbers<[1], [0], [0], [1], [0, 0, 1, 1], [], []>} : vector<72x1152xbf16>, vector<1152x128xbf16>, vector<72x128xf32> -> vector<72x128xf32>
    %c2_34 = arith.constant 2 : index
    %c0_35 = arith.constant 0 : index
    %77 = vector.load %arg3[%c2_34, %c0_35] : memref<9x128xf32, #tpu.memory_space<vmem>>, vector<1x128xf32>
    %78 = vector.broadcast %77 : vector<1x128xf32> to vector<72x128xf32>
    %79 = arith.addf %76, %78 : vector<72x128xf32>
    %80 = arith.addf %79, %28 : vector<72x128xf32>
    %cst_36 = arith.constant 0.000000e+00 : f32
    %81 = vector.broadcast %cst_36 : f32 to vector<72x128xf32>
    %82 = arith.maximumf %80, %81 : vector<72x128xf32>
    %83 = arith.mulf %0, %82 : vector<72x128xf32>
    %c10_i32_37 = arith.constant 10 : i32
    %84 = tpu.dynamic_rotate %83 by %c10_i32_37 dim 0 : vector<72x128xf32>, i32 -> vector<72x128xf32>
    %85 = arith.truncf %84 : vector<72x128xf32> to vector<72x128xbf16>
    %c9_i32_38 = arith.constant 9 : i32
    %86 = tpu.dynamic_rotate %83 by %c9_i32_38 dim 0 : vector<72x128xf32>, i32 -> vector<72x128xf32>
    %87 = arith.truncf %86 : vector<72x128xf32> to vector<72x128xbf16>
    %c8_i32_39 = arith.constant 8 : i32
    %88 = tpu.dynamic_rotate %83 by %c8_i32_39 dim 0 : vector<72x128xf32>, i32 -> vector<72x128xf32>
    %89 = arith.truncf %88 : vector<72x128xf32> to vector<72x128xbf16>
    %c1_i32_40 = arith.constant 1 : i32
    %90 = tpu.dynamic_rotate %83 by %c1_i32_40 dim 0 : vector<72x128xf32>, i32 -> vector<72x128xf32>
    %91 = arith.truncf %90 : vector<72x128xf32> to vector<72x128xbf16>
    %92 = arith.truncf %83 : vector<72x128xf32> to vector<72x128xbf16>
    %c71_i32_41 = arith.constant 71 : i32
    %93 = tpu.dynamic_rotate %83 by %c71_i32_41 dim 0 : vector<72x128xf32>, i32 -> vector<72x128xf32>
    %94 = arith.truncf %93 : vector<72x128xf32> to vector<72x128xbf16>
    %c64_i32_42 = arith.constant 64 : i32
    %95 = tpu.dynamic_rotate %83 by %c64_i32_42 dim 0 : vector<72x128xf32>, i32 -> vector<72x128xf32>
    %96 = arith.truncf %95 : vector<72x128xf32> to vector<72x128xbf16>
    %c63_i32_43 = arith.constant 63 : i32
    %97 = tpu.dynamic_rotate %83 by %c63_i32_43 dim 0 : vector<72x128xf32>, i32 -> vector<72x128xf32>
    %98 = arith.truncf %97 : vector<72x128xf32> to vector<72x128xbf16>
    %c62_i32_44 = arith.constant 62 : i32
    %99 = tpu.dynamic_rotate %83 by %c62_i32_44 dim 0 : vector<72x128xf32>, i32 -> vector<72x128xf32>
    %100 = arith.truncf %99 : vector<72x128xf32> to vector<72x128xbf16>
    %101 = tpu.concatenate %85, %87, %89, %91, %92, %94, %96, %98, %100 in 1 : vector<72x128xbf16>, vector<72x128xbf16>, vector<72x128xbf16>, vector<72x128xbf16>, vector<72x128xbf16>, vector<72x128xbf16>, vector<72x128xbf16>, vector<72x128xbf16>, vector<72x128xbf16> -> vector<72x1152xbf16>
    %c3 = arith.constant 3 : index
    %c0_45 = arith.constant 0 : index
    %c0_46 = arith.constant 0 : index
    %102 = vector.load %arg2[%c3, %c0_45, %c0_46] : memref<5x1152x128xbf16, #tpu.memory_space<vmem>>, vector<1x1152x128xbf16>
    %103 = vector.shape_cast %102 : vector<1x1152x128xbf16> to vector<1152x128xbf16>
    %cst_47 = arith.constant dense<0.000000e+00> : vector<72x128xf32>
    %104 = tpu.matmul %101, %103, %cst_47 {dimension_numbers = #tpu.dot_dimension_numbers<[1], [0], [0], [1], [0, 0, 1, 1], [], []>} : vector<72x1152xbf16>, vector<1152x128xbf16>, vector<72x128xf32> -> vector<72x128xf32>
    %c3_48 = arith.constant 3 : index
    %c0_49 = arith.constant 0 : index
    %105 = vector.load %arg3[%c3_48, %c0_49] : memref<9x128xf32, #tpu.memory_space<vmem>>, vector<1x128xf32>
    %106 = vector.broadcast %105 : vector<1x128xf32> to vector<72x128xf32>
    %107 = arith.addf %104, %106 : vector<72x128xf32>
    %cst_50 = arith.constant 0.000000e+00 : f32
    %108 = vector.broadcast %cst_50 : f32 to vector<72x128xf32>
    %109 = arith.maximumf %107, %108 : vector<72x128xf32>
    %110 = arith.mulf %0, %109 : vector<72x128xf32>
    %c10_i32_51 = arith.constant 10 : i32
    %111 = tpu.dynamic_rotate %110 by %c10_i32_51 dim 0 : vector<72x128xf32>, i32 -> vector<72x128xf32>
    %112 = arith.truncf %111 : vector<72x128xf32> to vector<72x128xbf16>
    %c9_i32_52 = arith.constant 9 : i32
    %113 = tpu.dynamic_rotate %110 by %c9_i32_52 dim 0 : vector<72x128xf32>, i32 -> vector<72x128xf32>
    %114 = arith.truncf %113 : vector<72x128xf32> to vector<72x128xbf16>
    %c8_i32_53 = arith.constant 8 : i32
    %115 = tpu.dynamic_rotate %110 by %c8_i32_53 dim 0 : vector<72x128xf32>, i32 -> vector<72x128xf32>
    %116 = arith.truncf %115 : vector<72x128xf32> to vector<72x128xbf16>
    %c1_i32_54 = arith.constant 1 : i32
    %117 = tpu.dynamic_rotate %110 by %c1_i32_54 dim 0 : vector<72x128xf32>, i32 -> vector<72x128xf32>
    %118 = arith.truncf %117 : vector<72x128xf32> to vector<72x128xbf16>
    %119 = arith.truncf %110 : vector<72x128xf32> to vector<72x128xbf16>
    %c71_i32_55 = arith.constant 71 : i32
    %120 = tpu.dynamic_rotate %110 by %c71_i32_55 dim 0 : vector<72x128xf32>, i32 -> vector<72x128xf32>
    %121 = arith.truncf %120 : vector<72x128xf32> to vector<72x128xbf16>
    %c64_i32_56 = arith.constant 64 : i32
    %122 = tpu.dynamic_rotate %110 by %c64_i32_56 dim 0 : vector<72x128xf32>, i32 -> vector<72x128xf32>
    %123 = arith.truncf %122 : vector<72x128xf32> to vector<72x128xbf16>
    %c63_i32_57 = arith.constant 63 : i32
    %124 = tpu.dynamic_rotate %110 by %c63_i32_57 dim 0 : vector<72x128xf32>, i32 -> vector<72x128xf32>
    %125 = arith.truncf %124 : vector<72x128xf32> to vector<72x128xbf16>
    %c62_i32_58 = arith.constant 62 : i32
    %126 = tpu.dynamic_rotate %110 by %c62_i32_58 dim 0 : vector<72x128xf32>, i32 -> vector<72x128xf32>
    %127 = arith.truncf %126 : vector<72x128xf32> to vector<72x128xbf16>
    %128 = tpu.concatenate %112, %114, %116, %118, %119, %121, %123, %125, %127 in 1 : vector<72x128xbf16>, vector<72x128xbf16>, vector<72x128xbf16>, vector<72x128xbf16>, vector<72x128xbf16>, vector<72x128xbf16>, vector<72x128xbf16>, vector<72x128xbf16>, vector<72x128xbf16> -> vector<72x1152xbf16>
    %c4 = arith.constant 4 : index
    %c0_59 = arith.constant 0 : index
    %c0_60 = arith.constant 0 : index
    %129 = vector.load %arg2[%c4, %c0_59, %c0_60] : memref<5x1152x128xbf16, #tpu.memory_space<vmem>>, vector<1x1152x128xbf16>
    %130 = vector.shape_cast %129 : vector<1x1152x128xbf16> to vector<1152x128xbf16>
    %cst_61 = arith.constant dense<0.000000e+00> : vector<72x128xf32>
    %131 = tpu.matmul %128, %130, %cst_61 {dimension_numbers = #tpu.dot_dimension_numbers<[1], [0], [0], [1], [0, 0, 1, 1], [], []>} : vector<72x1152xbf16>, vector<1152x128xbf16>, vector<72x128xf32> -> vector<72x128xf32>
    %c4_62 = arith.constant 4 : index
    %c0_63 = arith.constant 0 : index
    %132 = vector.load %arg3[%c4_62, %c0_63] : memref<9x128xf32, #tpu.memory_space<vmem>>, vector<1x128xf32>
    %133 = vector.broadcast %132 : vector<1x128xf32> to vector<72x128xf32>
    %134 = arith.addf %131, %133 : vector<72x128xf32>
    %135 = arith.addf %134, %83 : vector<72x128xf32>
    %cst_64 = arith.constant 0.000000e+00 : f32
    %136 = vector.broadcast %cst_64 : f32 to vector<72x128xf32>
    %137 = arith.maximumf %135, %136 : vector<72x128xf32>
    %138 = arith.mulf %0, %137 : vector<72x128xf32>
    %c5 = arith.constant 5 : index
    %c0_65 = arith.constant 0 : index
    %139 = vector.load %arg3[%c5, %c0_65] : memref<9x128xf32, #tpu.memory_space<vmem>>, vector<1x6xf32>
    %c0_66 = arith.constant 0 : index
    %c0_67 = arith.constant 0 : index
    %140 = vector.load %arg4[%c0_66, %c0_67] : memref<128x6xf32, #tpu.memory_space<vmem>>, vector<128x6xf32>
    %cst_68 = arith.constant dense<0.000000e+00> : vector<72x6xf32>
    %141 = tpu.matmul %138, %140, %cst_68 {dimension_numbers = #tpu.dot_dimension_numbers<[1], [0], [0], [1], [0, 0, 1, 1], [], []>} : vector<72x128xf32>, vector<128x6xf32>, vector<72x6xf32> -> vector<72x6xf32>
    %142 = vector.broadcast %139 : vector<1x6xf32> to vector<72x6xf32>
    %143 = arith.addf %141, %142 : vector<72x6xf32>
    %cst_69 = arith.constant 0.000000e+00 : f32
    %144 = vector.broadcast %cst_69 : f32 to vector<72x6xf32>
    %145 = arith.maximumf %143, %144 : vector<72x6xf32>
    %146 = vector.extract_strided_slice %145 {offsets = [0, 0], sizes = [72, 4], strides = [1, 1]} : vector<72x6xf32> to vector<72x4xf32>
    %147 = vector.extract_strided_slice %145 {offsets = [0, 4], sizes = [72, 2], strides = [1, 1]} : vector<72x6xf32> to vector<72x2xf32>
    %c0_70 = arith.constant 0 : index
    %c0_71 = arith.constant 0 : index
    %c0_72 = arith.constant 0 : index
    %148 = vector.load %arg5[%c0_70, %c0_71, %c0_72] : memref<2x72x7xf32, #tpu.memory_space<vmem>>, vector<1x72x7xf32>
    %149 = vector.shape_cast %148 : vector<1x72x7xf32> to vector<72x7xf32>
    %c1_73 = arith.constant 1 : index
    %c0_74 = arith.constant 0 : index
    %c0_75 = arith.constant 0 : index
    %150 = vector.load %arg5[%c1_73, %c0_74, %c0_75] : memref<2x72x7xf32, #tpu.memory_space<vmem>>, vector<1x72x7xf32>
    %151 = vector.shape_cast %150 : vector<1x72x7xf32> to vector<72x7xf32>
    %c0_76 = arith.constant 0 : index
    %c0_77 = arith.constant 0 : index
    %152 = vector.load %arg6[%c0_76, %c0_77] : memref<72x64xf32, #tpu.memory_space<vmem>>, vector<72x64xf32>
    %153 = vector.extract_strided_slice %146 {offsets = [0, 0], sizes = [72, 1], strides = [1, 1]} : vector<72x4xf32> to vector<72x1xf32>
    %154 = vector.broadcast %153 : vector<72x1xf32> to vector<72x7xf32>
    %155 = arith.mulf %154, %149 : vector<72x7xf32>
    %156 = vector.extract_strided_slice %146 {offsets = [0, 1], sizes = [72, 1], strides = [1, 1]} : vector<72x4xf32> to vector<72x1xf32>
    %157 = vector.broadcast %156 : vector<72x1xf32> to vector<72x7xf32>
    %158 = arith.mulf %157, %151 : vector<72x7xf32>
    %159 = arith.addf %155, %158 : vector<72x7xf32>
    %cst_78 = arith.constant dense<0.000000e+00> : vector<7xf32>
    %160 = vector.multi_reduction <add>, %159, %cst_78 [0] : vector<72x7xf32> to vector<7xf32>
    %161 = vector.shape_cast %160 : vector<7xf32> to vector<1x7xf32>
    %162 = vector.extract_strided_slice %147 {offsets = [0, 0], sizes = [72, 1], strides = [1, 1]} : vector<72x2xf32> to vector<72x1xf32>
    %163 = vector.broadcast %162 : vector<72x1xf32> to vector<72x64xf32>
    %164 = arith.mulf %163, %152 : vector<72x64xf32>
    %cst_79 = arith.constant dense<0.000000e+00> : vector<64xf32>
    %165 = vector.multi_reduction <add>, %164, %cst_79 [0] : vector<72x64xf32> to vector<64xf32>
    %166 = vector.shape_cast %165 : vector<64xf32> to vector<1x64xf32>
    %167 = vector.extract_strided_slice %146 {offsets = [0, 2], sizes = [72, 1], strides = [1, 1]} : vector<72x4xf32> to vector<72x1xf32>
    %168 = vector.broadcast %167 : vector<72x1xf32> to vector<72x7xf32>
    %169 = arith.mulf %168, %149 : vector<72x7xf32>
    %170 = vector.extract_strided_slice %146 {offsets = [0, 3], sizes = [72, 1], strides = [1, 1]} : vector<72x4xf32> to vector<72x1xf32>
    %171 = vector.broadcast %170 : vector<72x1xf32> to vector<72x7xf32>
    %172 = arith.mulf %171, %151 : vector<72x7xf32>
    %173 = arith.addf %169, %172 : vector<72x7xf32>
    %cst_80 = arith.constant dense<0.000000e+00> : vector<7xf32>
    %174 = vector.multi_reduction <add>, %173, %cst_80 [0] : vector<72x7xf32> to vector<7xf32>
    %175 = vector.shape_cast %174 : vector<7xf32> to vector<1x7xf32>
    %176 = vector.extract_strided_slice %147 {offsets = [0, 1], sizes = [72, 1], strides = [1, 1]} : vector<72x2xf32> to vector<72x1xf32>
    %177 = vector.broadcast %176 : vector<72x1xf32> to vector<72x64xf32>
    %178 = arith.mulf %177, %152 : vector<72x64xf32>
    %cst_81 = arith.constant dense<0.000000e+00> : vector<64xf32>
    %179 = vector.multi_reduction <add>, %178, %cst_81 [0] : vector<72x64xf32> to vector<64xf32>
    %180 = vector.shape_cast %179 : vector<64xf32> to vector<1x64xf32>
    %c6 = arith.constant 6 : index
    %c0_82 = arith.constant 0 : index
    %181 = vector.load %arg3[%c6, %c0_82] : memref<9x128xf32, #tpu.memory_space<vmem>>, vector<1x7xf32>
    %c7 = arith.constant 7 : index
    %c0_83 = arith.constant 0 : index
    %182 = vector.load %arg3[%c7, %c0_83] : memref<9x128xf32, #tpu.memory_space<vmem>>, vector<1x64xf32>
    %c8 = arith.constant 8 : index
    %c0_84 = arith.constant 0 : index
    %183 = vector.load %arg3[%c8, %c0_84] : memref<9x128xf32, #tpu.memory_space<vmem>>, vector<1x1xf32>
    %184 = tpu.concatenate %161, %175 in 0 : vector<1x7xf32>, vector<1x7xf32> -> vector<2x7xf32>
    %185 = vector.broadcast %181 : vector<1x7xf32> to vector<2x7xf32>
    %186 = arith.addf %184, %185 : vector<2x7xf32>
    %187 = tpu.concatenate %166, %180 in 0 : vector<1x64xf32>, vector<1x64xf32> -> vector<2x64xf32>
    %188 = vector.broadcast %182 : vector<1x64xf32> to vector<2x64xf32>
    %189 = arith.addf %187, %188 : vector<2x64xf32>
    %cst_85 = arith.constant 0.000000e+00 : f32
    %190 = vector.broadcast %cst_85 : f32 to vector<2x64xf32>
    %191 = arith.maximumf %189, %190 : vector<2x64xf32>
    %c0_86 = arith.constant 0 : index
    %c0_87 = arith.constant 0 : index
    %192 = vector.load %arg7[%c0_86, %c0_87] : memref<64x1xf32, #tpu.memory_space<vmem>>, vector<64x1xf32>
    %cst_88 = arith.constant dense<0.000000e+00> : vector<2x1xf32>
    %193 = tpu.matmul %191, %192, %cst_88 {dimension_numbers = #tpu.dot_dimension_numbers<[1], [0], [0], [1], [0, 0, 1, 1], [], []>} : vector<2x64xf32>, vector<64x1xf32>, vector<2x1xf32> -> vector<2x1xf32>
    %194 = vector.broadcast %183 : vector<1x1xf32> to vector<2x1xf32>
    %195 = arith.addf %193, %194 : vector<2x1xf32>
    %196 = math.tanh %195 : vector<2x1xf32>
    %c0_89 = arith.constant 0 : index
    %c0_90 = arith.constant 0 : index
    %197 = vector.load %arg8[%c0_89, %c0_90] : memref<2x7xf32, #tpu.memory_space<vmem>>, vector<2x7xf32>
    tpu.vector_store %arg8[%c0_89, %c0_90], %186 {strides = array<i32>} : memref<2x7xf32, #tpu.memory_space<vmem>>, vector<2x7xf32>,
    %c0_91 = arith.constant 0 : index
    %c0_92 = arith.constant 0 : index
    %198 = vector.load %arg9[%c0_91, %c0_92] : memref<2x1xf32, #tpu.memory_space<vmem>>, vector<2x1xf32>
    tpu.vector_store %arg9[%c0_91, %c0_92], %196 {strides = array<i32>} : memref<2x1xf32, #tpu.memory_space<vmem>>, vector<2x1xf32>,
    return
  }
}

</mosaic_0001>

<bundles_post_ra>
// kernel: connectx_forward.1
= control target key start
LH: loop header
LB: loop body
LE: loop exit
PB: predicated region body
PF: predicated region fallthrough
CT: control target
= control target key end

     0   :  { %15 = vsyncpa [#allocation3], 0  ;;  %s10638_s0 = inlined_call_operand.vmem [shape: f32[72,128], index: 0, kind: input, shape index: {}]   ;;  %s10639_s1 = inlined_call_operand.hbm [shape: f32[72,128], index: 1, kind: input, shape index: {}]   ;;  %s10640_s2 = inlined_call_operand.hbm [shape: bf16[5,1152,128], index: 2, kind: input, shape index: {}]   ;;  %s10641_s3 = inlined_call_operand.hbm [shape: f32[9,128], index: 3, kind: input, shape index: {}]   ;;  %s10642_s4 = inlined_call_operand.vmem [shape: f32[128,6], index: 4, kind: input, shape index: {}]   ;;  %s10643_s5 = inlined_call_operand.vmem [shape: f32[2,72,7], index: 5, kind: input, shape index: {}]   ;;  %s10644_s6 = inlined_call_operand.vmem [shape: f32[72,64], index: 6, kind: input, shape index: {}]   ;;  %s10645_s7 = inlined_call_operand.vmem [shape: f32[64,1], index: 7, kind: input, shape index: {}]   ;;  %s10646_s8 = inlined_call_operand.hbm [shape: f32[2,7], index: 8, kind: output, shape index: {0}]   ;;  %s10647_s9 = inlined_call_operand.vmem [shape: f32[2,1], index: 9, kind: output, shape index: {1}]  }
   0x1   :  { %16 = vsyncpa [#allocation6], 0 }
   0x2   :  { %17 = vsyncpa [#allocation4], 0  ;;  %s8384_s30 = smov [#allocation5]   ;;  %s8290_s13 = scalar_lea.hbm %s10640_s2, 46080 }
   0x3   :  { %s37_s10 = sshll.u32 %s8384_s30, 4  ;;  %p8291_p0 = scmp.ne.s32.totalorder %s10640_s2, %s8290_s13  ;;  %s38_s10 = int_to_ptr.vmem [resolvable:$true] %s37_s10 }
   0x4   :  { %p8294_p1 = scmp.lt.u32.totalorder %s8290_s13, %s10640_s2 }
   0x6   :  { %p8296_p2 = pnand %p8294_p1, %p8291_p0 }
   0x8   :  { %8299 = shalt.err (!%p8296_p2)
}
   0x9   :  { %s8300_s18 = scalar_lea.vmem %s38_s10, 46080  ;;  %p8305_p4 = scmp.lt.s32.totalorder %s38_s10, %s38_s10 }
   0xa   :  { %p8301_p3 = scmp.ne.s32.totalorder %s38_s10, %s8300_s18  ;;  %p8306_p5 = scmp.lt.s32.totalorder %s8300_s18, %s8300_s18 }
   0xc   :  { %p8307_p6 = por %p8306_p5, %p8305_p4 }
   0xe   :  { %p8308_p7 = pnand %p8307_p6, %p8301_p3 }
  0x10   :  { %8311 = shalt.err (!%p8308_p7)
}
  0x11   :  { %s8385_s19 = smov 64   ;;  %s8386_s20 = smov 4  }
  0x12   :  { %43 = dma.hbm_to_vmem [thread:$0]  %s10640_s2, 46080, %s38_s10, [#allocation6], %s8385_s19, %s8385_s19, %s8386_s20  }
  0x13   :  { %s8387_s23 = smov [#allocation2]   ;;  %s8312_s27 = scalar_lea.hbm %s10639_s1, 1152 }
  0x14   :  { %s25_s24 = sshll.u32 %s8387_s23, 4  ;;  %p8313_p8 = scmp.ne.s32.totalorder %s10639_s1, %s8312_s27  ;;  %s26_s24 = int_to_ptr.vmem [resolvable:$true] %s25_s24 }
  0x15   :  { %p8316_p9 = scmp.lt.u32.totalorder %s8312_s27, %s10639_s1 }
  0x17   :  { %p8318_p10 = pnand %p8316_p9, %p8313_p8 }
  0x19   :  { %8321 = shalt.err (!%p8318_p10)
}
  0x1a   :  { %s8322_s12 = scalar_lea.vmem %s26_s24, 1152  ;;  %p8327_p12 = scmp.lt.s32.totalorder %s26_s24, %s26_s24 }
  0x1b   :  { %p8323_p11 = scmp.ne.s32.totalorder %s26_s24, %s8322_s12  ;;  %p8328_p13 = scmp.lt.s32.totalorder %s8322_s12, %s8322_s12 }
  0x1d   :  { %p8329_p0 = por %p8328_p13, %p8327_p12 }
  0x1f   :  { %p8330_p1 = pnand %p8329_p0, %p8323_p11 }
  0x21   :  { %8333 = shalt.err (!%p8330_p1)
}
  0x22   :  { %s8388_s2 = smov 128   ;;  %s8389_s10 = smov 8  }
  0x23   :  { %31 = dma.hbm_to_vmem [thread:$0]  %s10639_s1, 1152, %s26_s24, [#allocation3], %s8388_s2, %s8388_s2, %s8389_s10  }
  0x24   :  { %s8390_s15 = smov [#allocation7]   ;;  %s8334_s19 = scalar_lea.hbm %s10641_s3, 256 }
  0x25   :  { %s49_s16 = sshll.u32 %s8390_s15, 4  ;;  %p8335_p2 = scmp.ne.s32.totalorder %s10641_s3, %s8334_s19  ;;  %s50_s16 = int_to_ptr.vmem [resolvable:$true] %s49_s16 }
  0x26   :  { %p8338_p3 = scmp.lt.u32.totalorder %s8334_s19, %s10641_s3 }
  0x28   :  { %p8340_p4 = pnand %p8338_p3, %p8335_p2 }
  0x2a   :  { %8343 = shalt.err (!%p8340_p4)
}
  0x2b   :  { %s8344_s25 = scalar_lea.vmem %s50_s16, 256  ;;  %p8349_p6 = scmp.lt.s32.totalorder %s50_s16, %s50_s16 }
  0x2c   :  { %p8345_p5 = scmp.ne.s32.totalorder %s50_s16, %s8344_s25  ;;  %p8350_p7 = scmp.lt.s32.totalorder %s8344_s25, %s8344_s25 }
  0x2e   :  { %p8351_p8 = por %p8350_p7, %p8349_p6 }
  0x30   :  { %p8352_p9 = pnand %p8351_p8, %p8345_p5 }
  0x32   :  { %8355 = shalt.err (!%p8352_p9)
}
  0x33   :  { %55 = dma.hbm_to_vmem [thread:$0]  %s10641_s3, 256, %s50_s16, [#allocation6], %s8388_s2, %s8388_s2, %s8389_s10  }
  0x34   :  { %8378 = dma.done.wait [#allocation3], 1152  }
  0x35   :  { %8379 = vsyncadd [#allocation3], 4294966144 }
  0x36   :  { %8380 = dma.done.wait [#allocation6], 46336  }
  0x37   :  { %8381 = vsyncadd [#allocation6], 4294920960  ;;  %v7905_v0 = vld [vmem:[#allocation5 + $0x40] sm:$0xff]   ;;  %v7909_v4 = vld [vmem:[#allocation5 + $0x48] sm:$0xff]   ;;  %v101_v24 = vlaneseq  ;;  %vm8392_vm4 = vmmov 0   ;;  %vm5830_vm5 = vcmask 523264  }
  0x38   :  { %v7906_v1 = vld [vmem:[#allocation5] sm:$0xff]   ;;  %6550 = vmatprep.subr.bf16.mxu0 %v7905_v0  ;;  %v7910_v5 = vld [vmem:[#allocation5 + $0x8] sm:$0xff]   ;;  %v7913_v8 = vld [vmem:[#allocation5 + $0x50] sm:$0xff]   ;;  %vm6047_vm6 = vcmask 1040384   ;;  %vm5761_vm7 = vcmask 56320   ;;  %vm6147_vm8 = vcmask 50176  }
  0x39   :  { %v7907_v2 = vld [vmem:[#allocation5 + $0xc0] sm:$0xff]   ;;  %6551 = vmatpush3.bf16.msra.mxu0 %v7906_v1  ;;  %v7911_v6 = vld [vmem:[#allocation5 + $0xc8] sm:$0xff]   ;;  %v7914_v9 = vld [vmem:[#allocation5 + $0x10] sm:$0xff]   ;;  %v8487_v29 = vshrl.u32 %v101_v24, 7 }
  0x3a   :  { %v7908_v3 = vld [vmem:[#allocation5 + $0x80] sm:$0xff]   ;;  %6596 = vmatprep.subr.bf16.mxu1 %v7907_v2  ;;  %6552 = vmatprep.subr.bf16.mxu0 %v7909_v4  ;;  %v7912_v7 = vld [vmem:[#allocation5 + $0x88] sm:$0xff]   ;;  %v7915_v10 = vld [vmem:[#allocation5 + $0xd0] sm:$0xff]  }
  0x3b   :  { %6597 = vmatpush3.bf16.msra.mxu1 %v7908_v3  ;;  %v7916_v11 = vld [vmem:[#allocation5 + $0x90] sm:$0xff]   ;;  %v7917_v12 = vld [vmem:[#allocation5 + $0x58] sm:$0xff]   ;;  %v7921_v16 = vld [vmem:[#allocation5 + $0x60] sm:$0xff]   ;;  %vm127_vm0 = vcmp.lt.s32.totalorder %v8487_v29, 1  ;;  %vm103_vm1 = vcmp.lt.s32.totalorder %v8487_v29, 2  ;;  %vm197_vm2 = vcmp.lt.s32.totalorder %v8487_v29, 6 }
  0x3c   :  { %6598 = vmatprep.subr.bf16.mxu1 %v7911_v6  ;;  %v7918_v13 = vld [vmem:[#allocation5 + $0x18] sm:$0xff]   ;;  %v7922_v17 = vld [vmem:[#allocation5 + $0x20] sm:$0xff]   ;;  %v7925_v20 = vld [vmem:[#allocation5 + $0x68] sm:$0xff]   ;;  %vm166_vm3 = vcmp.lt.s32.totalorder %v8487_v29, 7 }
  0x3d   :  { %6553 = vmatpush3.bf16.msra.mxu0 %v7910_v5  ;;  %v7919_v14 = vld [vmem:[#allocation5 + $0xd8] sm:$0xff]   ;;  %v7923_v18 = vld [vmem:[#allocation5 + $0xe0] sm:$0xff]   ;;  %v7926_v21 = vld [vmem:[#allocation5 + $0x28] sm:$0xff]  }
  0x3e   :  { %6554 = vmatprep.subr.bf16.mxu0 %v7913_v8  ;;  %v7920_v15 = vld [vmem:[#allocation5 + $0x98] sm:$0xff]   ;;  %v7924_v19 = vld [vmem:[#allocation5 + $0xa0] sm:$0xff]   ;;  %v7927_v22 = vld [vmem:[#allocation5 + $0xe8] sm:$0xff]  }
  0x3f   :  { %6599 = vmatpush3.bf16.msra.mxu1 %v7912_v7  ;;  %v7928_v23 = vld [vmem:[#allocation5 + $0xa8] sm:$0xff]   ;;  %v7929_v25 = vld [vmem:[#allocation5 + $0x70] sm:$0xff]   ;;  %v7933_v30 = vld [vmem:[#allocation5 + $0x78] sm:$0xff]  }
  0x40   :  { %6600 = vmatprep.subr.bf16.mxu1 %v7915_v10  ;;  %v7930_v26 = vld [vmem:[#allocation5 + $0x30] sm:$0xff]   ;;  %v7934_v31 = vld [vmem:[#allocation5 + $0x38] sm:$0xff]   ;;  %v7937_v43 = vld [vmem:[#allocation5 + $0x140] sm:$0xff]  }
  0x41   :  { %6555 = vmatpush3.bf16.msra.mxu0 %v7914_v9  ;;  %v7931_v27 = vld [vmem:[#allocation5 + $0xf0] sm:$0xff]   ;;  %v7935_v32 = vld [vmem:[#allocation5 + $0xf8] sm:$0xff]   ;;  %v8523_v46 = vld [vmem:[%s10638_s0 + $0x8] sm:$0xff] }
  0x42   :  { %6556 = vmatprep.subr.bf16.mxu0 %v7917_v12  ;;  %v7932_v28 = vld [vmem:[#allocation5 + $0xb0] sm:$0xff]   ;;  %v8492_v33 = vld [vmem:[%s10638_s0] sm:$0xff]  ;;  %v8537_v51 = vld [vmem:[%s10638_s0 + $0x10] sm:$0xff]  ;;  %v119_v53 = vrot.slane %v8523_v46, 7  ;;  %v93_v61 = vrot.slane %v8523_v46, 6 }
  0x43   :  { %6601 = vmatpush3.bf16.msra.mxu1 %v7916_v11  ;;  %v8497_v34 = vld [vmem:[%s10638_s0 + $0x38] sm:$0xff]  ;;  %v8502_v35 = vld [vmem:[%s10638_s0 + $0x40] sm:$0xff]  ;;  %v118_v36 = vrot.slane %v8492_v33, 7  ;;  %v92_v40 = vrot.slane %v8492_v33, 6  ;;  %v120_v54 = vrot.slane %v8537_v51, 7  ;;  %v7938_v55 = vld [vmem:[#allocation5 + $0x100] sm:$0xff]  }
  0x44   :  { %6602 = vmatprep.subr.bf16.mxu1 %v7919_v14  ;;  %v125_v37 = vrot.slane %v8497_v34, 7  ;;  %v126_v38 = vrot.slane %v8502_v35, 7  ;;  %v7936_v39 = vld [vmem:[#allocation5 + $0xb8] sm:$0xff]   ;;  %v99_v41 = vrot.slane %v8497_v34, 6  ;;  %v100_v42 = vrot.slane %v8502_v35, 6  ;;  %v7939_v56 = vld [vmem:[#allocation5 + $0x148] sm:$0xff]  }
  0x45   :  { %6557 = vmatpush3.bf16.msra.mxu0 %v7918_v13  ;;  %v181_v47 = vpack.c.bf16 %v8502_v35, %v8497_v34  ;;  %v142_v57 = vpack.c.bf16 %v8492_v33, %v8502_v35  ;;  %v134_v58 = vsel %vm127_vm0, %v119_v53, %v120_v54  ;;  %v135_v59 = vsel %vm127_vm0, %v118_v36, %v119_v53  ;;  %v7940_v60 = vld [vmem:[#allocation5 + $0x108] sm:$0xff]   ;;  %v8552_v63 = vld [vmem:[%s10638_s0 + $0x18] sm:$0xff]  ;;  %v7942_v6 = vld [vmem:[#allocation5 + $0x1c0] sm:$0xff]  }
  0x46   :  { %6558 = vmatprep.subr.bf16.mxu0 %v7921_v16  ;;  %v8516_v44 = vsel %vm127_vm0, %v125_v37, %v126_v38  ;;  %v136_v45 = vsel %vm127_vm0, %v126_v38, %v118_v36  ;;  %v104_v49 = vsel %vm103_vm1, %v99_v41, %v100_v42  ;;  %v112_v50 = vsel %vm103_vm1, %v100_v42, %v92_v40  ;;  %v7941_v3 = vld [vmem:[#allocation5 + $0x150] sm:$0xff]   ;;  %v7944_v11 = vld [vmem:[#allocation5 + $0x180] sm:$0xff]   ;;  %v7945_v12 = vld [vmem:[#allocation5 + $0x1c8] sm:$0xff]  }
  0x47   :  { %6603 = vmatpush3.bf16.msra.mxu1 %v7920_v15  ;;  %v137_v48 = vpack.c.bf16 %v136_v45, %v8516_v44  ;;  %v113_v52 = vpack.c.bf16 %v112_v50, %v104_v49  ;;  %v94_v62 = vrot.slane %v8537_v51, 6  ;;  %v138_v0 = vpack.c.bf16 %v134_v58, %v135_v59  ;;  %v7943_v8 = vld [vmem:[#allocation5 + $0x110] sm:$0xff]   ;;  %v8564_v13 = vld [vmem:[%s10638_s0 + $0x20] sm:$0xff]  ;;  %v7951_v36 = vld [vmem:[#allocation5 + $0x160] sm:$0xff]  }
  0x48   :  { %6604 = vmatprep.subr.bf16.mxu1 %v7923_v18  ;;  %v147_v1 = vpack.c.bf16 %v135_v59, %v136_v45  ;;  %v121_v2 = vrot.slane %v8552_v63, 7  ;;  %v111_v5 = vsel %vm103_vm1, %v92_v40, %v93_v61  ;;  %v95_v14 = vrot.slane %v8552_v63, 6  ;;  %v7946_v16 = vld [vmem:[#allocation5 + $0x158] sm:$0xff]   ;;  %v7952_v40 = vld [vmem:[#allocation5 + $0x120] sm:$0xff]   ;;  %v8595_v45 = vld [vmem:[%s10638_s0 + $0x30] sm:$0xff] }
  0x49   :  { %6559 = vmatpush3.bf16.msra.mxu0 %v7922_v17  ;;  %825 = vmatprep.mubr.bf16.mxu0 %v137_v48  ;;  %v110_v4 = vsel %vm103_vm1, %v93_v61, %v94_v62  ;;  %v122_v15 = vrot.slane %v8564_v13, 7  ;;  %v7947_v17 = vld [vmem:[#allocation5 + $0x188] sm:$0xff]   ;;  %v96_v18 = vrot.slane %v8564_v13, 6  ;;  %v189_v42 = vrot.slane %v8523_v46, 2  ;;  %v8237_v29 = vld [vmem:[#allocation5 + $0xad0] sm:$0xff]  }
  0x4a   :  { %6560 = vmatprep.subr.bf16.mxu0 %v7925_v20  ;;  %897 = vmatprep.mubr.bf16.mxu1 %v147_v1  ;;  %v133_v7 = vsel %vm127_vm0, %v120_v54, %v121_v2  ;;  %v114_v9 = vpack.c.bf16 %v110_v4, %v111_v5  ;;  %v109_v24 = vsel %vm103_vm1, %v94_v62, %v95_v14  ;;  %v190_v48 = vrot.slane %v8537_v51, 2  ;;  %v7955_v54 = vld [vmem:[#allocation5 + $0x168] sm:$0xff]   ;;  %v7958_v4 = vld [vmem:[#allocation5 + $0x1a0] sm:$0xff]  }
  0x4b   :  { %6605 = vmatpush3.bf16.msra.mxu1 %v7924_v19  ;;  %v148_v10 = vpack.c.bf16 %v133_v7, %v134_v58  ;;  %v8571_v19 = vpack.c.bf16 %v8537_v51, %v8523_v46  ;;  %v132_v20 = vsel %vm127_vm0, %v121_v2, %v122_v15  ;;  %v191_v49 = vrot.slane %v8552_v63, 2  ;;  %v7956_v62 = vld [vmem:[#allocation5 + $0x128] sm:$0xff]   ;;  %v7957_v2 = vld [vmem:[#allocation5 + $0x1e0] sm:$0xff]  }
  0x4c   :  { %6606 = vmatprep.subr.bf16.mxu1 %v7927_v22  ;;  %v139_v22 = vpack.c.bf16 %v132_v20, %v133_v7  ;;  %v124_v50 = vrot.slane %v8595_v45, 7  ;;  %v98_v53 = vrot.slane %v8595_v45, 6  ;;  %v159_v5 = vrot.slane %v8537_v51, 1 }
  0x4d   :  { %6561 = vmatpush3.bf16.msra.mxu0 %v7926_v21  ;;  %v7948_v21 = vld [vmem:[#allocation5 + $0x118] sm:$0xff]  }
  0x4e   :  { %6562 = vmatprep.subr.bf16.mxu0 %v7929_v25  ;;  %v8582_v25 = vld [vmem:[%s10638_s0 + $0x28] sm:$0xff]  ;;  %v129_v61 = vsel %vm127_vm0, %v124_v50, %v125_v37  ;;  %v192_v37 = vrot.slane %v8564_v13, 2 }
  0x4f   :  { %6607 = vmatpush3.bf16.msra.mxu1 %v7928_v23  ;;  %v108_v23 = vsel %vm103_vm1, %v95_v14, %v96_v18  ;;  %v97_v38 = vrot.slane %v8582_v25, 6  ;;  %v194_v14 = vrot.slane %v8595_v45, 2 }
  0x50   :  { %6608 = vmatprep.subr.bf16.mxu1 %v7931_v27  ;;  %v7949_v27 = vld [vmem:[#allocation5 + $0x1d0] sm:$0xff]  }
  0x51   :  { %6563 = vmatpush3.bf16.msra.mxu0 %v7930_v26  ;;  %v123_v26 = vrot.slane %v8582_v25, 7  ;;  %v106_v59 = vsel %vm103_vm1, %v97_v38, %v98_v53 }
  0x52   :  { %6564 = vmatprep.subr.bf16.mxu0 %v7933_v30  ;;  %v157_v30 = vrot.slane %v8492_v33, 1 }
  0x53   :  { %6609 = vmatpush3.bf16.msra.mxu1 %v7932_v28  ;;  %v7950_v28 = vld [vmem:[#allocation5 + $0x190] sm:$0xff]   ;;  %v130_v58 = vsel %vm127_vm0, %v123_v26, %v124_v50 }
  0x54   :  { %6610 = vmatprep.subr.bf16.mxu1 %v7935_v32  ;;  %v131_v32 = vsel %vm127_vm0, %v122_v15, %v123_v26  ;;  %v150_v1 = vpack.c.bf16 %v129_v61, %v130_v58  ;;  %v151_v15 = vpack.c.bf16 %v8516_v44, %v8516_v44  ;;  %v105_v26 = vsel %vm103_vm1, %v98_v53, %v99_v41 }
  0x55   :  { %6565 = vmatpush3.bf16.msra.mxu0 %v7934_v31  ;;  %v115_v31 = vpack.c.bf16 %v108_v23, %v109_v24  ;;  %v188_v24 = vrot.slane %v8492_v33, 2  ;;  %v117_v50 = vpack.c.bf16 %v105_v26, %v105_v26  ;;  %v7974_v26 = vld [vmem:[#allocation5 + $0x228] sm:$0xff]  }
  0x56   :  { %6642 = vmatprep.subr.bf16.mxu0 %v7937_v43  ;;  %v7953_v43 = vld [vmem:[#allocation5 + $0x1d8] sm:$0xff]  }
  0x57   :  { %6611 = vmatpush3.bf16.msra.mxu1 %v7936_v39  ;;  %v149_v39 = vpack.c.bf16 %v131_v32, %v132_v20  ;;  %v195_v20 = vrot.slane %v8497_v34, 2 }
  0x58   :  { %826 = vmatmul.mubr.bf16.vlgmr.msra.gmra.mrb[0].mxu0 %v113_v52  ;;  %6688 = vmatprep.subr.bf16.mxu1 %v7942_v6  ;;  %v7954_v52 = vld [vmem:[#allocation5 + $0x198] sm:$0xff]  }
  0x59   :  { %6643 = vmatpush3.bf16.msra.mxu0 %v7938_v55  ;;  %833 = vmatprep.mubr.bf16.mxu0 %v138_v0  ;;  %v8604_v55 = vpack.c.bf16 %v8564_v13, %v8552_v63  ;;  %v140_v0 = vpack.c.bf16 %v130_v58, %v131_v32  ;;  %v196_v32 = vrot.slane %v8502_v35, 2 }
  0x5a   :  { %6644 = vmatprep.subr.bf16.mxu0 %v7939_v56  ;;  %898 = vmatmul.mubr.bf16.vlgmr.msra.gmra.mrb[0].mxu1 %v142_v57  ;;  %v8608_v56 = vsel %vm197_vm2, %v190_v48, %v191_v49  ;;  %v8614_v57 = vsel %vm197_vm2, %v189_v42, %v190_v48 }
  0x5b   :  { %905 = vmatprep.mubr.bf16.mxu1 %v148_v10  ;;  %6689 = vmatpush3.bf16.msra.mxu1 %v7944_v11  ;;  %v207_v6 = vpack.c.bf16 %v8608_v56, %v8614_v57  ;;  %v141_v10 = vpack.c.bf16 %v129_v61, %v129_v61  ;;  %v193_v11 = vrot.slane %v8582_v25, 2  ;;  %v8684_v48 = vsel %vm197_vm2, %v195_v20, %v196_v32  ;;  %v7982_v56 = vld [vmem:[#allocation5 + $0x2c0] sm:$0xff]   ;;  %v7979_v57 = vld [vmem:[#allocation5 + $0x288] sm:$0xff]  }
  0x5c   :  { %6690 = vmatprep.subr.bf16.mxu1 %v7945_v12  ;;  %v7961_v12 = vld [vmem:[#allocation5 + $0x130] sm:$0xff]   ;;  %v146_v61 = vpack.c.bf16 %v8497_v34, %v8497_v34 }
  0x5d   :  { %6645 = vmatpush3.bf16.msra.mxu0 %v7940_v60  ;;  %v107_v60 = vsel %vm103_vm1, %v96_v18, %v97_v38  ;;  %v8642_v18 = vsel %vm197_vm2, %v191_v49, %v192_v37  ;;  %v8653_v23 = vsel %vm197_vm2, %v193_v11, %v194_v14  ;;  %v8688_v49 = vsel %vm197_vm2, %v196_v32, %v188_v24  ;;  %v7976_v32 = vld [vmem:[#allocation5 + $0x238] sm:$0xff]  }
  0x5e   :  { %6646 = vmatprep.subr.bf16.mxu0 %v7941_v3  ;;  %v158_v3 = vrot.slane %v8523_v46, 1  ;;  %v116_v7 = vpack.c.bf16 %v106_v59, %v107_v60  ;;  %v161_v59 = vrot.slane %v8564_v13, 1  ;;  %v7968_v60 = vld [vmem:[#allocation5 + $0x1b8] sm:$0xff]  }
  0x5f   :  { %6691 = vmatpush3.bf16.msra.mxu1 %v7947_v17  ;;  %v8638_v17 = vsel %vm197_vm2, %v192_v37, %v193_v11  ;;  %v7971_v11 = vld [vmem:[#allocation5 + $0x210] sm:$0xff]  }
  0x60   :  { %834 = vmatmul.mubr.bf16.gmra.mrb[4].mxu0 %v114_v9  ;;  %6692 = vmatprep.subr.bf16.mxu1 %v7949_v27  ;;  %v7960_v9 = vld [vmem:[#allocation5 + $0x1e8] sm:$0xff]   ;;  %v208_v44 = vpack.c.bf16 %v8638_v17, %v8642_v18  ;;  %v7964_v27 = vld [vmem:[#allocation5 + $0x178] sm:$0xff]   ;;  %v173_v38 = vsel %vm166_vm3, %v158_v3, %v159_v5  ;;  %v7983_v17 = vld [vmem:[#allocation5 + $0x290] sm:$0xff]  }
  0x61   :  { %6647 = vmatpush3.bf16.msra.mxu0 %v7943_v8  ;;  %841 = vmatprep.mubr.bf16.mxu0 %v139_v22  ;;  %v7959_v8 = vld [vmem:[#allocation5 + $0x170] sm:$0xff]   ;;  %v7985_v18 = vld [vmem:[#allocation5 + $0x308] sm:$0xff]  }
  0x62   :  { %6648 = vmatprep.subr.bf16.mxu0 %v7946_v16  ;;  %906 = vmatmul.mubr.bf16.gmra.mrb[4].mxu1 %v8571_v19  ;;  %v7962_v16 = vld [vmem:[#allocation5 + $0x1a8] sm:$0xff]   ;;  %v7963_v22 = vld [vmem:[#allocation5 + $0x1f0] sm:$0xff]  }
  0x63   :  { %913 = vmatprep.mubr.bf16.mxu1 %v149_v39  ;;  %6693 = vmatpush3.bf16.msra.mxu1 %v7950_v28  ;;  %v8664_v28 = vsel %vm166_vm3, %v157_v30, %v158_v3  ;;  %v160_v39 = vrot.slane %v8552_v63, 1  ;;  %v164_v3 = vrot.slane %v8497_v34, 1 }
  0x64   :  { %6694 = vmatprep.subr.bf16.mxu1 %v7953_v43  ;;  %v7966_v43 = vld [vmem:[#allocation5 + $0x138] sm:$0xff]   ;;  %v176_v53 = vpack.c.bf16 %v173_v38, %v8664_v28 }
  0x65   :  { %6649 = vmatpush3.bf16.msra.mxu0 %v7948_v21  ;;  %v8647_v21 = vpack.c.bf16 %v8595_v45, %v8582_v25  ;;  %v172_v58 = vsel %vm166_vm3, %v159_v5, %v160_v39  ;;  %v7969_v5 = vld [vmem:[#allocation5 + $0x200] sm:$0xff]  }
  0x66   :  { %6650 = vmatprep.subr.bf16.mxu0 %v7951_v36  ;;  %v7965_v36 = vld [vmem:[#allocation5 + $0x1b0] sm:$0xff]  }
  0x67   :  { %6695 = vmatpush3.bf16.msra.mxu1 %v7954_v52  ;;  %v7967_v52 = vld [vmem:[#allocation5 + $0x1f8] sm:$0xff]  }
  0x68   :  { %842 = vmatmul.mubr.bf16.gmra.mrb[8].mxu0 %v115_v31  ;;  %6696 = vmatprep.subr.bf16.mxu1 %v7957_v2  ;;  %v8668_v31 = vsel %vm197_vm2, %v194_v14, %v195_v20  ;;  %v152_v2 = vpack.c.bf16 %v8523_v46, %v8492_v33 }
  0x69   :  { %6651 = vmatpush3.bf16.msra.mxu0 %v7952_v40  ;;  %849 = vmatprep.mubr.bf16.mxu0 %v140_v0  ;;  %v209_v41 = vpack.c.bf16 %v8668_v31, %v8653_v23  ;;  %v8680_v40 = vsel %vm197_vm2, %v188_v24, %v189_v42  ;;  %v210_v42 = vpack.c.bf16 %v8688_v49, %v8684_v48  ;;  %v7984_v23 = vld [vmem:[#allocation5 + $0x250] sm:$0xff]   ;;  %v7993_v48 = vld [vmem:[#allocation5 + $0x260] sm:$0xff]  }
  0x6a   :  { %6652 = vmatprep.subr.bf16.mxu0 %v7955_v54  ;;  %914 = vmatmul.mubr.bf16.gmra.mrb[8].mxu1 %v8604_v55  ;;  %v10648_v54 = vmov 0.0   ;;  %v171_v0 = vsel %vm166_vm3, %v160_v39, %v161_v59  ;;  %v7990_v31 = vld [vmem:[#allocation5 + $0x2d0] sm:$0xff]   ;;  %v7992_v39 = vld [vmem:[#allocation5 + $0x318] sm:$0xff]   ;;  %v7997_v49 = vld [vmem:[#allocation5 + $0x2e0] sm:$0xff]  }
  0x6b   :  { %921 = vmatprep.mubr.bf16.mxu1 %v150_v1  ;;  %6697 = vmatpush3.bf16.msra.mxu1 %v7958_v4  ;;  %v162_v1 = vrot.slane %v8582_v25, 1  ;;  %v165_v4 = vrot.slane %v8502_v35, 1 }
  0x6c   :  { %6698 = vmatprep.subr.bf16.mxu1 %v7960_v9  ;;  %v7970_v9 = vld [vmem:[#allocation5 + $0x208] sm:$0xff]  }
  0x6d   :  { %6653 = vmatpush3.bf16.msra.mxu0 %v7956_v62  ;;  %v183_v62 = vpack.c.bf16 %v172_v58, %v173_v38  ;;  %v170_v37 = vsel %vm166_vm3, %v161_v59, %v162_v1  ;;  %v175_v24 = vsel %vm166_vm3, %v165_v4, %v157_v30  ;;  %v187_v30 = vpack.c.bf16 %v8664_v28, %v8664_v28  ;;  %v7989_v28 = vld [vmem:[#allocation5 + $0x310] sm:$0xff]   ;;  %v7988_v38 = vld [vmem:[#allocation5 + $0x258] sm:$0xff]  }
  0x6e   :  { %6654 = vmatprep.subr.bf16.mxu0 %v7959_v8  ;;  %v163_v8 = vrot.slane %v8595_v45, 1  ;;  %v8002_v59 = vld [vmem:[#allocation5 + $0x270] sm:$0xff]  }
  0x6f   :  { %6699 = vmatpush3.bf16.msra.mxu1 %v7962_v16  ;;  %v7972_v16 = vld [vmem:[#allocation5 + $0x218] sm:$0xff]  }
  0x70   :  { %850 = vmatmul.mubr.bf16.gmra.mrb[12].mxu0 %v116_v7  ;;  %6700 = vmatprep.subr.bf16.mxu1 %v7963_v22  ;;  %v177_v7 = vpack.c.bf16 %v171_v0, %v172_v58  ;;  %v169_v46 = vsel %vm166_vm3, %v162_v1, %v163_v8  ;;  %v7973_v22 = vld [vmem:[#allocation5 + $0x220] sm:$0xff]   ;;  %v8001_v58 = vld [vmem:[#allocation5 + $0x2b0] sm:$0xff]   ;;  %v8007_v1 = vld [vmem:[#allocation5 + $0x338] sm:$0xff]  }
  0x71   :  { %857 = vmatprep.mubr.bf16.mxu0 %v141_v10  ;;  %6655 = vmatpush3.bf16.msra.mxu0 %v7961_v12  ;;  %v184_v10 = vpack.c.bf16 %v170_v37, %v171_v0  ;;  %v153_v12 = vpack.c.bf16 %v8552_v63, %v8537_v51  ;;  %v178_v14 = vpack.c.bf16 %v169_v46, %v170_v37  ;;  %v8006_v0 = vld [vmem:[#allocation5 + $0x278] sm:$0xff]  }
  0x72   :  { %6656 = vmatprep.subr.bf16.mxu0 %v7964_v27  ;;  %922 = vmatmul.mubr.bf16.gmra.mrb[12].mxu1 %v8647_v21  ;;  %v154_v51 = vpack.c.bf16 %v8582_v25, %v8564_v13  ;;  %v155_v13 = vpack.c.bf16 %v8497_v34, %v8595_v45  ;;  %v180_v25 = vpack.c.bf16 %v175_v24, %v175_v24  ;;  %v7977_v34 = vld [vmem:[#allocation5 + $0x280] sm:$0xff]  }
  0x73   :  { %929 = vmatprep.mubr.bf16.mxu1 %v151_v15  ;;  %6701 = vmatpush3.bf16.msra.mxu1 %v7965_v36  ;;  %v168_v15 = vsel %vm166_vm3, %v163_v8, %v164_v3  ;;  %v156_v45 = vpack.c.bf16 %v8502_v35, %v8502_v35  ;;  %v7978_v35 = vld [vmem:[#allocation5 + $0x240] sm:$0xff]   ;;  %v7987_v36 = vld [vmem:[#allocation5 + $0x298] sm:$0xff]  }
  0x74   :  { %6702 = vmatprep.subr.bf16.mxu1 %v7967_v52  ;;  %v185_v20 = vpack.c.bf16 %v168_v15, %v169_v46  ;;  %v7998_v52 = vld [vmem:[#allocation5 + $0x268] sm:$0xff]  }
  0x75   :  { %6657 = vmatpush3.bf16.msra.mxu0 %v7966_v43  ;;  %v7995_v43 = vld [vmem:[#allocation5 + $0x320] sm:$0xff]  }
  0x76   :  { %7569 = vmatprep.subr.bf16.mxu0 %v10648_v54 }
  0x77   :  { %6703 = vmatpush3.bf16.msra.mxu1 %v7968_v60  ;;  %v8003_v60 = vld [vmem:[#allocation5 + $0x330] sm:$0xff]  }
  0x78   :  { %858 = vmatmul.mubr.bf16.gmra.mrb[16].mxu0 %v117_v50  ;;  %6747 = vmatprep.subr.bf16.mxu1 %v7977_v34  ;;  %v7996_v50 = vld [vmem:[#allocation5 + $0x2a8] sm:$0xff]  }
  0x79   :  { %969 = vmatprep.mubr.bf16.mxu0 %v176_v53  ;;  %v8000_v53 = vld [vmem:[#allocation5 + $0x2e8] sm:$0xff]  }
  0x7a   :  { %930 = vmatmul.mubr.bf16.gmra.mrb[16].mxu1 %v146_v61  ;;  %v8004_v61 = vld [vmem:[#allocation5 + $0x2f0] sm:$0xff]  }
  0x7b   :  { %1041 = vmatprep.mubr.bf16.mxu1 %v183_v62  ;;  %v8005_v62 = vld [vmem:[#allocation5 + $0x2b8] sm:$0xff]  }
  0x80   :  { %970 = vmatmul.mubr.bf16.vlgmr.msra.gmra.mrb[20].mxu0 %v152_v2  ;;  %v8008_v2 = vld [vmem:[#allocation5 + $0x2f8] sm:$0xff]  }
  0x81   :  { %7570 = vmatpush3.bf16.msra.mxu0 %v7969_v5  ;;  %977 = vmatprep.mubr.bf16.mxu0 %v177_v7 }
  0x82   :  { %7571 = vmatprep.subr.bf16.mxu0 %v10648_v54  ;;  %1042 = vmatmul.mubr.bf16.vlgmr.msra.gmra.mrb[20].mxu1 %v8571_v19  ;;  %v167_v19 = vsel %vm166_vm3, %v164_v3, %v165_v4  ;;  %v8009_v3 = vld [vmem:[#allocation5 + $0x380] sm:$0xff]  }
  0x83   :  { %1049 = vmatprep.mubr.bf16.mxu1 %v184_v10  ;;  %v179_v63 = vpack.c.bf16 %v167_v19, %v168_v15  ;;  %v186_v27 = vpack.c.bf16 %v175_v24, %v167_v19  ;;  %6748 = vmatpush3.bf16.msra.mxu1 %v7978_v35  ;;  %v8769_v4 = vld [vmem:[#allocation7] ss:$0 sm:$0xff] }
  0x84   :  { %6749 = vmatprep.subr.bf16.mxu1 %v7979_v57 }
  0x85   :  { %7572 = vmatpush3.bf16.msra.mxu0 %v7970_v9 }
  0x86   :  { %7573 = vmatprep.subr.bf16.mxu0 %v10648_v54 }
  0x88   :  { %978 = vmatmul.mubr.bf16.gmra.mrb[24].mxu0 %v153_v12 }
  0x89   :  { %7574 = vmatpush3.bf16.msra.mxu0 %v7971_v11  ;;  %985 = vmatprep.mubr.bf16.mxu0 %v178_v14  ;;  %v8013_v14 = vld [vmem:[#allocation5 + $0x400] sm:$0xff]  }
  0x8a   :  { %7575 = vmatprep.subr.bf16.mxu0 %v10648_v54  ;;  %1050 = vmatmul.mubr.bf16.gmra.mrb[24].mxu1 %v8604_v55  ;;  %v7975_v55 = vld [vmem:[#allocation5 + $0x230] sm:$0xff]  }
  0x8b   :  { %1057 = vmatprep.mubr.bf16.mxu1 %v185_v20 }
  0x8d   :  { %7576 = vmatpush3.bf16.msra.mxu0 %v7972_v16 }
  0x8e   :  { %7577 = vmatprep.subr.bf16.mxu0 %v10648_v54 }
  0x90   :  { %986 = vmatmul.mubr.bf16.gmra.mrb[28].mxu0 %v154_v51 }
  0x91   :  { %7578 = vmatpush3.bf16.msra.mxu0 %v7973_v22  ;;  %993 = vmatprep.mubr.bf16.mxu0 %v179_v63 }
  0x92   :  { %7579 = vmatprep.subr.bf16.mxu0 %v10648_v54  ;;  %1058 = vmatmul.mubr.bf16.gmra.mrb[28].mxu1 %v8647_v21  ;;  %v182_v21 = vpack.c.bf16 %v8492_v33, %v8492_v33  ;;  %v211_v33 = vpack.c.bf16 %v8680_v40, %v8680_v40  ;;  %v7991_v40 = vld [vmem:[#allocation5 + $0x2a0] sm:$0xff]  }
  0x93   :  { %1065 = vmatprep.mubr.bf16.mxu1 %v186_v27 }
  0x95   :  { %7580 = vmatpush3.bf16.msra.mxu0 %v7974_v26 }
  0x96   :  { %7581 = vmatprep.subr.bf16.mxu0 %v10648_v54 }
  0x98   :  { %994 = vmatmul.mubr.bf16.gmra.mrb[32].mxu0 %v155_v13 }
  0x99   :  { %1001 = vmatprep.mubr.bf16.mxu0 %v180_v25  ;;  %7582 = vmatpush3.bf16.msra.mxu0 %v7975_v55 }
  0x9a   :  { %7583 = vmatprep.subr.bf16.mxu0 %v10648_v54  ;;  %1066 = vmatmul.mubr.bf16.gmra.mrb[32].mxu1 %v181_v47  ;;  %v7981_v47 = vld [vmem:[#allocation5 + $0x300] sm:$0xff]  }
  0x9b   :  { %1073 = vmatprep.mubr.bf16.mxu1 %v187_v30 }
  0x9d   :  { %7584 = vmatpush3.bf16.msra.mxu0 %v7976_v32 }
  0x9e   :  { %6793 = vmatprep.subr.bf16.mxu0 %v7981_v47 }
  0xa0   :  { %1002 = vmatmul.mubr.bf16.gmra.mrb[36].mxu0 %v156_v45 }
  0xa1   :  { %7585 = vmatprep.mubr.msk.bf16.mxu0 %vm8392_vm4, %v10648_v54 }
  0xa2   :  { %1074 = vmatmul.mubr.bf16.gmra.mrb[36].mxu1 %v182_v21 }
  0xa8   :  { %7586 = vmatmul.mubr.bf16.vlgmr.msra.gmra.mrb[40].mxu0 %v207_v6  ;;  %v7980_v6 = vld [vmem:[#allocation5 + $0x248] sm:$0xff]  }
  0xa9   :  { %7589 = vmatprep.mubr.msk.bf16.mxu0 %vm8392_vm4, %v10648_v54  ;;  %6794 = vmatpush3.bf16.msra.mxu0 %v7982_v56 }
  0xaa   :  { %6750 = vmatpush3.bf16.msra.mxu1 %v7980_v6  ;;  %6795 = vmatprep.subr.bf16.mxu0 %v7985_v18 }
  0xab   :  { %6751 = vmatprep.subr.bf16.mxu1 %v7983_v17 }
  0xae   :  { %6752 = vmatpush3.bf16.msra.mxu1 %v7984_v23 }
  0xaf   :  { %6753 = vmatprep.subr.bf16.mxu1 %v7987_v36 }
  0xb0   :  { %7590 = vmatmul.mubr.bf16.gmra.mrb[44].mxu0 %v208_v44  ;;  %v7986_v44 = vld [vmem:[#allocation5 + $0x2c8] sm:$0xff]  }
  0xb1   :  { %7593 = vmatprep.mubr.msk.bf16.mxu0 %vm8392_vm4, %v10648_v54  ;;  %6796 = vmatpush3.bf16.msra.mxu0 %v7986_v44 }
  0xb2   :  { %6797 = vmatprep.subr.bf16.mxu0 %v7989_v28  ;;  %6754 = vmatpush3.bf16.msra.mxu1 %v7988_v38 }
  0xb3   :  { %6755 = vmatprep.subr.bf16.mxu1 %v7991_v40 }
  0xb5   :  { %6798 = vmatpush3.bf16.msra.mxu0 %v7990_v31 }
  0xb6   :  { %6799 = vmatprep.subr.bf16.mxu0 %v7992_v39  ;;  %6756 = vmatpush3.bf16.msra.mxu1 %v7993_v48 }
  0xb7   :  { %6757 = vmatprep.subr.bf16.mxu1 %v7996_v50 }
  0xb8   :  { %7594 = vmatmul.mubr.bf16.gmra.mrb[48].mxu0 %v209_v41  ;;  %v7994_v41 = vld [vmem:[#allocation5 + $0x2d8] sm:$0xff]  }
  0xb9   :  { %7597 = vmatprep.mubr.msk.bf16.mxu0 %vm8392_vm4, %v10648_v54  ;;  %6800 = vmatpush3.bf16.msra.mxu0 %v7994_v41 }
  0xba   :  { %6801 = vmatprep.subr.bf16.mxu0 %v7995_v43  ;;  %6758 = vmatpush3.bf16.msra.mxu1 %v7998_v52 }
  0xbb   :  { %6759 = vmatprep.subr.bf16.mxu1 %v8001_v58 }
  0xbd   :  { %6802 = vmatpush3.bf16.msra.mxu0 %v7997_v49 }
  0xbe   :  { %6760 = vmatpush3.bf16.msra.mxu1 %v8002_v59 }
  0xbf   :  { %6761 = vmatprep.subr.bf16.mxu1 %v8005_v62 }
  0xc0   :  { %7598 = vmatmul.mubr.bf16.gmra.mrb[52].mxu0 %v210_v42  ;;  %v7999_v42 = vld [vmem:[#allocation5 + $0x328] sm:$0xff]  }
  0xc1   :  { %7601 = vmatprep.mubr.msk.bf16.mxu0 %vm8392_vm4, %v10648_v54  ;;  %6803 = vmatprep.subr.bf16.mxu0 %v7999_v42 }
  0xc2   :  { %6804 = vmatpush3.bf16.msra.mxu0 %v8000_v53  ;;  %6762 = vmatpush3.bf16.msra.mxu1 %v8006_v0 }
  0xc3   :  { %6805 = vmatprep.subr.bf16.mxu0 %v8003_v60  ;;  %6839 = vmatprep.subr.bf16.mxu1 %v8009_v3 }
  0xc6   :  { %6806 = vmatpush3.bf16.msra.mxu0 %v8004_v61 }
  0xc7   :  { %6807 = vmatprep.subr.bf16.mxu0 %v8007_v1 }
  0xc8   :  { %7602 = vmatmul.mubr.bf16.gmra.mrb[56].mxu0 %v211_v33 }
  0xca   :  { %6808 = vmatpush3.bf16.msra.mxu0 %v8008_v2 }
  0xcb   :  { %6885 = vmatprep.subr.bf16.mxu0 %v8013_v14 }
 0x12b   :  { %v6566_v5 = vpop.f32.mrb[0].mxu0 }
 0x12c   :  { %v6567_v7 = vpop.f32.mrb[1].mxu0 }
 0x12d   :  { %v6568_v8 = vadd.f32 %v6567_v7, %v6566_v5  ;;  %v6569_v37 = vpop.f32.mrb[2].mxu0  ;;  %v6612_v46 = vpop.f32.mrb[0].mxu1 }
 0x12e   :  { %v6570_v9 = vpop.f32.mrb[3].mxu0  ;;  %v6613_v12 = vpop.f32.mrb[1].mxu1 }
 0x12f   :  { %v828_v10 = vadd.f32 %v6568_v8, %v8769_v4  ;;  %v6571_v11 = vadd.f32 %v6570_v9, %v6569_v37  ;;  %v6614_v16 = vadd.f32 %v6613_v12, %v6612_v46  ;;  %v6615_v20 = vpop.f32.mrb[2].mxu1 }
 0x130   :  { %v6616_v19 = vpop.f32.mrb[3].mxu1 }
 0x131   :  { %v831_v15 = vadd.f32 %v6571_v11, %v8769_v4  ;;  %v6617_v22 = vadd.f32 %v6616_v19, %v6615_v20  ;;  %v8773_v63 = vadd.f32 %v6614_v16, %v828_v10 }
 0x133   :  { %v6572_v51 = vpop.f32.mrb[4].mxu0  ;;  %v8775_v55 = vadd.f32 %v6617_v22, %v831_v15 }
 0x134   :  { %v6573_v24 = vpop.f32.mrb[5].mxu0 }
 0x135   :  { %v6574_v26 = vadd.f32 %v6573_v24, %v6572_v51  ;;  %v6575_v27 = vpop.f32.mrb[6].mxu0  ;;  %v6618_v32 = vpop.f32.mrb[4].mxu1 }
 0x136   :  { %v6576_v13 = vpop.f32.mrb[7].mxu0  ;;  %v6619_v45 = vpop.f32.mrb[5].mxu1 }
 0x137   :  { %v836_v25 = vadd.f32 %v6574_v26, %v8769_v4  ;;  %v6577_v30 = vadd.f32 %v6576_v13, %v6575_v27  ;;  %v6620_v33 = vadd.f32 %v6619_v45, %v6618_v32  ;;  %v6621_v34 = vpop.f32.mrb[6].mxu1 }
 0x138   :  { %v6622_v35 = vpop.f32.mrb[7].mxu1 }
 0x139   :  { %v839_v21 = vadd.f32 %v6577_v30, %v8769_v4  ;;  %v8779_v47 = vadd.f32 %v6620_v33, %v836_v25  ;;  %v6623_v56 = vadd.f32 %v6622_v35, %v6621_v34 }
 0x13b   :  { %v6578_v57 = vpop.f32.mrb[8].mxu0  ;;  %v8781_v17 = vadd.f32 %v6623_v56, %v839_v21 }
 0x13c   :  { %v6579_v6 = vpop.f32.mrb[9].mxu0 }
 0x13d   :  { %v6580_v18 = vadd.f32 %v6579_v6, %v6578_v57  ;;  %v6581_v44 = vpop.f32.mrb[10].mxu0  ;;  %v6624_v31 = vpop.f32.mrb[8].mxu1 }
 0x13e   :  { %v6582_v23 = vpop.f32.mrb[11].mxu0  ;;  %v6625_v38 = vpop.f32.mrb[9].mxu1 }
 0x13f   :  { %v844_v28 = vadd.f32 %v6580_v18, %v8769_v4  ;;  %v6583_v36 = vadd.f32 %v6582_v23, %v6581_v44  ;;  %v6626_v41 = vadd.f32 %v6625_v38, %v6624_v31  ;;  %v6627_v40 = vpop.f32.mrb[10].mxu1 }
 0x140   :  { %v6628_v43 = vpop.f32.mrb[11].mxu1 }
 0x141   :  { %v847_v39 = vadd.f32 %v6583_v36, %v8769_v4  ;;  %v8785_v48 = vadd.f32 %v6626_v41, %v844_v28  ;;  %v6629_v49 = vadd.f32 %v6628_v43, %v6627_v40 }
 0x143   :  { %v6584_v50 = vpop.f32.mrb[12].mxu0  ;;  %v8787_v42 = vadd.f32 %v6629_v49, %v847_v39 }
 0x144   :  { %v6585_v52 = vpop.f32.mrb[13].mxu0 }
 0x145   :  { %v6586_v53 = vadd.f32 %v6585_v52, %v6584_v50  ;;  %v6587_v58 = vpop.f32.mrb[14].mxu0  ;;  %v6630_v61 = vpop.f32.mrb[12].mxu1 }
 0x146   :  { %v6588_v59 = vpop.f32.mrb[15].mxu0  ;;  %v6631_v0 = vpop.f32.mrb[13].mxu1 }
 0x147   :  { %v852_v60 = vadd.f32 %v6586_v53, %v8769_v4  ;;  %v6589_v62 = vadd.f32 %v6588_v59, %v6587_v58  ;;  %v6632_v2 = vadd.f32 %v6631_v0, %v6630_v61  ;;  %v6633_v3 = vpop.f32.mrb[14].mxu1 }
 0x148   :  { %v6634_v5 = vpop.f32.mrb[15].mxu1 }
 0x149   :  { %v855_v1 = vadd.f32 %v6589_v62, %v8769_v4  ;;  %v8791_v7 = vadd.f32 %v6632_v2, %v852_v60  ;;  %v6635_v8 = vadd.f32 %v6634_v5, %v6633_v3 }
 0x14b   :  { %v6590_v37 = vpop.f32.mrb[16].mxu0  ;;  %v8793_v10 = vadd.f32 %v6635_v8, %v855_v1 }
 0x14c   :  { %v6591_v9 = vpop.f32.mrb[17].mxu0 }
 0x14d   :  { %v6592_v46 = vadd.f32 %v6591_v9, %v6590_v37  ;;  %v6593_v11 = vpop.f32.mrb[18].mxu0  ;;  %v6636_v15 = vpop.f32.mrb[16].mxu1 }
 0x14e   :  { %v6594_v12 = vpop.f32.mrb[19].mxu0  ;;  %v6637_v16 = vpop.f32.mrb[17].mxu1 }
 0x14f   :  { %v860_v14 = vadd.f32 %v6592_v46, %v8769_v4  ;;  %v6638_v20 = vadd.f32 %v6637_v16, %v6636_v15  ;;  %v6639_v19 = vpop.f32.mrb[18].mxu1 }
 0x150   :  { %v6640_v22 = vpop.f32.mrb[19].mxu1 }
 0x151   :  { %v8796_v51 = vadd.f32 %v6638_v20, %v860_v14 }
 0x153   :  { %v6658_v24 = vpop.f32.mrb[20].mxu0 }
 0x154   :  { %v6659_v26 = vpop.f32.mrb[21].mxu0 }
 0x155   :  { %v6660_v27 = vadd.f32 %v6659_v26, %v6658_v24  ;;  %v6661_v13 = vpop.f32.mrb[22].mxu0  ;;  %v6704_v30 = vpop.f32.mrb[20].mxu1 }
 0x156   :  { %v6662_v25 = vpop.f32.mrb[23].mxu0  ;;  %v6705_v21 = vpop.f32.mrb[21].mxu1 }
 0x157   :  { %v972_v32 = vadd.f32 %v6660_v27, %v8773_v63  ;;  %v6663_v45 = vadd.f32 %v6662_v25, %v6661_v13  ;;  %v6706_v4 = vadd.f32 %v6705_v21, %v6704_v30  ;;  %v6707_v34 = vpop.f32.mrb[22].mxu1 }
 0x158   :  { %v6708_v35 = vpop.f32.mrb[23].mxu1 }
 0x159   :  { %v975_v33 = vadd.f32 %v6663_v45, %v8775_v55  ;;  %v6709_v56 = vadd.f32 %v6708_v35, %v6707_v34  ;;  %v1044_v6 = vadd.f32 %v6706_v4, %v972_v32 }
 0x15b   :  { %v6664_v57 = vpop.f32.mrb[24].mxu0  ;;  %v1047_v28 = vadd.f32 %v6709_v56, %v975_v33 }
 0x15c   :  { %v6665_v18 = vpop.f32.mrb[25].mxu0 }
 0x15d   :  { %v6666_v44 = vadd.f32 %v6665_v18, %v6664_v57  ;;  %v6667_v23 = vpop.f32.mrb[26].mxu0  ;;  %v6710_v38 = vpop.f32.mrb[24].mxu1 }
 0x15e   :  { %v6668_v31 = vpop.f32.mrb[27].mxu0  ;;  %v6711_v39 = vpop.f32.mrb[25].mxu1 }
 0x15f   :  { %v980_v36 = vadd.f32 %v6666_v44, %v8779_v47  ;;  %v6669_v63 = vadd.f32 %v6668_v31, %v6667_v23  ;;  %v6712_v40 = vadd.f32 %v6711_v39, %v6710_v38  ;;  %v6713_v55 = vpop.f32.mrb[26].mxu1 }
 0x160   :  { %v6714_v43 = vpop.f32.mrb[27].mxu1 }
 0x161   :  { %v983_v41 = vadd.f32 %v6669_v63, %v8781_v17  ;;  %v6715_v49 = vadd.f32 %v6714_v43, %v6713_v55  ;;  %v1052_v52 = vadd.f32 %v6712_v40, %v980_v36 }
 0x163   :  { %v6670_v50 = vpop.f32.mrb[28].mxu0  ;;  %v1055_v60 = vadd.f32 %v6715_v49, %v983_v41 }
 0x164   :  { %v6671_v53 = vpop.f32.mrb[29].mxu0 }
 0x165   :  { %v6672_v58 = vadd.f32 %v6671_v53, %v6670_v50  ;;  %v6673_v59 = vpop.f32.mrb[30].mxu0  ;;  %v6716_v0 = vpop.f32.mrb[28].mxu1 }
 0x166   :  { %v6674_v61 = vpop.f32.mrb[31].mxu0  ;;  %v6717_v1 = vpop.f32.mrb[29].mxu1 }
 0x167   :  { %v988_v62 = vadd.f32 %v6672_v58, %v8785_v48  ;;  %v6675_v47 = vadd.f32 %v6674_v61, %v6673_v59  ;;  %v6718_v3 = vadd.f32 %v6717_v1, %v6716_v0  ;;  %v6719_v17 = vpop.f32.mrb[30].mxu1  ;;  %v8809_v1 = vld [vmem:[#allocation2 + $0x8] sm:$0xff] }
 0x168   :  { %v6720_v5 = vpop.f32.mrb[31].mxu1 }
 0x169   :  { %v991_v2 = vadd.f32 %v6675_v47, %v8787_v42  ;;  %v6721_v8 = vadd.f32 %v6720_v5, %v6719_v17  ;;  %v1060_v9 = vadd.f32 %v6718_v3, %v988_v62  ;;  %v8811_v3 = vld [vmem:[#allocation2] sm:$0xff]  ;;  %v76_v5 = vld [vmem:[#allocation2 + $0x10] sm:$0xff] }
 0x16b   :  { %v6676_v37 = vpop.f32.mrb[32].mxu0  ;;  %v1063_v14 = vadd.f32 %v6721_v8, %v991_v2  ;;  %v77_v8 = vld [vmem:[#allocation2 + $0x18] sm:$0xff] }
 0x16c   :  { %v6677_v46 = vpop.f32.mrb[33].mxu0 }
 0x16d   :  { %v6678_v11 = vadd.f32 %v6677_v46, %v6676_v37  ;;  %v6679_v12 = vpop.f32.mrb[34].mxu0  ;;  %v6722_v20 = vpop.f32.mrb[32].mxu1 }
 0x16e   :  { %v6680_v15 = vpop.f32.mrb[35].mxu0  ;;  %v6723_v19 = vpop.f32.mrb[33].mxu1 }
 0x16f   :  { %v996_v16 = vadd.f32 %v6678_v11, %v8791_v7  ;;  %v6681_v48 = vadd.f32 %v6680_v15, %v6679_v12  ;;  %v6724_v24 = vadd.f32 %v6723_v19, %v6722_v20  ;;  %v6725_v42 = vpop.f32.mrb[34].mxu1 }
 0x170   :  { %v6726_v26 = vpop.f32.mrb[35].mxu1 }
 0x171   :  { %v999_v22 = vadd.f32 %v6681_v48, %v8793_v10  ;;  %v6727_v27 = vadd.f32 %v6726_v26, %v6725_v42  ;;  %v1068_v25 = vadd.f32 %v6724_v24, %v996_v16  ;;  %v82_v48 = vld [vmem:[#allocation2 + $0x40] sm:$0xff] }
 0x173   :  { %v6682_v13 = vpop.f32.mrb[36].mxu0  ;;  %v1071_v21 = vadd.f32 %v6727_v27, %v999_v22 }
 0x174   :  { %v6683_v32 = vpop.f32.mrb[37].mxu0 }
 0x175   :  { %v6684_v30 = vadd.f32 %v6683_v32, %v6682_v13  ;;  %v6685_v45 = vpop.f32.mrb[38].mxu0  ;;  %v6728_v34 = vpop.f32.mrb[36].mxu1 }
 0x176   :  { %v6686_v33 = vpop.f32.mrb[39].mxu0  ;;  %v6729_v7 = vpop.f32.mrb[37].mxu1  ;;  %v78_v45 = vld [vmem:[#allocation2 + $0x20] sm:$0xff] }
 0x177   :  { %v1004_v4 = vadd.f32 %v6684_v30, %v8796_v51  ;;  %v6730_v35 = vadd.f32 %v6729_v7, %v6728_v34  ;;  %v6731_v56 = vpop.f32.mrb[38].mxu1 }
 0x178   :  { %v6732_v57 = vpop.f32.mrb[39].mxu1 }
 0x179   :  { %v1076_v10 = vadd.f32 %v6730_v35, %v1004_v4 }
 0x17b   :  { %v1115_v18 = vpop.f32.mrb[40].mxu0 }
 0x17c   :  { %v1116_v44 = vadd.f32 %v1115_v18, %v1044_v6  ;;  %v7587_v23 = vpop.f32.mrb[41].mxu0 }
 0x17d   :  { %v1118_v31 = vpop.f32.mrb[42].mxu0 }
 0x17e   :  { %v1119_v36 = vadd.f32 %v1118_v31, %v1047_v28  ;;  %v7588_v38 = vpop.f32.mrb[43].mxu0  ;;  %v1153_v28 = vmax.f32 %v1116_v44, 0.0 }
 0x180   :  { %v1154_v0 = vmax.f32 %v1119_v36, 0.0 }
 0x182   :  { %v8814_v37 = vmul.f32 %v1154_v0, %v8809_v1 }
 0x183   :  { %v1123_v63 = vpop.f32.mrb[44].mxu0 }
 0x184   :  { %v1124_v39 = vadd.f32 %v1123_v63, %v1052_v52  ;;  %v7591_v41 = vpop.f32.mrb[45].mxu0  ;;  %v1195_v22 = vrot.slane %v8814_v37, 7 }
 0x185   :  { %v1126_v40 = vpop.f32.mrb[46].mxu0 }
 0x186   :  { %v1127_v55 = vadd.f32 %v1126_v40, %v1055_v60  ;;  %v7592_v43 = vpop.f32.mrb[47].mxu0  ;;  %v1155_v60 = vmax.f32 %v1124_v39, 0.0 }
 0x187   :  { %v8010_v43 = vld [vmem:[#allocation5 + $0x340] sm:$0xff]  }
 0x188   :  { %v1156_v17 = vmax.f32 %v1127_v55, 0.0  ;;  %v8819_v11 = vmul.f32 %v1155_v60, %v76_v5 }
 0x18a   :  { %v8821_v12 = vmul.f32 %v1156_v17, %v77_v8  ;;  %v1196_v32 = vrot.slane %v8819_v11, 7  ;;  %v8021_v17 = vld [vmem:[#allocation5 + $0x410] sm:$0xff]  }
 0x18b   :  { %v1131_v49 = vpop.f32.mrb[48].mxu0 }
 0x18c   :  { %v1132_v51 = vadd.f32 %v1131_v49, %v1060_v9  ;;  %v7595_v50 = vpop.f32.mrb[49].mxu0  ;;  %v8817_v9 = vmul.f32 %v1153_v28, %v8811_v3  ;;  %v1197_v30 = vrot.slane %v8821_v12, 7  ;;  %v1209_v44 = vsel %vm127_vm0, %v1195_v22, %v1196_v32  ;;  %v8014_v49 = vld [vmem:[#allocation5 + $0x3c0] sm:$0xff]  }
 0x18d   :  { %v1134_v53 = vpop.f32.mrb[50].mxu0  ;;  %v1172_v28 = vrot.slane %v8814_v37, 6 }
 0x18e   :  { %v1135_v58 = vadd.f32 %v1134_v53, %v1063_v14  ;;  %v7596_v59 = vpop.f32.mrb[51].mxu0  ;;  %v81_v14 = vld [vmem:[#allocation2 + $0x38] sm:$0xff]  ;;  %v1194_v27 = vrot.slane %v8817_v9, 7  ;;  %v1157_v13 = vmax.f32 %v1132_v51, 0.0  ;;  %v1171_v34 = vrot.slane %v8817_v9, 6  ;;  %v8011_v53 = vld [vmem:[#allocation5 + $0x388] sm:$0xff]  }
 0x18f   :  { %v1208_v23 = vsel %vm127_vm0, %v1196_v32, %v1197_v30  ;;  %v8017_v59 = vld [vmem:[#allocation5 + $0x408] sm:$0xff]   ;;  %v8020_v32 = vld [vmem:[#allocation5 + $0x358] sm:$0xff]  }
 0x190   :  { %v1210_v4 = vsel %vm127_vm0, %v1194_v27, %v1195_v22  ;;  %v8838_v18 = vmul.f32 %v1157_v13, %v78_v45  ;;  %v1223_v50 = vpack.c.bf16 %v1208_v23, %v1209_v44 }
 0x191   :  { %v1213_v51 = vpack.c.bf16 %v1209_v44, %v1210_v4 }
 0x192   :  { %10680 = vst [vmem:[#allocation14_spill] sm:$0xff] %v8838_v18 }
 0x193   :  { %v1139_v61 = vpop.f32.mrb[52].mxu0 }
 0x194   :  { %v8807_v62 = vadd.f32 %v1139_v61, %v1068_v25  ;;  %v7599_v6 = vpop.f32.mrb[53].mxu0  ;;  %v1158_v25 = vmax.f32 %v1135_v58, 0.0  ;;  %v1173_v58 = vrot.slane %v8819_v11, 6 }
 0x195   :  { %v1142_v47 = vpop.f32.mrb[54].mxu0  ;;  %v1198_v6 = vrot.slane %v8838_v18, 7 }
 0x196   :  { %v1143_v52 = vadd.f32 %v1142_v47, %v1071_v21  ;;  %v7600_v2 = vpop.f32.mrb[55].mxu0  ;;  %v79_v21 = vld [vmem:[#allocation2 + $0x28] sm:$0xff]  ;;  %v1159_v61 = vmax.f32 %v8807_v62, 0.0  ;;  %v80_v47 = vld [vmem:[#allocation2 + $0x30] sm:$0xff]  ;;  %v1186_v60 = vsel %vm103_vm1, %v1172_v28, %v1173_v58  ;;  %v8015_v62 = vld [vmem:[#allocation5 + $0x390] sm:$0xff]  }
 0x197   :  { %v8018_v2 = vld [vmem:[#allocation5 + $0x3c8] sm:$0xff]   ;;  %v1207_v8 = vsel %vm127_vm0, %v1197_v30, %v1198_v6  ;;  %v8026_v30 = vld [vmem:[#allocation5 + $0x3d8] sm:$0xff]  }
 0x198   :  { %v1160_v46 = vmax.f32 %v1143_v52, 0.0  ;;  %v8012_v52 = vld [vmem:[#allocation5 + $0x348] sm:$0xff]   ;;  %v8870_v5 = vmul.f32 %v1159_v61, %v80_v47 }
 0x19a   :  { %v8824_v24 = vmul.f32 %v1160_v46, %v81_v14  ;;  %10682 = vst [vmem:[#allocation16_spill] sm:$0xff] %v8870_v5  ;;  %v1187_v14 = vsel %vm103_vm1, %v1171_v34, %v1172_v28  ;;  %v1200_v13 = vrot.slane %v8870_v5, 7 }
 0x19b   :  { %v1147_v15 = vpop.f32.mrb[56].mxu0 }
 0x19c   :  { %v1148_v16 = vadd.f32 %v1147_v15, %v1076_v10  ;;  %v7603_v20 = vpop.f32.mrb[57].mxu0  ;;  %10678 = vst [vmem:[#allocation12_spill] sm:$0xff] %v8824_v24  ;;  %v1201_v7 = vrot.slane %v8824_v24, 7  ;;  %v1178_v56 = vrot.slane %v8824_v24, 6  ;;  %v8840_v10 = vmul.f32 %v1158_v25, %v79_v21  ;;  %v8023_v21 = vld [vmem:[#allocation5 + $0x3a0] sm:$0xff]  }
 0x19d   :  { %v1150_v19 = vpop.f32.mrb[58].mxu0  ;;  %v1190_v15 = vpack.c.bf16 %v1186_v60, %v1187_v14  ;;  %v8016_v20 = vld [vmem:[#allocation5 + $0x350] sm:$0xff]   ;;  %v1174_v25 = vrot.slane %v8821_v12, 6  ;;  %v1234_v60 = vrot.slane %v8819_v11, 1  ;;  %v1232_v14 = vrot.slane %v8817_v9, 1 }
 0x19e   :  { %v1161_v42 = vmax.f32 %v1148_v16, 0.0  ;;  %v7604_v26 = vpop.f32.mrb[59].mxu0  ;;  %10681 = vst [vmem:[#allocation15_spill] sm:$0xff] %v8840_v10  ;;  %v1199_v0 = vrot.slane %v8840_v10, 7  ;;  %v8880_v16 = vpack.c.bf16 %v8819_v11, %v8814_v37  ;;  %v1214_v19 = vpack.c.bf16 %v1207_v8, %v1208_v23 }
 0x19f   :  { %v1175_v26 = vrot.slane %v8838_v18, 6  ;;  %v8898_v23 = vpack.c.bf16 %v8838_v18, %v8821_v12  ;;  %v8909_v61 = vpack.c.bf16 %v8870_v5, %v8840_v10 }
 0x1a0   :  { %v8829_v33 = vmul.f32 %v1161_v42, %v82_v48  ;;  %v1206_v46 = vsel %vm127_vm0, %v1198_v6, %v1199_v0  ;;  %v8022_v48 = vld [vmem:[#allocation5 + $0x3d0] sm:$0xff]   ;;  %v8019_v42 = vld [vmem:[#allocation5 + $0x398] sm:$0xff]  }
 0x1a1   :  { %v1224_v22 = vpack.c.bf16 %v1206_v46, %v1207_v8  ;;  %v1184_v45 = vsel %vm103_vm1, %v1174_v25, %v1175_v26  ;;  %v8034_v6 = vld [vmem:[#allocation5 + $0x370] sm:$0xff]   ;;  %v8038_v8 = vld [vmem:[#allocation5 + $0x378] sm:$0xff]  }
 0x1a2   :  { %10679 = vst [vmem:[#allocation13_spill] sm:$0xff] %v8829_v33  ;;  %v1202_v35 = vrot.slane %v8829_v33, 7  ;;  %v1179_v57 = vrot.slane %v8829_v33, 6  ;;  %v1217_v55 = vpack.c.bf16 %v8817_v9, %v8829_v33 }
 0x1a4   :  { %v8850_v31 = vsel %vm127_vm0, %v1201_v7, %v1202_v35  ;;  %v1211_v36 = vsel %vm127_vm0, %v1202_v35, %v1194_v27  ;;  %v1180_v38 = vsel %vm103_vm1, %v1178_v56, %v1179_v57  ;;  %v1188_v63 = vsel %vm103_vm1, %v1179_v57, %v1171_v34  ;;  %v8024_v27 = vld [vmem:[#allocation5 + $0x418] sm:$0xff]  }
 0x1a5   :  { %v1212_v39 = vpack.c.bf16 %v1211_v36, %v8850_v31  ;;  %v1222_v41 = vpack.c.bf16 %v1210_v4, %v1211_v36  ;;  %v1189_v40 = vpack.c.bf16 %v1188_v63, %v1180_v38  ;;  %v8027_v4 = vld [vmem:[#allocation5 + $0x420] sm:$0xff]   ;;  %v1205_v34 = vsel %vm127_vm0, %v1199_v0, %v1200_v13  ;;  %v8036_v0 = vld [vmem:[#allocation5 + $0x3f0] sm:$0xff]  }
 0x1a6   :  { %v1204_v35 = vsel %vm127_vm0, %v1200_v13, %v1201_v7  ;;  %v1185_v57 = vsel %vm103_vm1, %v1173_v58, %v1174_v25  ;;  %v8025_v36 = vld [vmem:[#allocation5 + $0x360] sm:$0xff]   ;;  %v1215_v63 = vpack.c.bf16 %v1205_v34, %v1206_v46  ;;  %v8031_v7 = vld [vmem:[#allocation5 + $0x428] sm:$0xff]   ;;  %v1226_v28 = vpack.c.bf16 %v8850_v31, %v8850_v31  ;;  %v8040_v46 = vld [vmem:[#allocation5 + $0x3f8] sm:$0xff]  }
 0x1a7   :  { %1899 = vmatprep.mubr.bf16.mxu1 %v1212_v39  ;;  %1971 = vmatprep.mubr.bf16.mxu0 %v1222_v41  ;;  %v1191_v44 = vpack.c.bf16 %v1184_v45, %v1185_v57  ;;  %v8029_v38 = vld [vmem:[#allocation5 + $0x3e0] sm:$0xff]   ;;  %v1225_v39 = vpack.c.bf16 %v1204_v35, %v1205_v34  ;;  %v1177_v41 = vrot.slane %v8870_v5, 6  ;;  %v1216_v47 = vpack.c.bf16 %v1204_v35, %v1204_v35  ;;  %v8042_v35 = vld [vmem:[#allocation5 + $0x448] sm:$0xff]  }
 0x1a8   :  { %1900 = vmatmul.mubr.bf16.vlgmr.msra.gmra.mrb[40].mxu1 %v1189_v40  ;;  %1972 = vmatmul.mubr.bf16.vlgmr.msra.gmra.mrb[60].mxu0 %v1217_v55  ;;  %v8028_v40 = vld [vmem:[#allocation5 + $0x3a8] sm:$0xff]   ;;  %v1176_v55 = vrot.slane %v8840_v10, 6  ;;  %v1239_v34 = vrot.slane %v8824_v24, 1 }
 0x1a9   :  { %1907 = vmatprep.mubr.bf16.mxu1 %v1213_v51  ;;  %1979 = vmatprep.mubr.bf16.mxu0 %v1223_v50  ;;  %v8033_v50 = vld [vmem:[#allocation5 + $0x3b0] sm:$0xff]   ;;  %v1181_v31 = vsel %vm103_vm1, %v1177_v41, %v1178_v56 }
 0x1aa   :  { %6840 = vmatpush3.bf16.msra.mxu1 %v8010_v43  ;;  %6886 = vmatpush3.bf16.msra.mxu0 %v8014_v49  ;;  %v8030_v43 = vld [vmem:[#allocation5 + $0x368] sm:$0xff]   ;;  %v1182_v51 = vsel %vm103_vm1, %v1176_v55, %v1177_v41  ;;  %v1183_v58 = vsel %vm103_vm1, %v1175_v26, %v1176_v55  ;;  %v1236_v26 = vrot.slane %v8838_v18, 1  ;;  %v8044_v41 = vld [vmem:[#allocation5 + $0x458] sm:$0xff]   ;;  %v1229_v55 = vpack.c.bf16 %v8840_v10, %v8838_v18 }
 0x1ab   :  { %6841 = vmatprep.subr.bf16.mxu1 %v8011_v53  ;;  %6887 = vmatprep.subr.bf16.mxu0 %v8017_v59  ;;  %v8032_v49 = vld [vmem:[#allocation5 + $0x3e8] sm:$0xff]   ;;  %v8035_v53 = vld [vmem:[#allocation5 + $0x430] sm:$0xff]   ;;  %v1192_v59 = vpack.c.bf16 %v1182_v51, %v1183_v58 }
 0x1ac   :  { %v8046_v51 = vld [vmem:[#allocation5 + $0x468] sm:$0xff]   ;;  %v8047_v58 = vld [vmem:[#allocation5 + $0x470] sm:$0xff]  }
 0x1ae   :  { %6842 = vmatpush3.bf16.msra.mxu1 %v8012_v52  ;;  %6888 = vmatpush3.bf16.msra.mxu0 %v8018_v2  ;;  %v8037_v52 = vld [vmem:[#allocation5 + $0x3b8] sm:$0xff]  }
 0x1af   :  { %6843 = vmatprep.subr.bf16.mxu1 %v8015_v62  ;;  %6889 = vmatprep.subr.bf16.mxu0 %v8021_v17  ;;  %v8039_v2 = vld [vmem:[#allocation5 + $0x438] sm:$0xff]   ;;  %v1235_v62 = vrot.slane %v8821_v12, 1  ;;  %v1233_v17 = vrot.slane %v8814_v37, 1 }
 0x1b0   :  { %1908 = vmatmul.mubr.bf16.gmra.mrb[44].mxu1 %v1190_v15  ;;  %1980 = vmatmul.mubr.bf16.gmra.mrb[64].mxu0 %v8880_v16 }
 0x1b1   :  { %1915 = vmatprep.mubr.bf16.mxu1 %v1214_v19  ;;  %1987 = vmatprep.mubr.bf16.mxu0 %v1224_v22  ;;  %v1247_v15 = vsel %vm166_vm3, %v1233_v17, %v1234_v60  ;;  %v1221_v19 = vpack.c.bf16 %v8824_v24, %v8824_v24  ;;  %v8930_v22 = vsel %vm166_vm3, %v1232_v14, %v1233_v17 }
 0x1b2   :  { %6844 = vmatpush3.bf16.msra.mxu1 %v8016_v20  ;;  %6890 = vmatpush3.bf16.msra.mxu0 %v8022_v48  ;;  %v1246_v20 = vsel %vm166_vm3, %v1234_v60, %v1235_v62  ;;  %v1193_v48 = vpack.c.bf16 %v1181_v31, %v1181_v31  ;;  %v1250_v56 = vpack.c.bf16 %v1247_v15, %v8930_v22 }
 0x1b3   :  { %6845 = vmatprep.subr.bf16.mxu1 %v8019_v42  ;;  %6891 = vmatprep.subr.bf16.mxu0 %v8024_v27  ;;  %v1257_v42 = vpack.c.bf16 %v1246_v20, %v1247_v15  ;;  %v1237_v27 = vrot.slane %v8840_v10, 1  ;;  %v1245_v13 = vsel %vm166_vm3, %v1235_v62, %v1236_v26 }
 0x1b4   :  { %v1251_v45 = vpack.c.bf16 %v1245_v13, %v1246_v20  ;;  %v1269_v20 = vrot.slane %v8824_v24, 2 }
 0x1b5   :  { %v1244_v25 = vsel %vm166_vm3, %v1236_v26, %v1237_v27  ;;  %v1262_v26 = vrot.slane %v8817_v9, 2 }
 0x1b6   :  { %6846 = vmatpush3.bf16.msra.mxu1 %v8020_v32  ;;  %6892 = vmatpush3.bf16.msra.mxu0 %v8026_v30  ;;  %v1227_v32 = vpack.c.bf16 %v8814_v37, %v8817_v9  ;;  %v8041_v30 = vld [vmem:[#allocation5 + $0x440] sm:$0xff]  }
 0x1b7   :  { %6847 = vmatprep.subr.bf16.mxu1 %v8023_v21  ;;  %6893 = vmatprep.subr.bf16.mxu0 %v8027_v4  ;;  %v1258_v21 = vpack.c.bf16 %v1244_v25, %v1245_v13  ;;  %v1238_v4 = vrot.slane %v8870_v5, 1 }
 0x1b8   :  { %1916 = vmatmul.mubr.bf16.gmra.mrb[48].mxu1 %v1191_v44  ;;  %1988 = vmatmul.mubr.bf16.gmra.mrb[68].mxu0 %v8898_v23 }
 0x1b9   :  { %1923 = vmatprep.mubr.bf16.mxu1 %v1215_v63  ;;  %1995 = vmatprep.mubr.bf16.mxu0 %v1225_v39  ;;  %v1243_v57 = vsel %vm166_vm3, %v1237_v27, %v1238_v4  ;;  %v1242_v44 = vsel %vm166_vm3, %v1238_v4, %v1239_v34  ;;  %v1240_v39 = vrot.slane %v8829_v33, 1  ;;  %v8051_v4 = vld [vmem:[#allocation5 + $0x4c8] sm:$0xff]  }
 0x1ba   :  { %6848 = vmatpush3.bf16.msra.mxu1 %v8025_v36  ;;  %6894 = vmatpush3.bf16.msra.mxu0 %v8029_v38  ;;  %v8043_v36 = vld [vmem:[#allocation5 + $0x450] sm:$0xff]   ;;  %v1252_v38 = vpack.c.bf16 %v1243_v57, %v1244_v25  ;;  %v1259_v63 = vpack.c.bf16 %v1242_v44, %v1243_v57  ;;  %v8054_v57 = vld [vmem:[#allocation5 + $0x500] sm:$0xff]  }
 0x1bb   :  { %6849 = vmatprep.subr.bf16.mxu1 %v8028_v40  ;;  %6895 = vmatprep.subr.bf16.mxu0 %v8031_v7  ;;  %v1241_v40 = vsel %vm166_vm3, %v1239_v34, %v1240_v39  ;;  %v1249_v7 = vsel %vm166_vm3, %v1240_v39, %v1232_v14  ;;  %v8052_v34 = vld [vmem:[#allocation5 + $0x488] sm:$0xff]   ;;  %v8060_v39 = vld [vmem:[#allocation5 + $0x498] sm:$0xff]  }
 0x1be   :  { %6850 = vmatpush3.bf16.msra.mxu1 %v8030_v43  ;;  %6896 = vmatpush3.bf16.msra.mxu0 %v8032_v49  ;;  %v8045_v43 = vld [vmem:[#allocation5 + $0x460] sm:$0xff]   ;;  %v1260_v49 = vpack.c.bf16 %v1249_v7, %v1241_v40 }
 0x1bf   :  { %6851 = vmatprep.subr.bf16.mxu1 %v8033_v50  ;;  %6897 = vmatprep.subr.bf16.mxu0 %v8035_v53  ;;  %v1230_v50 = vpack.c.bf16 %v8824_v24, %v8870_v5  ;;  %v1255_v53 = vpack.c.bf16 %v8829_v33, %v8824_v24 }
 0x1c0   :  { %1924 = vmatmul.mubr.bf16.gmra.mrb[52].mxu1 %v1192_v59  ;;  %1996 = vmatmul.mubr.bf16.gmra.mrb[72].mxu0 %v8909_v61  ;;  %v1254_v59 = vpack.c.bf16 %v1249_v7, %v1249_v7  ;;  %v8063_v7 = vld [vmem:[#allocation5 + $0x4e0] sm:$0xff]  }
 0x1c1   :  { %1931 = vmatprep.mubr.bf16.mxu1 %v1216_v47  ;;  %2003 = vmatprep.mubr.bf16.mxu0 %v1226_v28  ;;  %v1256_v47 = vpack.c.bf16 %v8817_v9, %v8817_v9  ;;  %v1265_v28 = vrot.slane %v8821_v12, 2 }
 0x1c2   :  { %6852 = vmatpush3.bf16.msra.mxu1 %v8034_v6  ;;  %6898 = vmatpush3.bf16.msra.mxu0 %v8036_v0  ;;  %v1261_v6 = vpack.c.bf16 %v8930_v22, %v8930_v22  ;;  %v1231_v0 = vpack.c.bf16 %v8829_v33, %v8829_v33 }
 0x1c3   :  { %6853 = vmatprep.subr.bf16.mxu1 %v8037_v52  ;;  %6899 = vmatprep.subr.bf16.mxu0 %v8039_v2  ;;  %v1264_v52 = vrot.slane %v8819_v11, 2  ;;  %v1263_v2 = vrot.slane %v8814_v37, 2 }
 0x1c5   :  { %v1276_v60 = vsel %vm197_vm2, %v1264_v52, %v1265_v28  ;;  %v1277_v62 = vsel %vm197_vm2, %v1263_v2, %v1264_v52  ;;  %v8078_v52 = vld [vmem:[#allocation5 + $0x4b8] sm:$0xff]  }
 0x1c6   :  { %6854 = vmatpush3.bf16.msra.mxu1 %v8038_v8  ;;  %6900 = vmatpush3.bf16.msra.mxu0 %v8040_v46  ;;  %v1280_v17 = vpack.c.bf16 %v1276_v60, %v1277_v62  ;;  %v1267_v8 = vrot.slane %v8840_v10, 2  ;;  %v1266_v46 = vrot.slane %v8838_v18, 2  ;;  %v8080_v60 = vld [vmem:[#allocation5 + $0x538] sm:$0xff]   ;;  %v8081_v62 = vld [vmem:[#allocation5 + $0x5c0] sm:$0xff]  }
 0x1c7   :  { %7605 = vmatprep.subr.bf16.mxu1 %v10648_v54  ;;  %v8086_v18 = vld [vmem:[#allocation5 + $0x600] sm:$0xff]  }
 0x1c8   :  { %1932 = vmatmul.mubr.bf16.gmra.mrb[56].mxu1 %v1193_v48  ;;  %2004 = vmatmul.mubr.bf16.gmra.mrb[76].mxu0 %v1221_v19  ;;  %v1274_v31 = vsel %vm197_vm2, %v1266_v46, %v1267_v8  ;;  %v1275_v14 = vsel %vm197_vm2, %v1265_v28, %v1266_v46  ;;  %v1268_v48 = vrot.slane %v8870_v5, 2  ;;  %v8076_v28 = vld [vmem:[#allocation5 + $0x530] sm:$0xff]   ;;  %v9014_v46 = vld [vmem:[#allocation7 + $0x1] ss:$0 sm:$0xff] }
 0x1c9   :  { %2043 = vmatprep.mubr.bf16.mxu1 %v1250_v56  ;;  %2115 = vmatprep.mubr.bf16.mxu0 %v1257_v42  ;;  %v1281_v15 = vpack.c.bf16 %v1274_v31, %v1275_v14  ;;  %v1270_v42 = vrot.slane %v8829_v33, 2 }
 0x1ca   :  { %v1272_v19 = vsel %vm197_vm2, %v1268_v48, %v1269_v20  ;;  %v1273_v22 = vsel %vm197_vm2, %v1267_v8, %v1268_v48 }
 0x1cb   :  { %v1282_v56 = vpack.c.bf16 %v1272_v19, %v1273_v22  ;;  %v1271_v27 = vsel %vm197_vm2, %v1269_v20, %v1270_v42  ;;  %v1279_v13 = vsel %vm197_vm2, %v1270_v42, %v1262_v26 }
 0x1cc   :  { %v1283_v25 = vpack.c.bf16 %v1279_v13, %v1271_v27  ;;  %v8085_v13 = vld [vmem:[#allocation5 + $0x640] sm:$0xff]  }
 0x1d0   :  { %2044 = vmatmul.mubr.bf16.vlgmr.msra.gmra.mrb[60].mxu1 %v1227_v32  ;;  %2116 = vmatmul.mubr.bf16.vlgmr.msra.gmra.mrb[80].mxu0 %v8880_v16  ;;  %v1228_v16 = vpack.c.bf16 %v8821_v12, %v8819_v11  ;;  %v1278_v32 = vsel %vm197_vm2, %v1262_v26, %v1263_v2  ;;  %v8079_v2 = vld [vmem:[#allocation5 + $0x578] sm:$0xff]  }
 0x1d1   :  { %2051 = vmatprep.mubr.bf16.mxu1 %v1251_v45  ;;  %2123 = vmatprep.mubr.bf16.mxu0 %v1258_v21  ;;  %v8049_v45 = vld [vmem:[#allocation5 + $0x4c0] sm:$0xff]  }
 0x1d2   :  { %7606 = vmatpush3.bf16.msra.mxu1 %v8041_v30  ;;  %v1284_v30 = vpack.c.bf16 %v1278_v32, %v1278_v32  ;;  %v8050_v21 = vld [vmem:[#allocation5 + $0x480] sm:$0xff]   ;;  %6944 = vmatprep.subr.bf16.mxu0 %v8049_v45 }
 0x1d3   :  { %7607 = vmatprep.subr.bf16.mxu1 %v10648_v54  ;;  %6945 = vmatpush3.bf16.msra.mxu0 %v8050_v21 }
 0x1d4   :  { %6946 = vmatprep.subr.bf16.mxu0 %v8051_v4 }
 0x1d6   :  { %7608 = vmatpush3.bf16.msra.mxu1 %v8042_v35  ;;  %v8053_v35 = vld [vmem:[#allocation5 + $0x540] sm:$0xff]  }
 0x1d7   :  { %7609 = vmatprep.subr.bf16.mxu1 %v10648_v54  ;;  %6947 = vmatpush3.bf16.msra.mxu0 %v8052_v34 }
 0x1d8   :  { %2052 = vmatmul.mubr.bf16.gmra.mrb[64].mxu1 %v1228_v16  ;;  %2124 = vmatmul.mubr.bf16.gmra.mrb[84].mxu0 %v8898_v23  ;;  %v1253_v23 = vpack.c.bf16 %v1241_v40, %v1242_v44  ;;  %v8055_v44 = vld [vmem:[#allocation5 + $0x4d0] sm:$0xff]  }
 0x1d9   :  { %2059 = vmatprep.mubr.bf16.mxu1 %v1252_v38  ;;  %2131 = vmatprep.mubr.bf16.mxu0 %v1259_v63  ;;  %v8056_v16 = vld [vmem:[#allocation5 + $0x490] sm:$0xff]   ;;  %v8058_v38 = vld [vmem:[#allocation5 + $0x508] sm:$0xff]   ;;  %v8059_v63 = vld [vmem:[#allocation5 + $0x4d8] sm:$0xff]  }
 0x1da   :  { %7610 = vmatpush3.bf16.msra.mxu1 %v8043_v36  ;;  %6948 = vmatprep.subr.bf16.mxu0 %v8055_v44  ;;  %v8057_v36 = vld [vmem:[#allocation5 + $0x548] sm:$0xff]   ;;  %v8062_v40 = vld [vmem:[#allocation5 + $0x510] sm:$0xff]  }
 0x1db   :  { %7611 = vmatprep.subr.bf16.mxu1 %v10648_v54  ;;  %6949 = vmatpush3.bf16.msra.mxu0 %v8056_v16 }
 0x1dc   :  { %6950 = vmatprep.subr.bf16.mxu0 %v8059_v63 }
 0x1de   :  { %7612 = vmatpush3.bf16.msra.mxu1 %v8044_v41  ;;  %v8061_v41 = vld [vmem:[#allocation5 + $0x550] sm:$0xff]  }
 0x1df   :  { %7613 = vmatprep.subr.bf16.mxu1 %v10648_v54  ;;  %6951 = vmatpush3.bf16.msra.mxu0 %v8060_v39 }
 0x1e0   :  { %2060 = vmatmul.mubr.bf16.gmra.mrb[68].mxu1 %v1229_v55  ;;  %2132 = vmatmul.mubr.bf16.gmra.mrb[88].mxu0 %v8909_v61  ;;  %v8048_v61 = vld [vmem:[#allocation5 + $0x478] sm:$0xff]  }
 0x1e1   :  { %2067 = vmatprep.mubr.bf16.mxu1 %v1253_v23  ;;  %2139 = vmatprep.mubr.bf16.mxu0 %v1260_v49  ;;  %v8064_v55 = vld [vmem:[#allocation5 + $0x558] sm:$0xff]   ;;  %v8067_v49 = vld [vmem:[#allocation5 + $0x560] sm:$0xff]  }
 0x1e2   :  { %7614 = vmatpush3.bf16.msra.mxu1 %v8045_v43  ;;  %6952 = vmatprep.subr.bf16.mxu0 %v8063_v7  ;;  %v8065_v43 = vld [vmem:[#allocation5 + $0x4a0] sm:$0xff]   ;;  %v8066_v23 = vld [vmem:[#allocation5 + $0x518] sm:$0xff]  }
 0x1e3   :  { %7615 = vmatprep.subr.bf16.mxu1 %v10648_v54  ;;  %6953 = vmatpush3.bf16.msra.mxu0 %v8065_v43 }
 0x1e6   :  { %7616 = vmatpush3.bf16.msra.mxu1 %v8046_v51  ;;  %v8068_v51 = vld [vmem:[#allocation5 + $0x4e8] sm:$0xff]  }
 0x1e7   :  { %7617 = vmatprep.subr.bf16.mxu1 %v10648_v54  ;;  %6954 = vmatprep.subr.bf16.mxu0 %v8068_v51 }
 0x1e8   :  { %2068 = vmatmul.mubr.bf16.gmra.mrb[72].mxu1 %v1230_v50  ;;  %2140 = vmatmul.mubr.bf16.gmra.mrb[92].mxu0 %v1255_v53  ;;  %v8069_v50 = vld [vmem:[#allocation5 + $0x520] sm:$0xff]   ;;  %v8070_v53 = vld [vmem:[#allocation5 + $0x4a8] sm:$0xff]  }
 0x1e9   :  { %2075 = vmatprep.mubr.bf16.mxu1 %v1254_v59  ;;  %2147 = vmatprep.mubr.bf16.mxu0 %v1261_v6  ;;  %v8072_v59 = vld [vmem:[#allocation5 + $0x528] sm:$0xff]   ;;  %v8073_v6 = vld [vmem:[#allocation5 + $0x4f0] sm:$0xff]  }
 0x1ea   :  { %7618 = vmatpush3.bf16.msra.mxu1 %v8047_v58  ;;  %6955 = vmatpush3.bf16.msra.mxu0 %v8070_v53  ;;  %v8071_v58 = vld [vmem:[#allocation5 + $0x568] sm:$0xff]  }
 0x1eb   :  { %7619 = vmatprep.subr.bf16.mxu1 %v10648_v54  ;;  %6956 = vmatprep.subr.bf16.mxu0 %v8073_v6 }
 0x1ee   :  { %7620 = vmatpush3.bf16.msra.mxu1 %v8048_v61  ;;  %v8074_v61 = vld [vmem:[#allocation5 + $0x4b0] sm:$0xff]  }
 0x1ef   :  { %6990 = vmatprep.subr.bf16.mxu1 %v8053_v35  ;;  %6957 = vmatpush3.bf16.msra.mxu0 %v8074_v61 }
 0x1f0   :  { %2076 = vmatmul.mubr.bf16.gmra.mrb[76].mxu1 %v1231_v0  ;;  %2148 = vmatmul.mubr.bf16.gmra.mrb[96].mxu0 %v1256_v47  ;;  %v8075_v0 = vld [vmem:[#allocation5 + $0x570] sm:$0xff]   ;;  %v8077_v47 = vld [vmem:[#allocation5 + $0x4f8] sm:$0xff]  }
 0x1f1   :  { %7621 = vmatprep.mubr.msk.bf16.mxu1 %vm8392_vm4, %v10648_v54  ;;  %6958 = vmatprep.subr.bf16.mxu0 %v8077_v47 }
 0x1f3   :  { %6959 = vmatpush3.bf16.msra.mxu0 %v8078_v52 }
 0x1f4   :  { %7036 = vmatprep.subr.bf16.mxu0 %v8081_v62 }
 0x1f8   :  { %7622 = vmatmul.mubr.bf16.vlgmr.msra.gmra.mrb[80].mxu1 %v1280_v17 }
 0x1f9   :  { %7625 = vmatprep.mubr.msk.bf16.mxu1 %vm8392_vm4, %v10648_v54  ;;  %6991 = vmatpush3.bf16.msra.mxu1 %v8054_v57 }
 0x1fa   :  { %6992 = vmatprep.subr.bf16.mxu1 %v8057_v36 }
 0x1fd   :  { %6993 = vmatpush3.bf16.msra.mxu1 %v8058_v38 }
 0x1fe   :  { %6994 = vmatprep.subr.bf16.mxu1 %v8061_v41 }
 0x200   :  { %7626 = vmatmul.mubr.bf16.gmra.mrb[84].mxu1 %v1281_v15 }
 0x201   :  { %7629 = vmatprep.mubr.msk.bf16.mxu1 %vm8392_vm4, %v10648_v54  ;;  %6995 = vmatpush3.bf16.msra.mxu1 %v8062_v40 }
 0x202   :  { %6996 = vmatprep.subr.bf16.mxu1 %v8064_v55 }
 0x205   :  { %6997 = vmatpush3.bf16.msra.mxu1 %v8066_v23 }
 0x206   :  { %6998 = vmatprep.subr.bf16.mxu1 %v8067_v49 }
 0x208   :  { %7630 = vmatmul.mubr.bf16.gmra.mrb[88].mxu1 %v1282_v56 }
 0x209   :  { %7633 = vmatprep.mubr.msk.bf16.mxu1 %vm8392_vm4, %v10648_v54  ;;  %6999 = vmatpush3.bf16.msra.mxu1 %v8069_v50 }
 0x20a   :  { %7000 = vmatprep.subr.bf16.mxu1 %v8071_v58 }
 0x20d   :  { %7001 = vmatpush3.bf16.msra.mxu1 %v8072_v59 }
 0x20e   :  { %7002 = vmatprep.subr.bf16.mxu1 %v8075_v0 }
 0x210   :  { %7634 = vmatmul.mubr.bf16.gmra.mrb[92].mxu1 %v1283_v25 }
 0x211   :  { %7637 = vmatprep.mubr.msk.bf16.mxu1 %vm8392_vm4, %v10648_v54  ;;  %7003 = vmatpush3.bf16.msra.mxu1 %v8076_v28 }
 0x212   :  { %7004 = vmatprep.subr.bf16.mxu1 %v8079_v2 }
 0x215   :  { %7005 = vmatpush3.bf16.msra.mxu1 %v8080_v60 }
 0x216   :  { %7082 = vmatprep.subr.bf16.mxu1 %v8085_v13 }
 0x218   :  { %7638 = vmatmul.mubr.bf16.gmra.mrb[96].mxu1 %v1284_v30 }
 0x27b   :  { %v6763_v17 = vpop.f32.mrb[40].mxu1  ;;  %v6809_v8 = vpop.f32.mrb[60].mxu0 }
 0x27c   :  { %v6764_v31 = vpop.f32.mrb[41].mxu1  ;;  %v6810_v14 = vpop.f32.mrb[61].mxu0 }
 0x27d   :  { %v6765_v15 = vadd.f32 %v6764_v31, %v6763_v17  ;;  %v6811_v20 = vadd.f32 %v6810_v14, %v6809_v8  ;;  %v6766_v48 = vpop.f32.mrb[42].mxu1  ;;  %v6812_v19 = vpop.f32.mrb[62].mxu0 }
 0x27e   :  { %v6767_v22 = vpop.f32.mrb[43].mxu1  ;;  %v6813_v56 = vpop.f32.mrb[63].mxu0 }
 0x27f   :  { %v1902_v42 = vadd.f32 %v6765_v15, %v9014_v46  ;;  %v6768_v26 = vadd.f32 %v6767_v22, %v6766_v48  ;;  %v6814_v27 = vadd.f32 %v6813_v56, %v6812_v19 }
 0x281   :  { %v9017_v25 = vadd.f32 %v6811_v20, %v1902_v42  ;;  %v1905_v32 = vadd.f32 %v6768_v26, %v9014_v46 }
 0x283   :  { %v9020_v30 = vadd.f32 %v6814_v27, %v1905_v32  ;;  %v6769_v45 = vpop.f32.mrb[44].mxu1  ;;  %v6815_v21 = vpop.f32.mrb[64].mxu0 }
 0x284   :  { %v6770_v4 = vpop.f32.mrb[45].mxu1  ;;  %v6816_v34 = vpop.f32.mrb[65].mxu0 }
 0x285   :  { %v6771_v35 = vadd.f32 %v6770_v4, %v6769_v45  ;;  %v6817_v57 = vadd.f32 %v6816_v34, %v6815_v21  ;;  %v6772_v44 = vpop.f32.mrb[46].mxu1  ;;  %v6818_v16 = vpop.f32.mrb[66].mxu0 }
 0x286   :  { %v6773_v36 = vpop.f32.mrb[47].mxu1  ;;  %v6819_v38 = vpop.f32.mrb[67].mxu0 }
 0x287   :  { %v1910_v63 = vadd.f32 %v6771_v35, %v9014_v46  ;;  %v6774_v39 = vadd.f32 %v6773_v36, %v6772_v44  ;;  %v6820_v41 = vadd.f32 %v6819_v38, %v6818_v16 }
 0x289   :  { %v9023_v40 = vadd.f32 %v6817_v57, %v1910_v63  ;;  %v1913_v7 = vadd.f32 %v6774_v39, %v9014_v46 }
 0x28b   :  { %v9026_v55 = vadd.f32 %v6820_v41, %v1913_v7  ;;  %v6775_v43 = vpop.f32.mrb[48].mxu1  ;;  %v6821_v23 = vpop.f32.mrb[68].mxu0 }
 0x28c   :  { %v6776_v49 = vpop.f32.mrb[49].mxu1  ;;  %v6822_v51 = vpop.f32.mrb[69].mxu0 }
 0x28d   :  { %v6777_v50 = vadd.f32 %v6776_v49, %v6775_v43  ;;  %v6823_v53 = vadd.f32 %v6822_v51, %v6821_v23  ;;  %v6778_v58 = vpop.f32.mrb[50].mxu1  ;;  %v6824_v59 = vpop.f32.mrb[70].mxu0 }
 0x28e   :  { %v6779_v6 = vpop.f32.mrb[51].mxu1  ;;  %v6825_v61 = vpop.f32.mrb[71].mxu0 }
 0x28f   :  { %v1918_v0 = vadd.f32 %v6777_v50, %v9014_v46  ;;  %v6780_v47 = vadd.f32 %v6779_v6, %v6778_v58  ;;  %v6826_v28 = vadd.f32 %v6825_v61, %v6824_v59 }
 0x291   :  { %v9029_v52 = vadd.f32 %v6823_v53, %v1918_v0  ;;  %v1921_v2 = vadd.f32 %v6780_v47, %v9014_v46 }
 0x293   :  { %v9032_v60 = vadd.f32 %v6826_v28, %v1921_v2  ;;  %v6781_v62 = vpop.f32.mrb[52].mxu1  ;;  %v6827_v17 = vpop.f32.mrb[72].mxu0 }
 0x294   :  { %v6782_v8 = vpop.f32.mrb[53].mxu1  ;;  %v6828_v31 = vpop.f32.mrb[73].mxu0 }
 0x295   :  { %v6783_v14 = vadd.f32 %v6782_v8, %v6781_v62  ;;  %v6829_v15 = vadd.f32 %v6828_v31, %v6827_v17  ;;  %v6784_v20 = vpop.f32.mrb[54].mxu1  ;;  %v6830_v48 = vpop.f32.mrb[74].mxu0 }
 0x296   :  { %v6785_v19 = vpop.f32.mrb[55].mxu1  ;;  %v6831_v22 = vpop.f32.mrb[75].mxu0 }
 0x297   :  { %v1926_v56 = vadd.f32 %v6783_v14, %v9014_v46  ;;  %v6786_v42 = vadd.f32 %v6785_v19, %v6784_v20  ;;  %v6832_v26 = vadd.f32 %v6831_v22, %v6830_v48 }
 0x299   :  { %v9035_v27 = vadd.f32 %v6829_v15, %v1926_v56  ;;  %v1929_v13 = vadd.f32 %v6786_v42, %v9014_v46 }
 0x29b   :  { %v9038_v32 = vadd.f32 %v6832_v26, %v1929_v13  ;;  %v6787_v45 = vpop.f32.mrb[56].mxu1  ;;  %v6833_v21 = vpop.f32.mrb[76].mxu0 }
 0x29c   :  { %v6788_v4 = vpop.f32.mrb[57].mxu1  ;;  %v6834_v34 = vpop.f32.mrb[77].mxu0 }
 0x29d   :  { %v6789_v35 = vadd.f32 %v6788_v4, %v6787_v45  ;;  %v6835_v57 = vadd.f32 %v6834_v34, %v6833_v21  ;;  %v6790_v44 = vpop.f32.mrb[58].mxu1  ;;  %v6836_v16 = vpop.f32.mrb[78].mxu0 }
 0x29e   :  { %v6791_v36 = vpop.f32.mrb[59].mxu1  ;;  %v6837_v38 = vpop.f32.mrb[79].mxu0 }
 0x29f   :  { %v1934_v63 = vadd.f32 %v6789_v35, %v9014_v46 }
 0x2a1   :  { %v9041_v39 = vadd.f32 %v6835_v57, %v1934_v63 }
 0x2a3   :  { %v6855_v41 = vpop.f32.mrb[60].mxu1  ;;  %v6901_v7 = vpop.f32.mrb[80].mxu0 }
 0x2a4   :  { %v6856_v43 = vpop.f32.mrb[61].mxu1  ;;  %v6902_v23 = vpop.f32.mrb[81].mxu0 }
 0x2a5   :  { %v6857_v49 = vadd.f32 %v6856_v43, %v6855_v41  ;;  %v6903_v51 = vadd.f32 %v6902_v23, %v6901_v7  ;;  %v6858_v50 = vpop.f32.mrb[62].mxu1  ;;  %v6904_v53 = vpop.f32.mrb[82].mxu0 }
 0x2a6   :  { %v6859_v58 = vpop.f32.mrb[63].mxu1  ;;  %v6905_v59 = vpop.f32.mrb[83].mxu0 }
 0x2a7   :  { %v2046_v6 = vadd.f32 %v6857_v49, %v9017_v25  ;;  %v6860_v61 = vadd.f32 %v6859_v58, %v6858_v50  ;;  %v6906_v0 = vadd.f32 %v6905_v59, %v6904_v53 }
 0x2a9   :  { %v2049_v47 = vadd.f32 %v6860_v61, %v9020_v30  ;;  %v9045_v28 = vadd.f32 %v6903_v51, %v2046_v6 }
 0x2ab   :  { %v6861_v46 = vpop.f32.mrb[64].mxu1  ;;  %v6907_v2 = vpop.f32.mrb[84].mxu0  ;;  %v9047_v62 = vadd.f32 %v6906_v0, %v2049_v47 }
 0x2ac   :  { %v6862_v17 = vpop.f32.mrb[65].mxu1  ;;  %v6908_v8 = vpop.f32.mrb[85].mxu0 }
 0x2ad   :  { %v6863_v31 = vadd.f32 %v6862_v17, %v6861_v46  ;;  %v6909_v14 = vadd.f32 %v6908_v8, %v6907_v2  ;;  %v6864_v15 = vpop.f32.mrb[66].mxu1  ;;  %v6910_v20 = vpop.f32.mrb[86].mxu0 }
 0x2ae   :  { %v6865_v48 = vpop.f32.mrb[67].mxu1  ;;  %v6911_v19 = vpop.f32.mrb[87].mxu0 }
 0x2af   :  { %v2054_v25 = vadd.f32 %v6863_v31, %v9023_v40  ;;  %v6866_v22 = vadd.f32 %v6865_v48, %v6864_v15  ;;  %v6912_v56 = vadd.f32 %v6911_v19, %v6910_v20 }
 0x2b1   :  { %v2057_v30 = vadd.f32 %v6866_v22, %v9026_v55  ;;  %v2126_v42 = vadd.f32 %v6909_v14, %v2054_v25 }
 0x2b3   :  { %v6867_v26 = vpop.f32.mrb[68].mxu1  ;;  %v6913_v13 = vpop.f32.mrb[88].mxu0  ;;  %v9051_v45 = vadd.f32 %v6912_v56, %v2057_v30 }
 0x2b4   :  { %v6868_v21 = vpop.f32.mrb[69].mxu1  ;;  %v6914_v4 = vpop.f32.mrb[89].mxu0 }
 0x2b5   :  { %v6869_v34 = vadd.f32 %v6868_v21, %v6867_v26  ;;  %v6915_v35 = vadd.f32 %v6914_v4, %v6913_v13  ;;  %v6870_v57 = vpop.f32.mrb[70].mxu1  ;;  %v6916_v44 = vpop.f32.mrb[90].mxu0 }
 0x2b6   :  { %v6871_v16 = vpop.f32.mrb[71].mxu1  ;;  %v6917_v36 = vpop.f32.mrb[91].mxu0 }
 0x2b7   :  { %v2062_v38 = vadd.f32 %v6869_v34, %v9029_v52  ;;  %v6872_v40 = vadd.f32 %v6871_v16, %v6870_v57  ;;  %v6918_v63 = vadd.f32 %v6917_v36, %v6916_v44 }
 0x2b9   :  { %v2065_v41 = vadd.f32 %v6872_v40, %v9032_v60  ;;  %v9055_v55 = vadd.f32 %v6915_v35, %v2062_v38 }
 0x2bb   :  { %v6873_v7 = vpop.f32.mrb[72].mxu1  ;;  %v6919_v43 = vpop.f32.mrb[92].mxu0  ;;  %v9057_v23 = vadd.f32 %v6918_v63, %v2065_v41 }
 0x2bc   :  { %v6874_v49 = vpop.f32.mrb[73].mxu1  ;;  %v6920_v51 = vpop.f32.mrb[93].mxu0 }
 0x2bd   :  { %v6875_v50 = vadd.f32 %v6874_v49, %v6873_v7  ;;  %v6921_v53 = vadd.f32 %v6920_v51, %v6919_v43  ;;  %v6876_v58 = vpop.f32.mrb[74].mxu1  ;;  %v6922_v59 = vpop.f32.mrb[94].mxu0 }
 0x2be   :  { %v6877_v6 = vpop.f32.mrb[75].mxu1  ;;  %v6923_v61 = vpop.f32.mrb[95].mxu0 }
 0x2bf   :  { %v2070_v52 = vadd.f32 %v6875_v50, %v9035_v27  ;;  %v6878_v0 = vadd.f32 %v6877_v6, %v6876_v58  ;;  %v6924_v47 = vadd.f32 %v6923_v61, %v6922_v59  ;;  %v8267_v59 = vld [vmem:[#allocation2 + $0x10] sm:$0xff] }
 0x2c1   :  { %v2073_v60 = vadd.f32 %v6878_v0, %v9038_v32  ;;  %v9061_v46 = vadd.f32 %v6921_v53, %v2070_v52  ;;  %v8268_v52 = vld [vmem:[#allocation2 + $0x18] sm:$0xff] }
 0x2c3   :  { %v6879_v2 = vpop.f32.mrb[76].mxu1  ;;  %v6925_v17 = vpop.f32.mrb[96].mxu0  ;;  %v9063_v8 = vadd.f32 %v6924_v47, %v2073_v60 }
 0x2c4   :  { %v6880_v31 = vpop.f32.mrb[77].mxu1  ;;  %v6926_v14 = vpop.f32.mrb[97].mxu0 }
 0x2c5   :  { %v6881_v15 = vadd.f32 %v6880_v31, %v6879_v2  ;;  %v6927_v20 = vadd.f32 %v6926_v14, %v6925_v17  ;;  %v6882_v48 = vpop.f32.mrb[78].mxu1  ;;  %v6928_v19 = vpop.f32.mrb[98].mxu0 }
 0x2c6   :  { %v6883_v25 = vpop.f32.mrb[79].mxu1  ;;  %v6929_v22 = vpop.f32.mrb[99].mxu0 }
 0x2c7   :  { %v2078_v27 = vadd.f32 %v6881_v15, %v9041_v39 }
 0x2c9   :  { %v9066_v56 = vadd.f32 %v6927_v20, %v2078_v27 }
 0x2cb   :  { %v2189_v30 = vpop.f32.mrb[80].mxu1 }
 0x2cc   :  { %v2190_v32 = vadd.f32 %v2189_v30, %v9045_v28  ;;  %v7623_v26 = vpop.f32.mrb[81].mxu1 }
 0x2cd   :  { %v2192_v13 = vpop.f32.mrb[82].mxu1 }
 0x2ce   :  { %v2227_v21 = vmax.f32 %v2190_v32, 0.0  ;;  %v2193_v4 = vadd.f32 %v2192_v13, %v9047_v62  ;;  %v7624_v34 = vpop.f32.mrb[83].mxu1 }
 0x2cf   :  { %v9233_v34 = vld [vmem:[#allocation2 + $0x38] sm:$0xff] }
 0x2d0   :  { %v9071_v35 = vmul.f32 %v2227_v21, %v8811_v3  ;;  %v2228_v57 = vmax.f32 %v2193_v4, 0.0  ;;  %10683 = vst [vmem:[#allocation17_spill] sm:$0xff] %v9233_v34 }
 0x2d2   :  { %v9074_v44 = vmul.f32 %v2228_v57, %v8809_v1  ;;  %v10653_v39 = vrot.slane %v9071_v35, 7  ;;  %v10652_v36 = vrot.slane %v9071_v35, 6  ;;  %v10651_v3 = vrot.slane %v9071_v35, 1 }
 0x2d3   :  { %v2197_v16 = vpop.f32.mrb[84].mxu1  ;;  %v10650_v43 = vrot.slane %v9071_v35, 2  ;;  %v10685_v5 = vrot.slane %v9071_v35, 7 }
 0x2d4   :  { %v2198_v38 = vadd.f32 %v2197_v16, %v2126_v42  ;;  %v7627_v28 = vpop.f32.mrb[85].mxu1  ;;  %v2269_v40 = vrot.slane %v9074_v44, 7  ;;  %v2246_v63 = vrot.slane %v9074_v44, 6  ;;  %v2307_v62 = vrot.slane %v9074_v44, 1 }
 0x2d5   :  { %v2200_v41 = vpop.f32.mrb[86].mxu1  ;;  %v2337_v7 = vrot.slane %v9074_v44, 2  ;;  %v8269_v28 = vld [vmem:[#allocation2 + $0x20] sm:$0xff] }
 0x2d6   :  { %v2229_v49 = vmax.f32 %v2198_v38, 0.0  ;;  %v2201_v42 = vadd.f32 %v2200_v41, %v9051_v45  ;;  %v7628_v51 = vpop.f32.mrb[87].mxu1  ;;  %v9091_v50 = vsel %vm127_vm0, %v10653_v39, %v2269_v40  ;;  %v9097_v53 = vsel %vm103_vm1, %v10652_v36, %v2246_v63 }
 0x2d7   :  { %v9103_v58 = vsel %vm166_vm3, %v10651_v3, %v2307_v62  ;;  %v9109_v45 = vsel %vm197_vm2, %v10650_v43, %v2337_v7  ;;  %v9283_v43 = vld [vmem:[#allocation2 + $0x40] sm:$0xff] }
 0x2d8   :  { %v9111_v6 = vmul.f32 %v8267_v59, %v2229_v49  ;;  %v2230_v61 = vmax.f32 %v2201_v42, 0.0  ;;  %v8270_v42 = vld [vmem:[#allocation2 + $0x28] sm:$0xff]  ;;  %10684 = vst [vmem:[#allocation18_spill] sm:$0xff] %v9283_v43 }
 0x2da   :  { %v9113_v0 = vmul.f32 %v8268_v52, %v2230_v61  ;;  %v2270_v47 = vrot.slane %v9111_v6, 7  ;;  %v2247_v60 = vrot.slane %v9111_v6, 6  ;;  %v9119_v2 = vpack.c.bf16 %v9111_v6, %v9074_v44 }
 0x2db   :  { %v2205_v17 = vpop.f32.mrb[88].mxu1  ;;  %v2308_v31 = vrot.slane %v9111_v6, 1  ;;  %v2338_v14 = vrot.slane %v9111_v6, 2 }
 0x2dc   :  { %v2206_v15 = vadd.f32 %v2205_v17, %v9055_v55  ;;  %v7631_v20 = vpop.f32.mrb[89].mxu1  ;;  %v9126_v48 = vsel %vm127_vm0, %v2269_v40, %v2270_v47  ;;  %v2271_v19 = vrot.slane %v9113_v0, 7  ;;  %v9131_v25 = vsel %vm103_vm1, %v2246_v63, %v2247_v60 }
 0x2dd   :  { %v2208_v22 = vpop.f32.mrb[90].mxu1  ;;  %v2248_v55 = vrot.slane %v9113_v0, 6  ;;  %v9140_v32 = vsel %vm166_vm3, %v2307_v62, %v2308_v31  ;;  %v2309_v38 = vrot.slane %v9113_v0, 1  ;;  %v2339_v62 = vrot.slane %v9113_v0, 2 }
 0x2de   :  { %v2231_v26 = vmax.f32 %v2206_v15, 0.0  ;;  %v2209_v13 = vadd.f32 %v2208_v22, %v9057_v23  ;;  %v7632_v21 = vpop.f32.mrb[91].mxu1  ;;  %v9145_v4 = vsel %vm127_vm0, %v2270_v47, %v2271_v19  ;;  %v9163_v41 = vsel %vm197_vm2, %v2337_v7, %v2338_v14 }
 0x2df   :  { %v9153_v16 = vsel %vm103_vm1, %v2247_v60, %v2248_v55  ;;  %v9167_v49 = vsel %vm166_vm3, %v2308_v31, %v2309_v38  ;;  %v9182_v17 = vsel %vm197_vm2, %v2338_v14, %v2339_v62 }
 0x2e0   :  { %v9158_v40 = vmul.f32 %v8269_v28, %v2231_v26  ;;  %v2232_v63 = vmax.f32 %v2209_v13, 0.0 }
 0x2e2   :  { %v9169_v51 = vmul.f32 %v8270_v42, %v2232_v63  ;;  %v2272_v59 = vrot.slane %v9158_v40, 7  ;;  %v2249_v61 = vrot.slane %v9158_v40, 6  ;;  %v9175_v52 = vpack.c.bf16 %v9158_v40, %v9113_v0 }
 0x2e3   :  { %v2213_v47 = vpop.f32.mrb[92].mxu1  ;;  %v2310_v60 = vrot.slane %v9158_v40, 1  ;;  %v2340_v31 = vrot.slane %v9158_v40, 2 }
 0x2e4   :  { %v2214_v15 = vadd.f32 %v2213_v47, %v9061_v46  ;;  %v7635_v20 = vpop.f32.mrb[93].mxu1  ;;  %v9188_v22 = vsel %vm127_vm0, %v2271_v19, %v2272_v59  ;;  %v2273_v26 = vrot.slane %v9169_v51, 7  ;;  %v9193_v13 = vsel %vm103_vm1, %v2248_v55, %v2249_v61 }
 0x2e5   :  { %v2216_v21 = vpop.f32.mrb[94].mxu1  ;;  %v2250_v46 = vrot.slane %v9169_v51, 6  ;;  %v9202_v63 = vsel %vm166_vm3, %v2309_v38, %v2310_v60  ;;  %v2311_v38 = vrot.slane %v9169_v51, 1  ;;  %v2341_v20 = vrot.slane %v9169_v51, 2 }
 0x2e6   :  { %v2233_v19 = vmax.f32 %v2214_v15, 0.0  ;;  %v2217_v42 = vadd.f32 %v2216_v21, %v9063_v8  ;;  %v7636_v47 = vpop.f32.mrb[95].mxu1  ;;  %v9207_v55 = vsel %vm127_vm0, %v2272_v59, %v2273_v26  ;;  %v8271_v15 = vld [vmem:[#allocation2 + $0x30] sm:$0xff] }
 0x2e7   :  { %v9215_v1 = vsel %vm103_vm1, %v2249_v61, %v2250_v46  ;;  %v9227_v7 = vsel %vm166_vm3, %v2310_v60, %v2311_v38  ;;  %v9231_v61 = vsel %vm197_vm2, %v2339_v62, %v2340_v31  ;;  %v9249_v54 = vsel %vm197_vm2, %v2340_v31, %v2341_v20 }
 0x2e8   :  { %v9220_v21 = vmul.f32 %v8271_v15, %v2233_v19  ;;  %v2234_v59 = vmax.f32 %v2217_v42, 0.0 }
 0x2ea   :  { %v9236_v8 = vmul.f32 %v9233_v34, %v2234_v59  ;;  %v2274_v19 = vrot.slane %v9220_v21, 7  ;;  %v2251_v42 = vrot.slane %v9220_v21, 6  ;;  %v9242_v15 = vpack.c.bf16 %v9220_v21, %v9169_v51 }
 0x2eb   :  { %v2221_v47 = vpop.f32.mrb[96].mxu1  ;;  %v2312_v62 = vrot.slane %v9220_v21, 1  ;;  %v2342_v31 = vrot.slane %v9220_v21, 2  ;;  %v10686_v34 = vrot.slane %v9071_v35, 6 }
 0x2ec   :  { %v2222_v59 = vadd.f32 %v2221_v47, %v9066_v56  ;;  %v7639_v28 = vpop.f32.mrb[97].mxu1  ;;  %v2275_v23 = vrot.slane %v9236_v8, 7  ;;  %v2252_v14 = vrot.slane %v9236_v8, 6  ;;  %v9256_v30 = vsel %vm127_vm0, %v2273_v26, %v2274_v19 }
 0x2ed   :  { %v2224_v57 = vpop.f32.mrb[98].mxu1  ;;  %v9262_v27 = vsel %vm103_vm1, %v2250_v46, %v2251_v42  ;;  %v9266_v56 = vsel %vm166_vm3, %v2311_v38, %v2312_v62  ;;  %v9296_v46 = vsel %vm197_vm2, %v2341_v20, %v2342_v31 }
 0x2ee   :  { %v2235_v28 = vmax.f32 %v2222_v59, 0.0  ;;  %v7640_v47 = vpop.f32.mrb[99].mxu1  ;;  %v9271_v26 = vsel %vm127_vm0, %v2274_v19, %v2275_v23  ;;  %v9277_v60 = vsel %vm103_vm1, %v2251_v42, %v2252_v14  ;;  %v2313_v19 = vrot.slane %v9236_v8, 1 }
 0x2ef   :  { %v2343_v57 = vrot.slane %v9236_v8, 2 }
 0x2f0   :  { %v9286_v59 = vmul.f32 %v9283_v43, %v2235_v28  ;;  %v9304_v36 = vsel %vm166_vm3, %v2312_v62, %v2313_v19 }
 0x2f2   :  { %v2276_v38 = vrot.slane %v9286_v59, 7  ;;  %v2253_v3 = vrot.slane %v9286_v59, 6  ;;  %v2291_v28 = vpack.c.bf16 %v9071_v35, %v9286_v59  ;;  %v2314_v47 = vrot.slane %v9286_v59, 1 }
 0x2f4   :  { %v9313_v39 = vsel %vm127_vm0, %v2275_v23, %v2276_v38  ;;  %v2285_v43 = vsel %vm127_vm0, %v2276_v38, %v10685_v5  ;;  %v2254_v62 = vsel %vm103_vm1, %v2252_v14, %v2253_v3  ;;  %v2262_v42 = vsel %vm103_vm1, %v2253_v3, %v10686_v34  ;;  %v8082_v23 = vld [vmem:[#allocation5 + $0x580] sm:$0xff]   ;;  %v8089_v38 = vld [vmem:[#allocation5 + $0x648] sm:$0xff]  }
 0x2f5   :  { %v2286_v33 = vpack.c.bf16 %v2285_v43, %v9313_v39  ;;  %v2296_v20 = vpack.c.bf16 %v9091_v50, %v2285_v43  ;;  %v2263_v10 = vpack.c.bf16 %v2262_v42, %v2254_v62  ;;  %v9329_v24 = vsel %vm166_vm3, %v2313_v19, %v2314_v47  ;;  %v8083_v43 = vld [vmem:[#allocation5 + $0x5c8] sm:$0xff]  }
 0x2f6   :  { %v10687_v5 = vrot.slane %v9071_v35, 1  ;;  %v9339_v3 = vsel %vm197_vm2, %v2342_v31, %v2343_v57  ;;  %v2344_v34 = vrot.slane %v9286_v59, 2  ;;  %v2327_v19 = vpack.c.bf16 %v9329_v24, %v9304_v36 }
 0x2f7   :  { %2973 = vmatprep.mubr.bf16.mxu0 %v2286_v33  ;;  %3045 = vmatprep.mubr.bf16.mxu1 %v2296_v20  ;;  %v10688_v33 = vrot.slane %v9071_v35, 2  ;;  %v10689_v62 = vpack.c.bf16 %v9126_v48, %v9091_v50  ;;  %v8094_v50 = vld [vmem:[#allocation5 + $0x610] sm:$0xff]  }
 0x2f8   :  { %v9335_v14 = vsel %vm166_vm3, %v2314_v47, %v10687_v5  ;;  %2974 = vmatmul.mubr.bf16.vlgmr.msra.gmra.mrb[100].mxu0 %v2263_v10  ;;  %3046 = vmatmul.mubr.bf16.vlgmr.msra.gmra.mrb[100].mxu1 %v2291_v28  ;;  %v9350_v31 = vsel %vm197_vm2, %v2343_v57, %v2344_v34  ;;  %v10690_v10 = vpack.c.bf16 %v9145_v4, %v9126_v48  ;;  %v8084_v57 = vld [vmem:[#allocation5 + $0x588] sm:$0xff]   ;;  %v8087_v47 = vld [vmem:[#allocation5 + $0x5d0] sm:$0xff]   ;;  %v8096_v48 = vld [vmem:[#allocation5 + $0x658] sm:$0xff]  }
 0x2f9   :  { %v2334_v42 = vpack.c.bf16 %v9335_v14, %v9329_v24  ;;  %v9356_v20 = vsel %vm197_vm2, %v2344_v34, %v10688_v33  ;;  %2981 = vmatprep.mubr.bf16.mxu0 %v10689_v62  ;;  %7037 = vmatpush3.bf16.msra.mxu0 %v8082_v23  ;;  %v8090_v5 = vld [vmem:[#allocation5 + $0x608] sm:$0xff]   ;;  %v8093_v34 = vld [vmem:[#allocation5 + $0x650] sm:$0xff]   ;;  %v8091_v62 = vld [vmem:[#allocation5 + $0x5d8] sm:$0xff]   ;;  %v10693_v23 = vpack.c.bf16 %v9207_v55, %v9188_v22 }
 0x2fa   :  { %3053 = vmatprep.mubr.bf16.mxu1 %v10690_v10  ;;  %v2357_v28 = vpack.c.bf16 %v9356_v20, %v9350_v31  ;;  %7083 = vmatpush3.bf16.msra.mxu1 %v8086_v18  ;;  %v8088_v33 = vld [vmem:[#allocation5 + $0x590] sm:$0xff]   ;;  %v10691_v10 = vpack.c.bf16 %v9131_v25, %v9097_v53  ;;  %v10692_v18 = vpack.c.bf16 %v9188_v22, %v9145_v4  ;;  %v8097_v53 = vld [vmem:[#allocation5 + $0x5a0] sm:$0xff]   ;;  %v8100_v4 = vld [vmem:[#allocation5 + $0x5e8] sm:$0xff]  }
 0x2fb   :  { %7038 = vmatprep.subr.bf16.mxu0 %v8083_v43  ;;  %7084 = vmatprep.subr.bf16.mxu1 %v8089_v38  ;;  %v8092_v43 = vld [vmem:[#allocation5 + $0x598] sm:$0xff]   ;;  %v8101_v25 = vld [vmem:[#allocation5 + $0x620] sm:$0xff]   ;;  %v10694_v22 = vpack.c.bf16 %v9193_v13, %v9153_v16  ;;  %v8106_v16 = vld [vmem:[#allocation5 + $0x5b0] sm:$0xff]   ;;  %v10709_v24 = vpack.c.bf16 %v9286_v59, %v9236_v8 }
 0x2fc   :  { %v8098_v38 = vld [vmem:[#allocation5 + $0x618] sm:$0xff]   ;;  %v8108_v13 = vld [vmem:[#allocation5 + $0x630] sm:$0xff]  }
 0x2fd   :  { %7039 = vmatpush3.bf16.msra.mxu0 %v8084_v57  ;;  %v8099_v57 = vld [vmem:[#allocation5 + $0x660] sm:$0xff]   ;;  %v8131_v31 = vld [vmem:[#allocation5 + $0x718] sm:$0xff]  }
 0x2fe   :  { %7085 = vmatpush3.bf16.msra.mxu1 %v8090_v5  ;;  %7040 = vmatprep.subr.bf16.mxu0 %v8087_v47  ;;  %v8095_v47 = vld [vmem:[#allocation5 + $0x5e0] sm:$0xff]   ;;  %v8103_v5 = vld [vmem:[#allocation5 + $0x668] sm:$0xff]   ;;  %v8132_v20 = vld [vmem:[#allocation5 + $0x6d8] sm:$0xff]  }
 0x2ff   :  { %7086 = vmatprep.subr.bf16.mxu1 %v8093_v34  ;;  %v10695_v34 = vpack.c.bf16 %v9256_v30, %v9207_v55  ;;  %v2290_v55 = vpack.c.bf16 %v9271_v26, %v9271_v26 }
 0x300   :  { %2982 = vmatmul.mubr.bf16.gmra.mrb[104].mxu0 %v10691_v10  ;;  %3054 = vmatmul.mubr.bf16.gmra.mrb[104].mxu1 %v9119_v2  ;;  %v8107_v10 = vld [vmem:[#allocation5 + $0x670] sm:$0xff]  }
 0x301   :  { %2989 = vmatprep.mubr.bf16.mxu0 %v10692_v18  ;;  %3061 = vmatprep.mubr.bf16.mxu1 %v10693_v23  ;;  %v2300_v18 = vpack.c.bf16 %v9313_v39, %v9313_v39  ;;  %v8111_v23 = vld [vmem:[#allocation5 + $0x678] sm:$0xff]   ;;  %v2267_v39 = vpack.c.bf16 %v9277_v60, %v9277_v60  ;;  %v10701_v60 = vpack.c.bf16 %v9074_v44, %v9071_v35 }
 0x302   :  { %7041 = vmatpush3.bf16.msra.mxu0 %v8088_v33  ;;  %7087 = vmatpush3.bf16.msra.mxu1 %v8094_v50  ;;  %v10696_v33 = vpack.c.bf16 %v9271_v26, %v9256_v30  ;;  %v8102_v50 = vld [vmem:[#allocation5 + $0x5a8] sm:$0xff]   ;;  %v8109_v30 = vld [vmem:[#allocation5 + $0x5f8] sm:$0xff]   ;;  %v2295_v26 = vpack.c.bf16 %v9236_v8, %v9236_v8  ;;  %v10704_v44 = vpack.c.bf16 %v9113_v0, %v9111_v6 }
 0x303   :  { %7042 = vmatprep.subr.bf16.mxu0 %v8091_v62  ;;  %7088 = vmatprep.subr.bf16.mxu1 %v8096_v48  ;;  %v8104_v62 = vld [vmem:[#allocation5 + $0x628] sm:$0xff]   ;;  %v8105_v48 = vld [vmem:[#allocation5 + $0x5f0] sm:$0xff]   ;;  %v10707_v6 = vpack.c.bf16 %v9169_v51, %v9158_v40  ;;  %v2328_v40 = vpack.c.bf16 %v9335_v14, %v9335_v14  ;;  %v2335_v51 = vpack.c.bf16 %v9103_v58, %v9103_v58 }
 0x304   :  { %v8118_v0 = vld [vmem:[#allocation5 + $0x6a8] sm:$0xff]   ;;  %v8127_v14 = vld [vmem:[#allocation5 + $0x710] sm:$0xff]  }
 0x306   :  { %7043 = vmatpush3.bf16.msra.mxu0 %v8092_v43  ;;  %7089 = vmatpush3.bf16.msra.mxu1 %v8098_v38  ;;  %v10697_v43 = vpack.c.bf16 %v9262_v27, %v9215_v1  ;;  %v8110_v38 = vld [vmem:[#allocation5 + $0x5b8] sm:$0xff]   ;;  %v10698_v1 = vmov 0.0   ;;  %v10699_v27 = vpack.c.bf16 %v9140_v32, %v9103_v58  ;;  %v2330_v58 = vpack.c.bf16 %v9071_v35, %v9071_v35 }
 0x307   :  { %7044 = vmatprep.subr.bf16.mxu0 %v8095_v47  ;;  %7090 = vmatprep.subr.bf16.mxu1 %v8099_v57  ;;  %v8112_v47 = vld [vmem:[#allocation5 + $0x638] sm:$0xff]   ;;  %v10700_v57 = vpack.c.bf16 %v9167_v49, %v9140_v32  ;;  %v8115_v32 = vld [vmem:[#allocation5 + $0x690] sm:$0xff]   ;;  %v10712_v35 = vpack.c.bf16 %v9339_v3, %v9296_v46  ;;  %v8125_v46 = vld [vmem:[#allocation5 + $0x780] sm:$0xff]  }
 0x308   :  { %2990 = vmatmul.mubr.bf16.gmra.mrb[108].mxu0 %v10694_v22  ;;  %3062 = vmatmul.mubr.bf16.gmra.mrb[108].mxu1 %v9175_v52  ;;  %v8117_v22 = vld [vmem:[#allocation5 + $0x6a0] sm:$0xff]   ;;  %v8128_v3 = vld [vmem:[#allocation5 + $0x6d0] sm:$0xff]  }
 0x309   :  { %2997 = vmatprep.mubr.bf16.mxu0 %v10695_v34  ;;  %3069 = vmatprep.mubr.bf16.mxu1 %v10696_v33  ;;  %v8135_v34 = vld [vmem:[#allocation5 + $0x720] sm:$0xff]   ;;  %v8136_v33 = vld [vmem:[#allocation5 + $0x798] sm:$0xff]  }
 0x30a   :  { %7045 = vmatpush3.bf16.msra.mxu0 %v8097_v53  ;;  %7091 = vmatpush3.bf16.msra.mxu1 %v8101_v25  ;;  %v8113_v53 = vld [vmem:[#allocation5 + $0x680] sm:$0xff]   ;;  %v10702_v25 = vpack.c.bf16 %v9202_v63, %v9167_v49  ;;  %v10706_v49 = vpack.c.bf16 %v9304_v36, %v9266_v56  ;;  %v10708_v36 = vpack.c.bf16 %v9236_v8, %v9220_v21 }
 0x30b   :  { %7046 = vmatprep.subr.bf16.mxu0 %v8100_v4  ;;  %7092 = vmatprep.subr.bf16.mxu1 %v8103_v5  ;;  %v10703_v4 = vpack.c.bf16 %v9227_v7, %v9202_v63  ;;  %v8114_v5 = vld [vmem:[#allocation5 + $0x688] sm:$0xff]   ;;  %v8116_v63 = vld [vmem:[#allocation5 + $0x698] sm:$0xff]   ;;  %v10710_v8 = vpack.c.bf16 %v9182_v17, %v9163_v41  ;;  %v10711_v21 = vpack.c.bf16 %v9249_v54, %v9231_v61  ;;  %v8121_v41 = vld [vmem:[#allocation5 + $0x700] sm:$0xff]  }
 0x30c   :  { %v2358_v54 = vpack.c.bf16 %v9109_v45, %v9109_v45  ;;  %v8122_v17 = vld [vmem:[#allocation5 + $0x6c0] sm:$0xff]   ;;  %v8123_v61 = vld [vmem:[#allocation5 + $0x708] sm:$0xff]   ;;  %v8133_v45 = vld [vmem:[#allocation5 + $0x790] sm:$0xff]  }
 0x30e   :  { %7047 = vmatpush3.bf16.msra.mxu0 %v8102_v50  ;;  %7093 = vmatpush3.bf16.msra.mxu1 %v8104_v62  ;;  %v8137_v50 = vld [vmem:[#allocation5 + $0x6e0] sm:$0xff]   ;;  %v8138_v62 = vld [vmem:[#allocation5 + $0x758] sm:$0xff]  }
 0x30f   :  { %7048 = vmatprep.subr.bf16.mxu0 %v8105_v48  ;;  %7094 = vmatprep.subr.bf16.mxu1 %v8107_v10  ;;  %v8139_v48 = vld [vmem:[#allocation5 + $0x7a0] sm:$0xff]   ;;  %v8140_v10 = vld [vmem:[#allocation5 + $0x728] sm:$0xff]  }
 0x310   :  { %2998 = vmatmul.mubr.bf16.gmra.mrb[112].mxu0 %v10697_v43  ;;  %3070 = vmatmul.mubr.bf16.gmra.mrb[112].mxu1 %v9242_v15  ;;  %v8147_v43 = vld [vmem:[#allocation5 + $0x7b0] sm:$0xff]  }
 0x311   :  { %3005 = vmatprep.mubr.bf16.mxu0 %v2290_v55  ;;  %3077 = vmatprep.mubr.bf16.mxu1 %v2300_v18  ;;  %v8143_v55 = vld [vmem:[#allocation5 + $0x7a8] sm:$0xff]   ;;  %v8145_v18 = vld [vmem:[#allocation5 + $0x730] sm:$0xff]  }
 0x312   :  { %7049 = vmatpush3.bf16.msra.mxu0 %v8106_v16  ;;  %7095 = vmatpush3.bf16.msra.mxu1 %v8108_v13  ;;  %v8141_v16 = vld [vmem:[#allocation5 + $0x760] sm:$0xff]   ;;  %v8142_v13 = vld [vmem:[#allocation5 + $0x6e8] sm:$0xff]  }
 0x313   :  { %7050 = vmatprep.subr.bf16.mxu0 %v8109_v30  ;;  %7096 = vmatprep.subr.bf16.mxu1 %v8111_v23  ;;  %v8144_v30 = vld [vmem:[#allocation5 + $0x768] sm:$0xff]   ;;  %v8146_v23 = vld [vmem:[#allocation5 + $0x6f0] sm:$0xff]  }
 0x316   :  { %7051 = vmatpush3.bf16.msra.mxu0 %v8110_v38  ;;  %7097 = vmatpush3.bf16.msra.mxu1 %v8112_v47  ;;  %v8149_v38 = vld [vmem:[#allocation5 + $0x738] sm:$0xff]   ;;  %v8148_v47 = vld [vmem:[#allocation5 + $0x770] sm:$0xff]  }
 0x317   :  { %7641 = vmatprep.subr.bf16.mxu0 %v10698_v1  ;;  %7141 = vmatprep.subr.bf16.mxu1 %v8121_v41 }
 0x318   :  { %3006 = vmatmul.mubr.bf16.gmra.mrb[116].mxu0 %v2267_v39  ;;  %3078 = vmatmul.mubr.bf16.gmra.mrb[116].mxu1 %v2295_v26  ;;  %v8150_v39 = vld [vmem:[#allocation5 + $0x6f8] sm:$0xff]  }
 0x319   :  { %3117 = vmatprep.mubr.bf16.mxu0 %v10699_v27  ;;  %3189 = vmatprep.mubr.bf16.mxu1 %v10700_v57  ;;  %v8151_v26 = vld [vmem:[#allocation5 + $0x7b8] sm:$0xff]   ;;  %v8153_v27 = vld [vmem:[#allocation5 + $0x800] sm:$0xff]  }
 0x320   :  { %3118 = vmatmul.mubr.bf16.vlgmr.msra.gmra.mrb[120].mxu0 %v10701_v60  ;;  %3190 = vmatmul.mubr.bf16.vlgmr.msra.gmra.mrb[120].mxu1 %v9119_v2  ;;  %v10705_v2 = vpack.c.bf16 %v9266_v56, %v9227_v7  ;;  %v8120_v7 = vld [vmem:[#allocation5 + $0x6b8] sm:$0xff]   ;;  %v8124_v56 = vld [vmem:[#allocation5 + $0x6c8] sm:$0xff]   ;;  %v9480_v60 = vld [vmem:[#allocation7 + $0x2] ss:$0 sm:$0xff] }
 0x321   :  { %3125 = vmatprep.mubr.bf16.mxu0 %v10702_v25  ;;  %3197 = vmatprep.mubr.bf16.mxu1 %v10703_v4 }
 0x322   :  { %7642 = vmatpush3.bf16.msra.mxu0 %v8113_v53  ;;  %7142 = vmatpush3.bf16.msra.mxu1 %v8122_v17 }
 0x323   :  { %7643 = vmatprep.subr.bf16.mxu0 %v10698_v1  ;;  %7143 = vmatprep.subr.bf16.mxu1 %v8123_v61 }
 0x326   :  { %7644 = vmatpush3.bf16.msra.mxu0 %v8114_v5  ;;  %7144 = vmatpush3.bf16.msra.mxu1 %v8124_v56  ;;  %v8152_v5 = vld [vmem:[#allocation5 + $0x778] sm:$0xff]  }
 0x327   :  { %7645 = vmatprep.subr.bf16.mxu0 %v10698_v1  ;;  %7145 = vmatprep.subr.bf16.mxu1 %v8127_v14 }
 0x328   :  { %3126 = vmatmul.mubr.bf16.gmra.mrb[124].mxu0 %v10704_v44  ;;  %3198 = vmatmul.mubr.bf16.gmra.mrb[124].mxu1 %v9175_v52  ;;  %v8119_v52 = vld [vmem:[#allocation5 + $0x6b0] sm:$0xff]  }
 0x329   :  { %3133 = vmatprep.mubr.bf16.mxu0 %v10705_v2  ;;  %3205 = vmatprep.mubr.bf16.mxu1 %v10706_v49 }
 0x32a   :  { %7646 = vmatpush3.bf16.msra.mxu0 %v8115_v32  ;;  %7146 = vmatpush3.bf16.msra.mxu1 %v8128_v3 }
 0x32b   :  { %7647 = vmatprep.subr.bf16.mxu0 %v10698_v1  ;;  %7147 = vmatprep.subr.bf16.mxu1 %v8131_v31 }
 0x32e   :  { %7648 = vmatpush3.bf16.msra.mxu0 %v8116_v63  ;;  %7148 = vmatpush3.bf16.msra.mxu1 %v8132_v20 }
 0x32f   :  { %7649 = vmatprep.subr.bf16.mxu0 %v10698_v1  ;;  %7149 = vmatprep.subr.bf16.mxu1 %v8135_v34 }
 0x330   :  { %3134 = vmatmul.mubr.bf16.gmra.mrb[128].mxu0 %v10707_v6  ;;  %3206 = vmatmul.mubr.bf16.gmra.mrb[128].mxu1 %v9242_v15  ;;  %v2305_v15 = vpack.c.bf16 %v9286_v59, %v9286_v59  ;;  %v8126_v59 = vld [vmem:[#allocation5 + $0x740] sm:$0xff]  }
 0x331   :  { %3141 = vmatprep.mubr.bf16.mxu0 %v2327_v19  ;;  %3213 = vmatprep.mubr.bf16.mxu1 %v2334_v42  ;;  %v8129_v19 = vld [vmem:[#allocation5 + $0x788] sm:$0xff]  }
 0x332   :  { %7650 = vmatpush3.bf16.msra.mxu0 %v8117_v22  ;;  %v8130_v42 = vld [vmem:[#allocation5 + $0x748] sm:$0xff]   ;;  %7150 = vmatpush3.bf16.msra.mxu1 %v8137_v50 }
 0x333   :  { %7651 = vmatprep.subr.bf16.mxu0 %v10698_v1  ;;  %7151 = vmatprep.subr.bf16.mxu1 %v8140_v10 }
 0x336   :  { %7652 = vmatpush3.bf16.msra.mxu0 %v8118_v0  ;;  %7152 = vmatpush3.bf16.msra.mxu1 %v8142_v13 }
 0x337   :  { %7653 = vmatprep.subr.bf16.mxu0 %v10698_v1  ;;  %7153 = vmatprep.subr.bf16.mxu1 %v8145_v18 }
 0x338   :  { %3142 = vmatmul.mubr.bf16.gmra.mrb[132].mxu0 %v10708_v36  ;;  %3214 = vmatmul.mubr.bf16.gmra.mrb[132].mxu1 %v10709_v24  ;;  %v8157_v36 = vld [vmem:[#allocation5 + $0x880] sm:$0xff]  }
 0x339   :  { %3149 = vmatprep.mubr.bf16.mxu0 %v2328_v40  ;;  %3221 = vmatprep.mubr.bf16.mxu1 %v2335_v51 }
 0x33a   :  { %7654 = vmatpush3.bf16.msra.mxu0 %v8119_v52  ;;  %7154 = vmatpush3.bf16.msra.mxu1 %v8146_v23 }
 0x33b   :  { %7655 = vmatprep.subr.bf16.mxu0 %v10698_v1  ;;  %7155 = vmatprep.subr.bf16.mxu1 %v8149_v38 }
 0x33e   :  { %7656 = vmatpush3.bf16.msra.mxu0 %v8120_v7  ;;  %7156 = vmatpush3.bf16.msra.mxu1 %v8150_v39 }
 0x33f   :  { %7187 = vmatprep.subr.bf16.mxu0 %v8125_v46  ;;  %7233 = vmatprep.subr.bf16.mxu1 %v8153_v27 }
 0x340   :  { %3150 = vmatmul.mubr.bf16.gmra.mrb[136].mxu0 %v2305_v15  ;;  %3222 = vmatmul.mubr.bf16.gmra.mrb[136].mxu1 %v2330_v58 }
 0x341   :  { %7657 = vmatprep.mubr.msk.bf16.mxu0 %vm8392_vm4, %v10698_v1 }
 0x348   :  { %7658 = vmatmul.mubr.bf16.vlgmr.msra.gmra.mrb[140].mxu0 %v10710_v8 }
 0x349   :  { %7661 = vmatprep.mubr.msk.bf16.mxu0 %vm8392_vm4, %v10698_v1  ;;  %7188 = vmatpush3.bf16.msra.mxu0 %v8126_v59 }
 0x34a   :  { %7189 = vmatprep.subr.bf16.mxu0 %v8129_v19 }
 0x34d   :  { %7190 = vmatpush3.bf16.msra.mxu0 %v8130_v42 }
 0x34e   :  { %7191 = vmatprep.subr.bf16.mxu0 %v8133_v45 }
 0x350   :  { %7662 = vmatmul.mubr.bf16.gmra.mrb[144].mxu0 %v10711_v21 }
 0x351   :  { %7665 = vmatprep.mubr.msk.bf16.mxu0 %vm8392_vm4, %v10698_v1 }
 0x358   :  { %7666 = vmatmul.mubr.bf16.gmra.mrb[148].mxu0 %v10712_v35 }
 0x359   :  { %7669 = vmatprep.mubr.msk.bf16.mxu0 %vm8392_vm4, %v10698_v1 }
 0x360   :  { %7670 = vmatmul.mubr.bf16.gmra.mrb[152].mxu0 %v2357_v28  ;;  %v8134_v28 = vld [vmem:[#allocation5 + $0x750] sm:$0xff]  }
 0x361   :  { %7673 = vmatprep.mubr.msk.bf16.mxu0 %vm8392_vm4, %v10698_v1  ;;  %7192 = vmatpush3.bf16.msra.mxu0 %v8134_v28 }
 0x362   :  { %7193 = vmatprep.subr.bf16.mxu0 %v8136_v33 }
 0x365   :  { %7194 = vmatpush3.bf16.msra.mxu0 %v8138_v62 }
 0x366   :  { %7195 = vmatprep.subr.bf16.mxu0 %v8139_v48 }
 0x368   :  { %7674 = vmatmul.mubr.bf16.gmra.mrb[156].mxu0 %v2358_v54 }
 0x369   :  { %7196 = vmatpush3.bf16.msra.mxu0 %v8141_v16 }
 0x36a   :  { %7197 = vmatprep.subr.bf16.mxu0 %v8143_v55 }
 0x36d   :  { %7198 = vmatpush3.bf16.msra.mxu0 %v8144_v30 }
 0x36e   :  { %7199 = vmatprep.subr.bf16.mxu0 %v8147_v43 }
 0x371   :  { %7200 = vmatpush3.bf16.msra.mxu0 %v8148_v47 }
 0x372   :  { %7201 = vmatprep.subr.bf16.mxu0 %v8151_v26 }
 0x375   :  { %7202 = vmatpush3.bf16.msra.mxu0 %v8152_v5 }
 0x376   :  { %7279 = vmatprep.subr.bf16.mxu0 %v8157_v36 }
 0x3cb   :  { %v6960_v57 = vpop.f32.mrb[100].mxu0  ;;  %v7006_v53 = vpop.f32.mrb[100].mxu1 }
 0x3cc   :  { %v6961_v25 = vpop.f32.mrb[101].mxu0  ;;  %v7007_v4 = vpop.f32.mrb[101].mxu1 }
 0x3cd   :  { %v6962_v32 = vadd.f32 %v6961_v25, %v6960_v57  ;;  %v7008_v44 = vadd.f32 %v7007_v4, %v7006_v53  ;;  %v6963_v2 = vpop.f32.mrb[102].mxu0  ;;  %v7009_v49 = vpop.f32.mrb[102].mxu1 }
 0x3ce   :  { %v6964_v63 = vpop.f32.mrb[103].mxu0  ;;  %v7010_v22 = vpop.f32.mrb[103].mxu1 }
 0x3cf   :  { %v2976_v6 = vadd.f32 %v6962_v32, %v9480_v60  ;;  %v6965_v0 = vadd.f32 %v6964_v63, %v6963_v2  ;;  %v7011_v52 = vadd.f32 %v7010_v22, %v7009_v49 }
 0x3d1   :  { %v9483_v40 = vadd.f32 %v7008_v44, %v2976_v6  ;;  %v2979_v51 = vadd.f32 %v6965_v0, %v9480_v60 }
 0x3d3   :  { %v9486_v24 = vadd.f32 %v7011_v52, %v2979_v51  ;;  %v6966_v7 = vpop.f32.mrb[104].mxu0  ;;  %v7012_v15 = vpop.f32.mrb[104].mxu1 }
 0x3d4   :  { %v6967_v58 = vpop.f32.mrb[105].mxu0  ;;  %v7013_v8 = vpop.f32.mrb[105].mxu1 }
 0x3d5   :  { %v6968_v21 = vadd.f32 %v6967_v58, %v6966_v7  ;;  %v7014_v35 = vadd.f32 %v7013_v8, %v7012_v15  ;;  %v6969_v54 = vpop.f32.mrb[106].mxu0  ;;  %v7015_v41 = vpop.f32.mrb[106].mxu1 }
 0x3d6   :  { %v6970_v17 = vpop.f32.mrb[107].mxu0  ;;  %v7016_v61 = vpop.f32.mrb[107].mxu1 }
 0x3d7   :  { %v2984_v56 = vadd.f32 %v6968_v21, %v9480_v60  ;;  %v6971_v46 = vadd.f32 %v6970_v17, %v6969_v54  ;;  %v7017_v59 = vadd.f32 %v7016_v61, %v7015_v41 }
 0x3d9   :  { %v9489_v14 = vadd.f32 %v7014_v35, %v2984_v56  ;;  %v2987_v3 = vadd.f32 %v6971_v46, %v9480_v60 }
 0x3db   :  { %v9492_v19 = vadd.f32 %v7017_v59, %v2987_v3  ;;  %v6972_v42 = vpop.f32.mrb[108].mxu0  ;;  %v7018_v31 = vpop.f32.mrb[108].mxu1 }
 0x3dc   :  { %v6973_v45 = vpop.f32.mrb[109].mxu0  ;;  %v7019_v20 = vpop.f32.mrb[109].mxu1 }
 0x3dd   :  { %v6974_v28 = vadd.f32 %v6973_v45, %v6972_v42  ;;  %v7020_v34 = vadd.f32 %v7019_v20, %v7018_v31  ;;  %v6975_v33 = vpop.f32.mrb[110].mxu0  ;;  %v7021_v50 = vpop.f32.mrb[110].mxu1 }
 0x3de   :  { %v6976_v62 = vpop.f32.mrb[111].mxu0  ;;  %v7022_v48 = vpop.f32.mrb[111].mxu1 }
 0x3df   :  { %v2992_v10 = vadd.f32 %v6974_v28, %v9480_v60  ;;  %v6977_v16 = vadd.f32 %v6976_v62, %v6975_v33  ;;  %v7023_v13 = vadd.f32 %v7022_v48, %v7021_v50 }
 0x3e1   :  { %v9495_v55 = vadd.f32 %v7020_v34, %v2992_v10  ;;  %v2995_v18 = vadd.f32 %v6977_v16, %v9480_v60 }
 0x3e3   :  { %v9498_v30 = vadd.f32 %v7023_v13, %v2995_v18  ;;  %v6978_v23 = vpop.f32.mrb[112].mxu0  ;;  %v7024_v43 = vpop.f32.mrb[112].mxu1 }
 0x3e4   :  { %v6979_v38 = vpop.f32.mrb[113].mxu0  ;;  %v7025_v47 = vpop.f32.mrb[113].mxu1 }
 0x3e5   :  { %v6980_v39 = vadd.f32 %v6979_v38, %v6978_v23  ;;  %v7026_v26 = vadd.f32 %v7025_v47, %v7024_v43  ;;  %v6981_v27 = vpop.f32.mrb[114].mxu0  ;;  %v7027_v57 = vpop.f32.mrb[114].mxu1 }
 0x3e6   :  { %v6982_v53 = vpop.f32.mrb[115].mxu0  ;;  %v7028_v25 = vpop.f32.mrb[115].mxu1 }
 0x3e7   :  { %v3000_v4 = vadd.f32 %v6980_v39, %v9480_v60  ;;  %v6983_v5 = vadd.f32 %v6982_v53, %v6981_v27  ;;  %v7029_v32 = vadd.f32 %v7028_v25, %v7027_v57 }
 0x3e9   :  { %v9501_v44 = vadd.f32 %v7026_v26, %v3000_v4  ;;  %v3003_v2 = vadd.f32 %v6983_v5, %v9480_v60 }
 0x3eb   :  { %v9504_v49 = vadd.f32 %v7029_v32, %v3003_v2  ;;  %v6984_v63 = vpop.f32.mrb[116].mxu0  ;;  %v7030_v22 = vpop.f32.mrb[116].mxu1 }
 0x3ec   :  { %v6985_v6 = vpop.f32.mrb[117].mxu0  ;;  %v7031_v0 = vpop.f32.mrb[117].mxu1 }
 0x3ed   :  { %v6986_v52 = vadd.f32 %v6985_v6, %v6984_v63  ;;  %v7032_v51 = vadd.f32 %v7031_v0, %v7030_v22  ;;  %v6987_v36 = vpop.f32.mrb[118].mxu0  ;;  %v7033_v7 = vpop.f32.mrb[118].mxu1 }
 0x3ee   :  { %v6988_v15 = vpop.f32.mrb[119].mxu0  ;;  %v7034_v58 = vpop.f32.mrb[119].mxu1 }
 0x3ef   :  { %v3008_v8 = vadd.f32 %v6986_v52, %v9480_v60 }
 0x3f1   :  { %v9507_v21 = vadd.f32 %v7032_v51, %v3008_v8 }
 0x3f3   :  { %v7052_v35 = vpop.f32.mrb[120].mxu0  ;;  %v7098_v54 = vpop.f32.mrb[120].mxu1 }
 0x3f4   :  { %v7053_v41 = vpop.f32.mrb[121].mxu0  ;;  %v7099_v17 = vpop.f32.mrb[121].mxu1 }
 0x3f5   :  { %v7054_v61 = vadd.f32 %v7053_v41, %v7052_v35  ;;  %v7100_v56 = vadd.f32 %v7099_v17, %v7098_v54  ;;  %v7055_v46 = vpop.f32.mrb[122].mxu0  ;;  %v7101_v59 = vpop.f32.mrb[122].mxu1 }
 0x3f6   :  { %v7056_v3 = vpop.f32.mrb[123].mxu0  ;;  %v7102_v42 = vpop.f32.mrb[123].mxu1 }
 0x3f7   :  { %v3120_v31 = vadd.f32 %v7054_v61, %v9483_v40  ;;  %v7057_v45 = vadd.f32 %v7056_v3, %v7055_v46  ;;  %v7103_v20 = vadd.f32 %v7102_v42, %v7101_v59 }
 0x3f9   :  { %v3123_v28 = vadd.f32 %v7057_v45, %v9486_v24  ;;  %v9511_v34 = vadd.f32 %v7100_v56, %v3120_v31 }
 0x3fb   :  { %v7058_v60 = vpop.f32.mrb[124].mxu0  ;;  %v7104_v33 = vpop.f32.mrb[124].mxu1  ;;  %v9513_v50 = vadd.f32 %v7103_v20, %v3123_v28 }
 0x3fc   :  { %v7059_v62 = vpop.f32.mrb[125].mxu0  ;;  %v7105_v48 = vpop.f32.mrb[125].mxu1 }
 0x3fd   :  { %v7060_v10 = vadd.f32 %v7059_v62, %v7058_v60  ;;  %v7106_v16 = vadd.f32 %v7105_v48, %v7104_v33  ;;  %v7061_v13 = vpop.f32.mrb[126].mxu0  ;;  %v7107_v18 = vpop.f32.mrb[126].mxu1 }
 0x3fe   :  { %v7062_v23 = vpop.f32.mrb[127].mxu0  ;;  %v7108_v43 = vpop.f32.mrb[127].mxu1 }
 0x3ff   :  { %v3128_v40 = vadd.f32 %v7060_v10, %v9489_v14  ;;  %v7063_v38 = vadd.f32 %v7062_v23, %v7061_v13  ;;  %v7109_v47 = vadd.f32 %v7108_v43, %v7107_v18 }
 0x401   :  { %v3131_v24 = vadd.f32 %v7063_v38, %v9492_v19  ;;  %v3200_v39 = vadd.f32 %v7106_v16, %v3128_v40 }
 0x403   :  { %v7064_v26 = vpop.f32.mrb[128].mxu0  ;;  %v7110_v27 = vpop.f32.mrb[128].mxu1  ;;  %v3203_v57 = vadd.f32 %v7109_v47, %v3131_v24 }
 0x404   :  { %v7065_v53 = vpop.f32.mrb[129].mxu0  ;;  %v7111_v25 = vpop.f32.mrb[129].mxu1 }
 0x405   :  { %v7066_v4 = vadd.f32 %v7065_v53, %v7064_v26  ;;  %v7112_v5 = vadd.f32 %v7111_v25, %v7110_v27  ;;  %v7067_v32 = vpop.f32.mrb[130].mxu0  ;;  %v7113_v2 = vpop.f32.mrb[130].mxu1 }
 0x406   :  { %v7068_v63 = vpop.f32.mrb[131].mxu0  ;;  %v7114_v22 = vpop.f32.mrb[131].mxu1 }
 0x407   :  { %v3136_v6 = vadd.f32 %v7066_v4, %v9495_v55  ;;  %v7069_v0 = vadd.f32 %v7068_v63, %v7067_v32  ;;  %v7115_v14 = vadd.f32 %v7114_v22, %v7113_v2 }
 0x409   :  { %v3139_v52 = vadd.f32 %v7069_v0, %v9498_v30  ;;  %v3208_v51 = vadd.f32 %v7112_v5, %v3136_v6 }
 0x40b   :  { %v7070_v19 = vpop.f32.mrb[132].mxu0  ;;  %v7116_v36 = vpop.f32.mrb[132].mxu1  ;;  %v3211_v7 = vadd.f32 %v7115_v14, %v3139_v52 }
 0x40c   :  { %v7071_v15 = vpop.f32.mrb[133].mxu0  ;;  %v7117_v58 = vpop.f32.mrb[133].mxu1 }
 0x40d   :  { %v7072_v8 = vadd.f32 %v7071_v15, %v7070_v19  ;;  %v7118_v35 = vadd.f32 %v7117_v58, %v7116_v36  ;;  %v7073_v54 = vpop.f32.mrb[134].mxu0  ;;  %v7119_v41 = vpop.f32.mrb[134].mxu1  ;;  %v10713_v36 = vld [vmem:[#allocation12_spill] sm:$0xff] }
 0x40e   :  { %v7074_v17 = vpop.f32.mrb[135].mxu0  ;;  %v7120_v61 = vpop.f32.mrb[135].mxu1 }
 0x40f   :  { %v3144_v56 = vadd.f32 %v7072_v8, %v9501_v44  ;;  %v7075_v46 = vadd.f32 %v7074_v17, %v7073_v54  ;;  %v7121_v55 = vadd.f32 %v7120_v61, %v7119_v41  ;;  %v9529_v8 = vld [vmem:[#allocation2 + $0x8] sm:$0xff]  ;;  %v9536_v17 = vld [vmem:[#allocation2] sm:$0xff] }
 0x411   :  { %v3147_v59 = vadd.f32 %v7075_v46, %v9504_v49  ;;  %v3216_v3 = vadd.f32 %v7118_v35, %v3144_v56  ;;  %v8277_v56 = vld [vmem:[#allocation2 + $0x18] sm:$0xff] }
 0x413   :  { %v7076_v30 = vpop.f32.mrb[136].mxu0  ;;  %v7122_v42 = vpop.f32.mrb[136].mxu1  ;;  %v3219_v31 = vadd.f32 %v7121_v55, %v3147_v59  ;;  %v10715_v55 = vld [vmem:[#allocation14_spill] sm:$0xff] }
 0x414   :  { %v7077_v45 = vpop.f32.mrb[137].mxu0  ;;  %v7123_v20 = vpop.f32.mrb[137].mxu1 }
 0x415   :  { %v7078_v28 = vadd.f32 %v7077_v45, %v7076_v30  ;;  %v7124_v60 = vadd.f32 %v7123_v20, %v7122_v42  ;;  %v7079_v33 = vpop.f32.mrb[138].mxu0  ;;  %v7125_v62 = vpop.f32.mrb[138].mxu1 }
 0x416   :  { %v7080_v48 = vpop.f32.mrb[139].mxu0  ;;  %v7126_v10 = vpop.f32.mrb[139].mxu1  ;;  %v10718_v33 = vld [vmem:[#allocation17_spill] sm:$0xff] }
 0x417   :  { %v3152_v16 = vadd.f32 %v7078_v28, %v9507_v21 }
 0x419   :  { %v3224_v13 = vadd.f32 %v7124_v60, %v3152_v16 }
 0x41b   :  { %v3263_v44 = vpop.f32.mrb[140].mxu0 }
 0x41c   :  { %v3264_v18 = vadd.f32 %v3263_v44, %v9511_v34  ;;  %v7659_v23 = vpop.f32.mrb[141].mxu0 }
 0x41d   :  { %v3266_v49 = vpop.f32.mrb[142].mxu0 }
 0x41e   :  { %v3267_v43 = vadd.f32 %v3266_v49, %v9513_v50  ;;  %v7660_v40 = vpop.f32.mrb[143].mxu0  ;;  %v3301_v0 = vadd.f32 %v3264_v18, %v8817_v9  ;;  %v10720_v18 = vld [vmem:[#allocation18_spill] sm:$0xff] }
 0x420   :  { %v3302_v63 = vadd.f32 %v3267_v43, %v8814_v37 }
 0x422   :  { %v3311_v19 = vmax.f32 %v3302_v63, 0.0 }
 0x423   :  { %v3271_v38 = vpop.f32.mrb[144].mxu0 }
 0x424   :  { %v3272_v47 = vadd.f32 %v3271_v38, %v3200_v39  ;;  %v7663_v24 = vpop.f32.mrb[145].mxu0  ;;  %v9532_v37 = vmul.f32 %v9529_v8, %v3311_v19 }
 0x425   :  { %v3274_v26 = vpop.f32.mrb[146].mxu0 }
 0x426   :  { %v3275_v27 = vadd.f32 %v3274_v26, %v3203_v57  ;;  %v7664_v53 = vpop.f32.mrb[147].mxu0  ;;  %v3303_v34 = vadd.f32 %v3272_v47, %v8819_v11  ;;  %v8275_v11 = vld [vmem:[#allocation2 + $0x10] sm:$0xff]  ;;  %v3352_v28 = vrot.slane %v9532_v37, 7 }
 0x428   :  { %v3304_v39 = vadd.f32 %v3275_v27, %v8821_v12  ;;  %v8278_v27 = vld [vmem:[#allocation2 + $0x20] sm:$0xff] }
 0x42a   :  { %v3313_v58 = vmax.f32 %v3304_v39, 0.0 }
 0x42b   :  { %v3279_v25 = vpop.f32.mrb[148].mxu0 }
 0x42c   :  { %v3280_v4 = vadd.f32 %v3279_v25, %v3208_v51  ;;  %v7667_v5 = vpop.f32.mrb[149].mxu0  ;;  %v3312_v51 = vmax.f32 %v3303_v34, 0.0  ;;  %v9541_v46 = vmul.f32 %v8277_v56, %v3313_v58  ;;  %v8279_v25 = vld [vmem:[#allocation2 + $0x28] sm:$0xff]  ;;  %v8159_v56 = vld [vmem:[#allocation5 + $0x810] sm:$0xff]  }
 0x42d   :  { %v3282_v32 = vpop.f32.mrb[150].mxu0  ;;  %v10724_v5 = vld [vmem:[#allocation16_spill] sm:$0xff] }
 0x42e   :  { %v3283_v21 = vadd.f32 %v3282_v32, %v3211_v7  ;;  %v7668_v2 = vpop.f32.mrb[151].mxu0  ;;  %v3310_v7 = vmax.f32 %v3301_v0, 0.0  ;;  %v9534_v35 = vmul.f32 %v8275_v11, %v3312_v51  ;;  %10714 = vst [vmem:[#allocation12_spill] sm:$0xff] %v9541_v46  ;;  %v3305_v59 = vadd.f32 %v3280_v4, %v10715_v55  ;;  %v8155_v51 = vld [vmem:[#allocation5 + $0x808] sm:$0xff]   ;;  %v8165_v55 = vld [vmem:[#allocation5 + $0x890] sm:$0xff]  }
 0x42f   :  { %v3354_v44 = vrot.slane %v9541_v46, 7 }
 0x430   :  { %v9539_v61 = vmul.f32 %v9536_v17, %v3310_v7  ;;  %v3353_v60 = vrot.slane %v9534_v35, 7  ;;  %v3314_v10 = vmax.f32 %v3305_v59, 0.0  ;;  %v8280_v59 = vld [vmem:[#allocation2 + $0x30] sm:$0xff] }
 0x432   :  { %v3328_v43 = vrot.slane %v9539_v61, 6  ;;  %v3366_v40 = vsel %vm127_vm0, %v3352_v28, %v3353_v60  ;;  %v9565_v53 = vmul.f32 %v8278_v27, %v3314_v10  ;;  %v8163_v10 = vld [vmem:[#allocation5 + $0x818] sm:$0xff]  }
 0x433   :  { %v3287_v22 = vpop.f32.mrb[152].mxu0 }
 0x434   :  { %v3288_v6 = vadd.f32 %v3287_v22, %v3216_v3  ;;  %v7671_v50 = vpop.f32.mrb[153].mxu0  ;;  %v10716_v3 = vld [vmem:[#allocation15_spill] sm:$0xff]  ;;  %v3355_v58 = vrot.slane %v9565_v53, 7 }
 0x435   :  { %v3290_v14 = vpop.f32.mrb[154].mxu0  ;;  %v3306_v30 = vadd.f32 %v3283_v21, %v10716_v3  ;;  %v3365_v21 = vsel %vm127_vm0, %v3353_v60, %v3354_v44  ;;  %v8166_v60 = vld [vmem:[#allocation5 + $0x850] sm:$0xff]  }
 0x436   :  { %v3291_v57 = vadd.f32 %v3290_v14, %v3219_v31  ;;  %v7672_v52 = vpop.f32.mrb[155].mxu0  ;;  %v10717_v31 = vld [vmem:[#allocation13_spill] sm:$0xff]  ;;  %v3307_v32 = vadd.f32 %v3288_v6, %v10724_v5  ;;  %v3380_v19 = vpack.c.bf16 %v3365_v21, %v3366_v40 }
 0x437   :  { %v3315_v16 = vmax.f32 %v3306_v30, 0.0  ;;  %10722 = vst [vmem:[#allocation13_spill] sm:$0xff] %v9565_v53  ;;  %v8154_v14 = vld [vmem:[#allocation5 + $0x7c0] sm:$0xff]   ;;  %v3364_v30 = vsel %vm127_vm0, %v3354_v44, %v3355_v58 }
 0x438   :  { %v3308_v15 = vadd.f32 %v3291_v57, %v10713_v36  ;;  %v8158_v57 = vld [vmem:[#allocation5 + $0x840] sm:$0xff]   ;;  %v3330_v36 = vrot.slane %v9534_v35, 6  ;;  %v3316_v7 = vmax.f32 %v3307_v32, 0.0 }
 0x439   :  { %v9567_v4 = vmul.f32 %v8279_v25, %v3315_v16  ;;  %v3332_v16 = vrot.slane %v9565_v53, 6 }
 0x43a   :  { %v3317_v54 = vmax.f32 %v3308_v15, 0.0  ;;  %v8161_v15 = vld [vmem:[#allocation5 + $0x888] sm:$0xff]   ;;  %v9595_v3 = vmul.f32 %v8280_v59, %v3316_v7  ;;  %v3390_v59 = vrot.slane %v9532_v37, 1 }
 0x43b   :  { %v3295_v9 = vpop.f32.mrb[156].mxu0  ;;  %10723 = vst [vmem:[#allocation17_spill] sm:$0xff] %v9567_v4  ;;  %v3356_v11 = vrot.slane %v9567_v4, 7 }
 0x43c   :  { %v3296_v12 = vadd.f32 %v3295_v9, %v3224_v13  ;;  %v7675_v41 = vpop.f32.mrb[157].mxu0  ;;  %v9549_v62 = vmul.f32 %v10718_v33, %v3317_v54  ;;  %v3351_v13 = vrot.slane %v9539_v61, 7  ;;  %v3329_v9 = vrot.slane %v9532_v37, 6  ;;  %v8156_v54 = vld [vmem:[#allocation5 + $0x7c8] sm:$0xff]   ;;  %10725 = vst [vmem:[#allocation18_spill] sm:$0xff] %v9595_v3 }
 0x43d   :  { %v3298_v42 = vpop.f32.mrb[158].mxu0  ;;  %v3371_v33 = vpack.c.bf16 %v3364_v30, %v3365_v21  ;;  %v3357_v44 = vrot.slane %v9595_v3, 7  ;;  %v9623_v21 = vpack.c.bf16 %v9565_v53, %v9541_v46  ;;  %v9634_v7 = vpack.c.bf16 %v9595_v3, %v9567_v4 }
 0x43e   :  { %v3309_v45 = vadd.f32 %v3296_v12, %v10717_v31  ;;  %v7676_v20 = vpop.f32.mrb[159].mxu0  ;;  %10719 = vst [vmem:[#allocation14_spill] sm:$0xff] %v9549_v62  ;;  %v3367_v49 = vsel %vm127_vm0, %v3351_v13, %v3352_v28  ;;  %v3358_v38 = vrot.slane %v9549_v62, 7  ;;  %v3335_v24 = vrot.slane %v9549_v62, 6  ;;  %v8162_v12 = vld [vmem:[#allocation5 + $0x848] sm:$0xff]   ;;  %v8160_v28 = vld [vmem:[#allocation5 + $0x7d0] sm:$0xff]  }
 0x43f   :  { %v3370_v52 = vpack.c.bf16 %v3366_v40, %v3367_v49  ;;  %v3343_v41 = vsel %vm103_vm1, %v3329_v9, %v3330_v36  ;;  %v3363_v42 = vsel %vm127_vm0, %v3355_v58, %v3356_v11  ;;  %v3344_v31 = vsel %vm103_vm1, %v3328_v43, %v3329_v9  ;;  %v8178_v58 = vld [vmem:[#allocation5 + $0x7f0] sm:$0xff]  }
 0x440   :  { %v3318_v48 = vmax.f32 %v3309_v45, 0.0  ;;  %v3347_v45 = vpack.c.bf16 %v3343_v41, %v3344_v31  ;;  %v9605_v20 = vpack.c.bf16 %v9534_v35, %v9532_v37  ;;  %v3362_v27 = vsel %vm127_vm0, %v3356_v11, %v3357_v44  ;;  %v8180_v11 = vld [vmem:[#allocation5 + $0x870] sm:$0xff]   ;;  %v8183_v41 = vld [vmem:[#allocation5 + $0x8b8] sm:$0xff]  }
 0x441   :  { %v3361_v25 = vsel %vm127_vm0, %v3357_v44, %v3358_v38  ;;  %v3389_v31 = vrot.slane %v9539_v61, 1 }
 0x442   :  { %v9554_v23 = vmul.f32 %v10720_v18, %v3318_v48  ;;  %v3381_v48 = vpack.c.bf16 %v3363_v42, %v3364_v30  ;;  %v3331_v18 = vrot.slane %v9541_v46, 6  ;;  %v3373_v9 = vpack.c.bf16 %v3361_v25, %v3361_v25  ;;  %v8182_v30 = vld [vmem:[#allocation5 + $0x7f8] sm:$0xff]  }
 0x444   :  { %10721 = vst [vmem:[#allocation15_spill] sm:$0xff] %v9554_v23  ;;  %v3359_v47 = vrot.slane %v9554_v23, 7  ;;  %v3336_v26 = vrot.slane %v9554_v23, 6  ;;  %v3374_v39 = vpack.c.bf16 %v9539_v61, %v9554_v23  ;;  %v3341_v40 = vsel %vm103_vm1, %v3331_v18, %v3332_v16 }
 0x445   :  { %v3342_v5 = vsel %vm103_vm1, %v3330_v36, %v3331_v18 }
 0x446   :  { %v9576_v2 = vsel %vm127_vm0, %v3358_v38, %v3359_v47  ;;  %v3368_v63 = vsel %vm127_vm0, %v3359_v47, %v3351_v13  ;;  %v3337_v34 = vsel %vm103_vm1, %v3335_v24, %v3336_v26  ;;  %v3345_v22 = vsel %vm103_vm1, %v3336_v26, %v3328_v43  ;;  %v8168_v13 = vld [vmem:[#allocation5 + $0x898] sm:$0xff]   ;;  %v8167_v47 = vld [vmem:[#allocation5 + $0x820] sm:$0xff]   ;;  %v8175_v38 = vld [vmem:[#allocation5 + $0x8a8] sm:$0xff]  }
 0x447   :  { %v3369_v6 = vpack.c.bf16 %v3368_v63, %v9576_v2  ;;  %v3379_v50 = vpack.c.bf16 %v3367_v49, %v3368_v63  ;;  %v3346_v0 = vpack.c.bf16 %v3345_v22, %v3337_v34  ;;  %v8164_v49 = vld [vmem:[#allocation5 + $0x7d8] sm:$0xff]   ;;  %v8171_v26 = vld [vmem:[#allocation5 + $0x8a0] sm:$0xff]   ;;  %v3348_v32 = vpack.c.bf16 %v3341_v40, %v3342_v5 }
 0x448   :  { %v8170_v43 = vld [vmem:[#allocation5 + $0x858] sm:$0xff]   ;;  %v8169_v63 = vld [vmem:[#allocation5 + $0x7e0] sm:$0xff]   ;;  %v3372_v22 = vpack.c.bf16 %v3362_v27, %v3363_v42 }
 0x449   :  { %4056 = vmatprep.mubr.bf16.mxu1 %v3369_v6  ;;  %4128 = vmatprep.mubr.bf16.mxu0 %v3379_v50  ;;  %v8173_v34 = vld [vmem:[#allocation5 + $0x860] sm:$0xff]   ;;  %v3382_v6 = vpack.c.bf16 %v3361_v25, %v3362_v27  ;;  %v3334_v50 = vrot.slane %v9595_v3, 6  ;;  %v8184_v42 = vld [vmem:[#allocation5 + $0x878] sm:$0xff]   ;;  %v3396_v27 = vrot.slane %v9549_v62, 1  ;;  %v8186_v25 = vld [vmem:[#allocation5 + $0x8c8] sm:$0xff]  }
 0x44a   :  { %4057 = vmatmul.mubr.bf16.vlgmr.msra.gmra.mrb[140].mxu1 %v3346_v0  ;;  %4129 = vmatmul.mubr.bf16.vlgmr.msra.gmra.mrb[160].mxu0 %v3374_v39  ;;  %v8172_v0 = vld [vmem:[#allocation5 + $0x828] sm:$0xff]   ;;  %v3333_v39 = vrot.slane %v9567_v4, 6 }
 0x44b   :  { %4064 = vmatprep.mubr.bf16.mxu1 %v3370_v52  ;;  %4136 = vmatprep.mubr.bf16.mxu0 %v3380_v19  ;;  %v8177_v19 = vld [vmem:[#allocation5 + $0x830] sm:$0xff]  }
 0x44c   :  { %7234 = vmatpush3.bf16.msra.mxu1 %v8154_v14  ;;  %7280 = vmatpush3.bf16.msra.mxu0 %v8158_v57  ;;  %v8174_v14 = vld [vmem:[#allocation5 + $0x7e8] sm:$0xff]   ;;  %v3339_v52 = vsel %vm103_vm1, %v3333_v39, %v3334_v50  ;;  %v3340_v36 = vsel %vm103_vm1, %v3332_v16, %v3333_v39  ;;  %v3393_v16 = vrot.slane %v9565_v53, 1  ;;  %v3386_v39 = vpack.c.bf16 %v9567_v4, %v9565_v53 }
 0x44d   :  { %7235 = vmatprep.subr.bf16.mxu1 %v8155_v51  ;;  %7281 = vmatprep.subr.bf16.mxu0 %v8161_v15  ;;  %v8176_v57 = vld [vmem:[#allocation5 + $0x868] sm:$0xff]   ;;  %v8179_v51 = vld [vmem:[#allocation5 + $0x8b0] sm:$0xff]   ;;  %v3349_v15 = vpack.c.bf16 %v3339_v52, %v3340_v36 }
 0x44e   :  { %v8190_v52 = vld [vmem:[#allocation5 + $0x8e8] sm:$0xff]   ;;  %v8191_v36 = vld [vmem:[#allocation5 + $0x8f0] sm:$0xff]  }
 0x450   :  { %7236 = vmatpush3.bf16.msra.mxu1 %v8156_v54  ;;  %7282 = vmatpush3.bf16.msra.mxu0 %v8162_v12  ;;  %v3383_v54 = vpack.c.bf16 %v9576_v2, %v9576_v2  ;;  %v8181_v12 = vld [vmem:[#allocation5 + $0x838] sm:$0xff]   ;;  %v3338_v2 = vsel %vm103_vm1, %v3334_v50, %v3335_v24 }
 0x451   :  { %7237 = vmatprep.subr.bf16.mxu1 %v8159_v56  ;;  %7283 = vmatprep.subr.bf16.mxu0 %v8165_v55  ;;  %v3391_v56 = vrot.slane %v9534_v35, 1  ;;  %v3392_v55 = vrot.slane %v9541_v46, 1  ;;  %v8188_v50 = vld [vmem:[#allocation5 + $0x8d8] sm:$0xff]  }
 0x452   :  { %4065 = vmatmul.mubr.bf16.gmra.mrb[144].mxu1 %v3347_v45  ;;  %4137 = vmatmul.mubr.bf16.gmra.mrb[164].mxu0 %v9605_v20 }
 0x453   :  { %4072 = vmatprep.mubr.bf16.mxu1 %v3371_v33  ;;  %4144 = vmatprep.mubr.bf16.mxu0 %v3381_v48  ;;  %v3404_v45 = vsel %vm166_vm3, %v3390_v59, %v3391_v56  ;;  %v3378_v33 = vpack.c.bf16 %v9549_v62, %v9549_v62  ;;  %v9655_v48 = vsel %vm166_vm3, %v3389_v31, %v3390_v59 }
 0x454   :  { %7238 = vmatpush3.bf16.msra.mxu1 %v8160_v28  ;;  %7284 = vmatpush3.bf16.msra.mxu0 %v8166_v60  ;;  %v3403_v28 = vsel %vm166_vm3, %v3391_v56, %v3392_v55  ;;  %v3350_v60 = vpack.c.bf16 %v3338_v2, %v3338_v2  ;;  %v3407_v24 = vpack.c.bf16 %v3404_v45, %v9655_v48 }
 0x455   :  { %7239 = vmatprep.subr.bf16.mxu1 %v8163_v10  ;;  %7285 = vmatprep.subr.bf16.mxu0 %v8168_v13  ;;  %v3414_v10 = vpack.c.bf16 %v3403_v28, %v3404_v45  ;;  %v3394_v13 = vrot.slane %v9567_v4, 1  ;;  %v3402_v44 = vsel %vm166_vm3, %v3392_v55, %v3393_v16 }
 0x456   :  { %v3408_v40 = vpack.c.bf16 %v3402_v44, %v3403_v28  ;;  %v3426_v28 = vrot.slane %v9549_v62, 2 }
 0x457   :  { %v3401_v18 = vsel %vm166_vm3, %v3393_v16, %v3394_v13  ;;  %v3419_v16 = vrot.slane %v9539_v61, 2 }
 0x458   :  { %7240 = vmatpush3.bf16.msra.mxu1 %v8164_v49  ;;  %7286 = vmatpush3.bf16.msra.mxu0 %v8170_v43  ;;  %v3384_v49 = vpack.c.bf16 %v9532_v37, %v9539_v61  ;;  %v8185_v43 = vld [vmem:[#allocation5 + $0x8c0] sm:$0xff]  }
 0x459   :  { %7241 = vmatprep.subr.bf16.mxu1 %v8167_v47  ;;  %7287 = vmatprep.subr.bf16.mxu0 %v8171_v26  ;;  %v3415_v47 = vpack.c.bf16 %v3401_v18, %v3402_v44  ;;  %v3395_v26 = vrot.slane %v9595_v3, 1 }
 0x45a   :  { %4073 = vmatmul.mubr.bf16.gmra.mrb[148].mxu1 %v3348_v32  ;;  %4145 = vmatmul.mubr.bf16.gmra.mrb[168].mxu0 %v9623_v21 }
 0x45b   :  { %4080 = vmatprep.mubr.bf16.mxu1 %v3372_v22  ;;  %4152 = vmatprep.mubr.bf16.mxu0 %v3382_v6  ;;  %v3400_v5 = vsel %vm166_vm3, %v3394_v13, %v3395_v26  ;;  %v3399_v32 = vsel %vm166_vm3, %v3395_v26, %v3396_v27  ;;  %v3397_v6 = vrot.slane %v9554_v23, 1  ;;  %v8195_v26 = vld [vmem:[#allocation5 + $0x948] sm:$0xff]  }
 0x45c   :  { %7242 = vmatpush3.bf16.msra.mxu1 %v8169_v63  ;;  %7288 = vmatpush3.bf16.msra.mxu0 %v8173_v34  ;;  %v8187_v63 = vld [vmem:[#allocation5 + $0x8d0] sm:$0xff]   ;;  %v3409_v34 = vpack.c.bf16 %v3400_v5, %v3401_v18  ;;  %v3416_v22 = vpack.c.bf16 %v3399_v32, %v3400_v5  ;;  %v8198_v5 = vld [vmem:[#allocation5 + $0x980] sm:$0xff]  }
 0x45d   :  { %7243 = vmatprep.subr.bf16.mxu1 %v8172_v0  ;;  %7289 = vmatprep.subr.bf16.mxu0 %v8175_v38  ;;  %v3398_v0 = vsel %vm166_vm3, %v3396_v27, %v3397_v6  ;;  %v3406_v38 = vsel %vm166_vm3, %v3397_v6, %v3389_v31  ;;  %v8196_v27 = vld [vmem:[#allocation5 + $0x908] sm:$0xff]   ;;  %v8204_v6 = vld [vmem:[#allocation5 + $0x918] sm:$0xff]  }
 0x460   :  { %7244 = vmatpush3.bf16.msra.mxu1 %v8174_v14  ;;  %7290 = vmatpush3.bf16.msra.mxu0 %v8176_v57  ;;  %v8189_v14 = vld [vmem:[#allocation5 + $0x8e0] sm:$0xff]   ;;  %v3417_v57 = vpack.c.bf16 %v3406_v38, %v3398_v0 }
 0x461   :  { %7245 = vmatprep.subr.bf16.mxu1 %v8177_v19  ;;  %7291 = vmatprep.subr.bf16.mxu0 %v8179_v51  ;;  %v3387_v19 = vpack.c.bf16 %v9549_v62, %v9595_v3  ;;  %v3412_v51 = vpack.c.bf16 %v9554_v23, %v9549_v62 }
 0x462   :  { %4081 = vmatmul.mubr.bf16.gmra.mrb[152].mxu1 %v3349_v15  ;;  %4153 = vmatmul.mubr.bf16.gmra.mrb[172].mxu0 %v9634_v7  ;;  %v3411_v15 = vpack.c.bf16 %v3406_v38, %v3406_v38  ;;  %v8207_v38 = vld [vmem:[#allocation5 + $0x960] sm:$0xff]  }
 0x463   :  { %4088 = vmatprep.mubr.bf16.mxu1 %v3373_v9  ;;  %4160 = vmatprep.mubr.bf16.mxu0 %v3383_v54  ;;  %v3413_v9 = vpack.c.bf16 %v9539_v61, %v9539_v61  ;;  %v3422_v54 = vrot.slane %v9541_v46, 2 }
 0x464   :  { %7246 = vmatpush3.bf16.msra.mxu1 %v8178_v58  ;;  %7292 = vmatpush3.bf16.msra.mxu0 %v8180_v11  ;;  %v3418_v58 = vpack.c.bf16 %v9655_v48, %v9655_v48  ;;  %v3388_v11 = vpack.c.bf16 %v9554_v23, %v9554_v23 }
 0x465   :  { %7247 = vmatprep.subr.bf16.mxu1 %v8181_v12  ;;  %7293 = vmatprep.subr.bf16.mxu0 %v8183_v41  ;;  %v3421_v12 = vrot.slane %v9534_v35, 2  ;;  %v3420_v41 = vrot.slane %v9532_v37, 2 }
 0x467   :  { %v3433_v56 = vsel %vm197_vm2, %v3421_v12, %v3422_v54  ;;  %v3434_v55 = vsel %vm197_vm2, %v3420_v41, %v3421_v12  ;;  %v8222_v12 = vld [vmem:[#allocation5 + $0x938] sm:$0xff]  }
 0x468   :  { %7248 = vmatpush3.bf16.msra.mxu1 %v8182_v30  ;;  %7294 = vmatpush3.bf16.msra.mxu0 %v8184_v42  ;;  %v3437_v59 = vpack.c.bf16 %v3433_v56, %v3434_v55  ;;  %v3424_v30 = vrot.slane %v9567_v4, 2  ;;  %v3423_v42 = vrot.slane %v9565_v53, 2  ;;  %v8224_v56 = vld [vmem:[#allocation5 + $0x9b8] sm:$0xff]   ;;  %v8225_v55 = vld [vmem:[#allocation5 + $0xa40] sm:$0xff]  }
 0x469   :  { %7677 = vmatprep.subr.bf16.mxu1 %v10698_v1 }
 0x46a   :  { %4089 = vmatmul.mubr.bf16.gmra.mrb[156].mxu1 %v3350_v60  ;;  %4161 = vmatmul.mubr.bf16.gmra.mrb[176].mxu0 %v3378_v33  ;;  %v3431_v2 = vsel %vm197_vm2, %v3423_v42, %v3424_v30  ;;  %v3432_v31 = vsel %vm197_vm2, %v3422_v54, %v3423_v42  ;;  %v3425_v60 = vrot.slane %v9595_v3, 2  ;;  %v8220_v54 = vld [vmem:[#allocation5 + $0x9b0] sm:$0xff]   ;;  %v9739_v42 = vld [vmem:[#allocation7 + $0x3] ss:$0 sm:$0xff] }
 0x46b   :  { %4200 = vmatprep.mubr.bf16.mxu1 %v3407_v24  ;;  %4272 = vmatprep.mubr.bf16.mxu0 %v3414_v10  ;;  %v3438_v45 = vpack.c.bf16 %v3431_v2, %v3432_v31  ;;  %v3427_v10 = vrot.slane %v9554_v23, 2 }
 0x46c   :  { %v3429_v33 = vsel %vm197_vm2, %v3425_v60, %v3426_v28  ;;  %v3430_v48 = vsel %vm197_vm2, %v3424_v30, %v3425_v60 }
 0x46d   :  { %v3439_v24 = vpack.c.bf16 %v3429_v33, %v3430_v48  ;;  %v3428_v13 = vsel %vm197_vm2, %v3426_v28, %v3427_v10  ;;  %v3436_v44 = vsel %vm197_vm2, %v3427_v10, %v3419_v16 }
 0x46e   :  { %v3440_v18 = vpack.c.bf16 %v3436_v44, %v3428_v13  ;;  %v8229_v44 = vld [vmem:[#allocation5 + $0xac0] sm:$0xff]  }
 0x472   :  { %4201 = vmatmul.mubr.bf16.vlgmr.msra.gmra.mrb[160].mxu1 %v3384_v49  ;;  %4273 = vmatmul.mubr.bf16.vlgmr.msra.gmra.mrb[180].mxu0 %v9605_v20  ;;  %v3385_v20 = vpack.c.bf16 %v9541_v46, %v9534_v35  ;;  %v3435_v49 = vsel %vm197_vm2, %v3419_v16, %v3420_v41  ;;  %v8223_v41 = vld [vmem:[#allocation5 + $0x9f8] sm:$0xff]  }
 0x473   :  { %4208 = vmatprep.mubr.bf16.mxu1 %v3408_v40  ;;  %4280 = vmatprep.mubr.bf16.mxu0 %v3415_v47  ;;  %v8193_v40 = vld [vmem:[#allocation5 + $0x940] sm:$0xff]  }
 0x474   :  { %7678 = vmatpush3.bf16.msra.mxu1 %v8185_v43  ;;  %v3441_v43 = vpack.c.bf16 %v3435_v49, %v3435_v49  ;;  %v8194_v47 = vld [vmem:[#allocation5 + $0x900] sm:$0xff]   ;;  %7338 = vmatprep.subr.bf16.mxu0 %v8193_v40 }
 0x475   :  { %7679 = vmatprep.subr.bf16.mxu1 %v10698_v1  ;;  %7339 = vmatpush3.bf16.msra.mxu0 %v8194_v47 }
 0x476   :  { %7340 = vmatprep.subr.bf16.mxu0 %v8195_v26 }
 0x478   :  { %7680 = vmatpush3.bf16.msra.mxu1 %v8186_v25  ;;  %v8197_v25 = vld [vmem:[#allocation5 + $0x9c0] sm:$0xff]  }
 0x479   :  { %7681 = vmatprep.subr.bf16.mxu1 %v10698_v1  ;;  %7341 = vmatpush3.bf16.msra.mxu0 %v8196_v27 }
 0x47a   :  { %4209 = vmatmul.mubr.bf16.gmra.mrb[164].mxu1 %v3385_v20  ;;  %4281 = vmatmul.mubr.bf16.gmra.mrb[184].mxu0 %v9623_v21  ;;  %v3410_v21 = vpack.c.bf16 %v3398_v0, %v3399_v32  ;;  %v8199_v32 = vld [vmem:[#allocation5 + $0x950] sm:$0xff]  }
 0x47b   :  { %4216 = vmatprep.mubr.bf16.mxu1 %v3409_v34  ;;  %4288 = vmatprep.mubr.bf16.mxu0 %v3416_v22  ;;  %v8200_v20 = vld [vmem:[#allocation5 + $0x910] sm:$0xff]   ;;  %v8202_v34 = vld [vmem:[#allocation5 + $0x988] sm:$0xff]   ;;  %v8203_v22 = vld [vmem:[#allocation5 + $0x958] sm:$0xff]  }
 0x47c   :  { %7682 = vmatpush3.bf16.msra.mxu1 %v8187_v63  ;;  %7342 = vmatprep.subr.bf16.mxu0 %v8199_v32  ;;  %v8201_v63 = vld [vmem:[#allocation5 + $0x9c8] sm:$0xff]   ;;  %v8206_v0 = vld [vmem:[#allocation5 + $0x990] sm:$0xff]  }
 0x47d   :  { %7683 = vmatprep.subr.bf16.mxu1 %v10698_v1  ;;  %7343 = vmatpush3.bf16.msra.mxu0 %v8200_v20 }
 0x47e   :  { %7344 = vmatprep.subr.bf16.mxu0 %v8203_v22 }
 0x480   :  { %7684 = vmatpush3.bf16.msra.mxu1 %v8188_v50  ;;  %v8205_v50 = vld [vmem:[#allocation5 + $0x9d0] sm:$0xff]  }
 0x481   :  { %7685 = vmatprep.subr.bf16.mxu1 %v10698_v1  ;;  %7345 = vmatpush3.bf16.msra.mxu0 %v8204_v6 }
 0x482   :  { %4217 = vmatmul.mubr.bf16.gmra.mrb[168].mxu1 %v3386_v39  ;;  %4289 = vmatmul.mubr.bf16.gmra.mrb[188].mxu0 %v9634_v7  ;;  %v8192_v7 = vld [vmem:[#allocation5 + $0x8f8] sm:$0xff]  }
 0x483   :  { %4224 = vmatprep.mubr.bf16.mxu1 %v3410_v21  ;;  %4296 = vmatprep.mubr.bf16.mxu0 %v3417_v57  ;;  %v8208_v39 = vld [vmem:[#allocation5 + $0x9d8] sm:$0xff]   ;;  %v8211_v57 = vld [vmem:[#allocation5 + $0x9e0] sm:$0xff]  }
 0x484   :  { %7686 = vmatpush3.bf16.msra.mxu1 %v8189_v14  ;;  %7346 = vmatprep.subr.bf16.mxu0 %v8207_v38  ;;  %v8209_v14 = vld [vmem:[#allocation5 + $0x920] sm:$0xff]   ;;  %v8210_v21 = vld [vmem:[#allocation5 + $0x998] sm:$0xff]  }
 0x485   :  { %7687 = vmatprep.subr.bf16.mxu1 %v10698_v1  ;;  %7347 = vmatpush3.bf16.msra.mxu0 %v8209_v14 }
 0x488   :  { %7688 = vmatpush3.bf16.msra.mxu1 %v8190_v52  ;;  %v8212_v52 = vld [vmem:[#allocation5 + $0x968] sm:$0xff]  }
 0x489   :  { %7689 = vmatprep.subr.bf16.mxu1 %v10698_v1  ;;  %7348 = vmatprep.subr.bf16.mxu0 %v8212_v52 }
 0x48a   :  { %4225 = vmatmul.mubr.bf16.gmra.mrb[172].mxu1 %v3387_v19  ;;  %4297 = vmatmul.mubr.bf16.gmra.mrb[192].mxu0 %v3412_v51  ;;  %v8213_v19 = vld [vmem:[#allocation5 + $0x9a0] sm:$0xff]   ;;  %v8214_v51 = vld [vmem:[#allocation5 + $0x928] sm:$0xff]  }
 0x48b   :  { %4232 = vmatprep.mubr.bf16.mxu1 %v3411_v15  ;;  %4304 = vmatprep.mubr.bf16.mxu0 %v3418_v58  ;;  %v8216_v15 = vld [vmem:[#allocation5 + $0x9a8] sm:$0xff]   ;;  %v8217_v58 = vld [vmem:[#allocation5 + $0x970] sm:$0xff]  }
 0x48c   :  { %7690 = vmatpush3.bf16.msra.mxu1 %v8191_v36  ;;  %7349 = vmatpush3.bf16.msra.mxu0 %v8214_v51  ;;  %v8215_v36 = vld [vmem:[#allocation5 + $0x9e8] sm:$0xff]  }
 0x48d   :  { %7691 = vmatprep.subr.bf16.mxu1 %v10698_v1  ;;  %7350 = vmatprep.subr.bf16.mxu0 %v8217_v58 }
 0x490   :  { %7692 = vmatpush3.bf16.msra.mxu1 %v8192_v7  ;;  %v8218_v7 = vld [vmem:[#allocation5 + $0x930] sm:$0xff]  }
 0x491   :  { %7384 = vmatprep.subr.bf16.mxu1 %v8197_v25  ;;  %7351 = vmatpush3.bf16.msra.mxu0 %v8218_v7 }
 0x492   :  { %4233 = vmatmul.mubr.bf16.gmra.mrb[176].mxu1 %v3388_v11  ;;  %4305 = vmatmul.mubr.bf16.gmra.mrb[196].mxu0 %v3413_v9  ;;  %v8219_v11 = vld [vmem:[#allocation5 + $0x9f0] sm:$0xff]   ;;  %v8221_v9 = vld [vmem:[#allocation5 + $0x978] sm:$0xff]  }
 0x493   :  { %7693 = vmatprep.mubr.msk.bf16.mxu1 %vm8392_vm4, %v10698_v1  ;;  %7352 = vmatprep.subr.bf16.mxu0 %v8221_v9 }
 0x495   :  { %7353 = vmatpush3.bf16.msra.mxu0 %v8222_v12 }
 0x496   :  { %7430 = vmatprep.subr.bf16.mxu0 %v8225_v55 }
 0x49a   :  { %7694 = vmatmul.mubr.bf16.vlgmr.msra.gmra.mrb[180].mxu1 %v3437_v59 }
 0x49b   :  { %7697 = vmatprep.mubr.msk.bf16.mxu1 %vm8392_vm4, %v10698_v1  ;;  %7385 = vmatpush3.bf16.msra.mxu1 %v8198_v5 }
 0x49c   :  { %7386 = vmatprep.subr.bf16.mxu1 %v8201_v63 }
 0x49f   :  { %7387 = vmatpush3.bf16.msra.mxu1 %v8202_v34 }
 0x4a0   :  { %7388 = vmatprep.subr.bf16.mxu1 %v8205_v50 }
 0x4a2   :  { %7698 = vmatmul.mubr.bf16.gmra.mrb[184].mxu1 %v3438_v45 }
 0x4a3   :  { %7701 = vmatprep.mubr.msk.bf16.mxu1 %vm8392_vm4, %v10698_v1  ;;  %7389 = vmatpush3.bf16.msra.mxu1 %v8206_v0 }
 0x4a4   :  { %7390 = vmatprep.subr.bf16.mxu1 %v8208_v39 }
 0x4a7   :  { %7391 = vmatpush3.bf16.msra.mxu1 %v8210_v21 }
 0x4a8   :  { %7392 = vmatprep.subr.bf16.mxu1 %v8211_v57 }
 0x4aa   :  { %7702 = vmatmul.mubr.bf16.gmra.mrb[188].mxu1 %v3439_v24 }
 0x4ab   :  { %7705 = vmatprep.mubr.msk.bf16.mxu1 %vm8392_vm4, %v10698_v1  ;;  %7393 = vmatpush3.bf16.msra.mxu1 %v8213_v19 }
 0x4ac   :  { %7394 = vmatprep.subr.bf16.mxu1 %v8215_v36 }
 0x4af   :  { %7395 = vmatpush3.bf16.msra.mxu1 %v8216_v15 }
 0x4b0   :  { %7396 = vmatprep.subr.bf16.mxu1 %v8219_v11 }
 0x4b2   :  { %7706 = vmatmul.mubr.bf16.gmra.mrb[192].mxu1 %v3440_v18 }
 0x4b3   :  { %7709 = vmatprep.mubr.msk.bf16.mxu1 %vm8392_vm4, %v10698_v1  ;;  %7397 = vmatpush3.bf16.msra.mxu1 %v8220_v54 }
 0x4b4   :  { %7398 = vmatprep.subr.bf16.mxu1 %v8223_v41 }
 0x4b7   :  { %7399 = vmatpush3.bf16.msra.mxu1 %v8224_v56 }
 0x4b8   :  { %7476 = vmatprep.subr.bf16.mxu1 %v8229_v44 }
 0x4ba   :  { %7710 = vmatmul.mubr.bf16.gmra.mrb[196].mxu1 %v3441_v43 }
 0x51d   :  { %v7157_v59 = vpop.f32.mrb[140].mxu1  ;;  %v7203_v30 = vpop.f32.mrb[160].mxu0 }
 0x51e   :  { %v7158_v2 = vpop.f32.mrb[141].mxu1  ;;  %v7204_v31 = vpop.f32.mrb[161].mxu0 }
 0x51f   :  { %v7159_v45 = vadd.f32 %v7158_v2, %v7157_v59  ;;  %v7205_v28 = vadd.f32 %v7204_v31, %v7203_v30  ;;  %v7160_v60 = vpop.f32.mrb[142].mxu1  ;;  %v7206_v33 = vpop.f32.mrb[162].mxu0 }
 0x520   :  { %v7161_v48 = vpop.f32.mrb[143].mxu1  ;;  %v7207_v24 = vpop.f32.mrb[163].mxu0 }
 0x521   :  { %v4059_v10 = vadd.f32 %v7159_v45, %v9739_v42  ;;  %v7162_v16 = vadd.f32 %v7161_v48, %v7160_v60  ;;  %v7208_v13 = vadd.f32 %v7207_v24, %v7206_v33 }
 0x523   :  { %v9742_v18 = vadd.f32 %v7205_v28, %v4059_v10  ;;  %v4062_v49 = vadd.f32 %v7162_v16, %v9739_v42 }
 0x525   :  { %v9745_v43 = vadd.f32 %v7208_v13, %v4062_v49  ;;  %v7163_v40 = vpop.f32.mrb[144].mxu1  ;;  %v7209_v47 = vpop.f32.mrb[164].mxu0 }
 0x526   :  { %v7164_v26 = vpop.f32.mrb[145].mxu1  ;;  %v7210_v27 = vpop.f32.mrb[165].mxu0 }
 0x527   :  { %v7165_v25 = vadd.f32 %v7164_v26, %v7163_v40  ;;  %v7211_v5 = vadd.f32 %v7210_v27, %v7209_v47  ;;  %v7166_v32 = vpop.f32.mrb[146].mxu1  ;;  %v7212_v20 = vpop.f32.mrb[166].mxu0 }
 0x528   :  { %v7167_v63 = vpop.f32.mrb[147].mxu1  ;;  %v7213_v34 = vpop.f32.mrb[167].mxu0 }
 0x529   :  { %v4067_v22 = vadd.f32 %v7165_v25, %v9739_v42  ;;  %v7168_v6 = vadd.f32 %v7167_v63, %v7166_v32  ;;  %v7214_v50 = vadd.f32 %v7213_v34, %v7212_v20 }
 0x52b   :  { %v9748_v0 = vadd.f32 %v7211_v5, %v4067_v22  ;;  %v4070_v38 = vadd.f32 %v7168_v6, %v9739_v42 }
 0x52d   :  { %v9751_v39 = vadd.f32 %v7214_v50, %v4070_v38  ;;  %v7169_v14 = vpop.f32.mrb[148].mxu1  ;;  %v7215_v21 = vpop.f32.mrb[168].mxu0 }
 0x52e   :  { %v7170_v57 = vpop.f32.mrb[149].mxu1  ;;  %v7216_v52 = vpop.f32.mrb[169].mxu0 }
 0x52f   :  { %v7171_v19 = vadd.f32 %v7170_v57, %v7169_v14  ;;  %v7217_v51 = vadd.f32 %v7216_v52, %v7215_v21  ;;  %v7172_v36 = vpop.f32.mrb[150].mxu1  ;;  %v7218_v15 = vpop.f32.mrb[170].mxu0 }
 0x530   :  { %v7173_v58 = vpop.f32.mrb[151].mxu1  ;;  %v7219_v7 = vpop.f32.mrb[171].mxu0 }
 0x531   :  { %v4075_v11 = vadd.f32 %v7171_v19, %v9739_v42  ;;  %v7174_v9 = vadd.f32 %v7173_v58, %v7172_v36  ;;  %v7220_v54 = vadd.f32 %v7219_v7, %v7218_v15 }
 0x533   :  { %v9754_v12 = vadd.f32 %v7217_v51, %v4075_v11  ;;  %v4078_v41 = vadd.f32 %v7174_v9, %v9739_v42 }
 0x535   :  { %v9757_v56 = vadd.f32 %v7220_v54, %v4078_v41  ;;  %v7175_v55 = vpop.f32.mrb[152].mxu1  ;;  %v7221_v59 = vpop.f32.mrb[172].mxu0 }
 0x536   :  { %v7176_v30 = vpop.f32.mrb[153].mxu1  ;;  %v7222_v2 = vpop.f32.mrb[173].mxu0 }
 0x537   :  { %v7177_v31 = vadd.f32 %v7176_v30, %v7175_v55  ;;  %v7223_v45 = vadd.f32 %v7222_v2, %v7221_v59  ;;  %v7178_v28 = vpop.f32.mrb[154].mxu1  ;;  %v7224_v60 = vpop.f32.mrb[174].mxu0 }
 0x538   :  { %v7179_v33 = vpop.f32.mrb[155].mxu1  ;;  %v7225_v48 = vpop.f32.mrb[175].mxu0 }
 0x539   :  { %v4083_v24 = vadd.f32 %v7177_v31, %v9739_v42  ;;  %v7180_v10 = vadd.f32 %v7179_v33, %v7178_v28  ;;  %v7226_v16 = vadd.f32 %v7225_v48, %v7224_v60 }
 0x53b   :  { %v9760_v13 = vadd.f32 %v7223_v45, %v4083_v24  ;;  %v4086_v44 = vadd.f32 %v7180_v10, %v9739_v42 }
 0x53d   :  { %v9763_v49 = vadd.f32 %v7226_v16, %v4086_v44  ;;  %v7181_v40 = vpop.f32.mrb[156].mxu1  ;;  %v7227_v47 = vpop.f32.mrb[176].mxu0 }
 0x53e   :  { %v7182_v26 = vpop.f32.mrb[157].mxu1  ;;  %v7228_v27 = vpop.f32.mrb[177].mxu0 }
 0x53f   :  { %v7183_v25 = vadd.f32 %v7182_v26, %v7181_v40  ;;  %v7229_v5 = vadd.f32 %v7228_v27, %v7227_v47  ;;  %v7184_v32 = vpop.f32.mrb[158].mxu1  ;;  %v7230_v20 = vpop.f32.mrb[178].mxu0 }
 0x540   :  { %v7185_v63 = vpop.f32.mrb[159].mxu1  ;;  %v7231_v34 = vpop.f32.mrb[179].mxu0 }
 0x541   :  { %v4091_v22 = vadd.f32 %v7183_v25, %v9739_v42 }
 0x543   :  { %v9766_v6 = vadd.f32 %v7229_v5, %v4091_v22 }
 0x545   :  { %v7249_v50 = vpop.f32.mrb[160].mxu1  ;;  %v7295_v38 = vpop.f32.mrb[180].mxu0 }
 0x546   :  { %v7250_v14 = vpop.f32.mrb[161].mxu1  ;;  %v7296_v21 = vpop.f32.mrb[181].mxu0 }
 0x547   :  { %v7251_v57 = vadd.f32 %v7250_v14, %v7249_v50  ;;  %v7297_v52 = vadd.f32 %v7296_v21, %v7295_v38  ;;  %v7252_v19 = vpop.f32.mrb[162].mxu1  ;;  %v7298_v51 = vpop.f32.mrb[182].mxu0 }
 0x548   :  { %v7253_v36 = vpop.f32.mrb[163].mxu1  ;;  %v7299_v15 = vpop.f32.mrb[183].mxu0 }
 0x549   :  { %v4203_v58 = vadd.f32 %v7251_v57, %v9742_v18  ;;  %v7254_v7 = vadd.f32 %v7253_v36, %v7252_v19  ;;  %v7300_v11 = vadd.f32 %v7299_v15, %v7298_v51 }
 0x54b   :  { %v4206_v9 = vadd.f32 %v7254_v7, %v9745_v43  ;;  %v9770_v54 = vadd.f32 %v7297_v52, %v4203_v58 }
 0x54d   :  { %v7255_v42 = vpop.f32.mrb[164].mxu1  ;;  %v7301_v41 = vpop.f32.mrb[184].mxu0  ;;  %v9772_v55 = vadd.f32 %v7300_v11, %v4206_v9 }
 0x54e   :  { %v7256_v59 = vpop.f32.mrb[165].mxu1  ;;  %v7302_v30 = vpop.f32.mrb[185].mxu0 }
 0x54f   :  { %v7257_v2 = vadd.f32 %v7256_v59, %v7255_v42  ;;  %v7303_v31 = vadd.f32 %v7302_v30, %v7301_v41  ;;  %v7258_v45 = vpop.f32.mrb[166].mxu1  ;;  %v7304_v28 = vpop.f32.mrb[186].mxu0 }
 0x550   :  { %v7259_v60 = vpop.f32.mrb[167].mxu1  ;;  %v7305_v33 = vpop.f32.mrb[187].mxu0 }
 0x551   :  { %v4211_v18 = vadd.f32 %v7257_v2, %v9748_v0  ;;  %v7260_v48 = vadd.f32 %v7259_v60, %v7258_v45  ;;  %v7306_v24 = vadd.f32 %v7305_v33, %v7304_v28 }
 0x553   :  { %v4214_v43 = vadd.f32 %v7260_v48, %v9751_v39  ;;  %v4283_v10 = vadd.f32 %v7303_v31, %v4211_v18 }
 0x555   :  { %v7261_v16 = vpop.f32.mrb[168].mxu1  ;;  %v7307_v44 = vpop.f32.mrb[188].mxu0  ;;  %v9776_v40 = vadd.f32 %v7306_v24, %v4214_v43 }
 0x556   :  { %v7262_v47 = vpop.f32.mrb[169].mxu1  ;;  %v7308_v26 = vpop.f32.mrb[189].mxu0 }
 0x557   :  { %v7263_v27 = vadd.f32 %v7262_v47, %v7261_v16  ;;  %v7309_v25 = vadd.f32 %v7308_v26, %v7307_v44  ;;  %v7264_v5 = vpop.f32.mrb[170].mxu1  ;;  %v7310_v32 = vpop.f32.mrb[190].mxu0 }
 0x558   :  { %v7265_v20 = vpop.f32.mrb[171].mxu1  ;;  %v7311_v63 = vpop.f32.mrb[191].mxu0 }
 0x559   :  { %v4219_v34 = vadd.f32 %v7263_v27, %v9754_v12  ;;  %v7266_v0 = vadd.f32 %v7265_v20, %v7264_v5  ;;  %v7312_v22 = vadd.f32 %v7311_v63, %v7310_v32 }
 0x55b   :  { %v4222_v50 = vadd.f32 %v7266_v0, %v9757_v56  ;;  %v9780_v39 = vadd.f32 %v7309_v25, %v4219_v34 }
 0x55d   :  { %v7267_v38 = vpop.f32.mrb[172].mxu1  ;;  %v7313_v14 = vpop.f32.mrb[192].mxu0  ;;  %v9782_v21 = vadd.f32 %v7312_v22, %v4222_v50 }
 0x55e   :  { %v7268_v57 = vpop.f32.mrb[173].mxu1  ;;  %v7314_v52 = vpop.f32.mrb[193].mxu0 }
 0x55f   :  { %v7269_v19 = vadd.f32 %v7268_v57, %v7267_v38  ;;  %v7315_v51 = vadd.f32 %v7314_v52, %v7313_v14  ;;  %v7270_v36 = vpop.f32.mrb[174].mxu1  ;;  %v7316_v15 = vpop.f32.mrb[194].mxu0 }
 0x560   :  { %v7271_v58 = vpop.f32.mrb[175].mxu1  ;;  %v7317_v7 = vpop.f32.mrb[195].mxu0 }
 0x561   :  { %v4227_v12 = vadd.f32 %v7269_v19, %v9760_v13  ;;  %v7272_v11 = vadd.f32 %v7271_v58, %v7270_v36  ;;  %v7318_v9 = vadd.f32 %v7317_v7, %v7316_v15  ;;  %v9836_v15 = vld [vmem:[#allocation2 + $0x10] sm:$0xff] }
 0x562   :  { %10726 = vst [vmem:[#allocation16_spill] sm:$0xff] %v9836_v15 }
 0x563   :  { %v4230_v56 = vadd.f32 %v7272_v11, %v9763_v49  ;;  %v9786_v42 = vadd.f32 %v7315_v51, %v4227_v12  ;;  %v9841_v12 = vld [vmem:[#allocation2 + $0x18] sm:$0xff] }
 0x564   :  { %10727 = vst [vmem:[#allocation19_spill] sm:$0xff] %v9841_v12 }
 0x565   :  { %v7273_v41 = vpop.f32.mrb[176].mxu1  ;;  %v7319_v59 = vpop.f32.mrb[196].mxu0  ;;  %v9788_v30 = vadd.f32 %v7318_v9, %v4230_v56 }
 0x566   :  { %v7274_v2 = vpop.f32.mrb[177].mxu1  ;;  %v7320_v31 = vpop.f32.mrb[197].mxu0 }
 0x567   :  { %v7275_v45 = vadd.f32 %v7274_v2, %v7273_v41  ;;  %v7321_v28 = vadd.f32 %v7320_v31, %v7319_v59  ;;  %v7276_v60 = vpop.f32.mrb[178].mxu1  ;;  %v7322_v33 = vpop.f32.mrb[198].mxu0 }
 0x568   :  { %v7277_v18 = vpop.f32.mrb[179].mxu1  ;;  %v7323_v48 = vpop.f32.mrb[199].mxu0 }
 0x569   :  { %v4235_v13 = vadd.f32 %v7275_v45, %v9766_v6 }
 0x56b   :  { %v9791_v24 = vadd.f32 %v7321_v28, %v4235_v13 }
 0x56d   :  { %v4346_v43 = vpop.f32.mrb[180].mxu1 }
 0x56e   :  { %v4347_v49 = vadd.f32 %v4346_v43, %v9770_v54  ;;  %v7695_v16 = vpop.f32.mrb[181].mxu1 }
 0x56f   :  { %v4349_v44 = vpop.f32.mrb[182].mxu1 }
 0x570   :  { %v4384_v47 = vmax.f32 %v4347_v49, 0.0  ;;  %v4350_v26 = vadd.f32 %v4349_v44, %v9772_v55  ;;  %v7696_v27 = vpop.f32.mrb[183].mxu1 }
 0x572   :  { %v9796_v25 = vmul.f32 %v9536_v17, %v4384_v47  ;;  %v4385_v5 = vmax.f32 %v4350_v26, 0.0 }
 0x574   :  { %v9799_v32 = vmul.f32 %v9529_v8, %v4385_v5  ;;  %v10664_v6 = vrot.slane %v9796_v25, 7  ;;  %v10663_v63 = vrot.slane %v9796_v25, 6  ;;  %v10662_v17 = vrot.slane %v9796_v25, 1 }
 0x575   :  { %v4354_v20 = vpop.f32.mrb[184].mxu1  ;;  %v10661_v14 = vrot.slane %v9796_v25, 2  ;;  %v10733_v3 = vrot.slane %v9796_v25, 7  ;;  %v10734_v4 = vrot.slane %v9796_v25, 6 }
 0x576   :  { %v4355_v34 = vadd.f32 %v4354_v20, %v4283_v10  ;;  %v7699_v54 = vpop.f32.mrb[185].mxu1  ;;  %v4426_v0 = vrot.slane %v9799_v32, 7  ;;  %v4403_v22 = vrot.slane %v9799_v32, 6  ;;  %v4464_v55 = vrot.slane %v9799_v32, 1 }
 0x577   :  { %v4357_v50 = vpop.f32.mrb[186].mxu1  ;;  %v4494_v38 = vrot.slane %v9799_v32, 2  ;;  %v9889_v54 = vld [vmem:[#allocation2 + $0x20] sm:$0xff] }
 0x578   :  { %v4386_v57 = vmax.f32 %v4355_v34, 0.0  ;;  %v4358_v10 = vadd.f32 %v4357_v50, %v9776_v40  ;;  %v7700_v52 = vpop.f32.mrb[187].mxu1  ;;  %v9816_v19 = vsel %vm127_vm0, %v10664_v6, %v4426_v0  ;;  %v9822_v51 = vsel %vm103_vm1, %v10663_v63, %v4403_v22  ;;  %10728 = vst [vmem:[#allocation20_spill] sm:$0xff] %v9889_v54 }
 0x579   :  { %v9828_v36 = vsel %vm166_vm3, %v10662_v17, %v4464_v55  ;;  %v9834_v40 = vsel %vm197_vm2, %v10661_v14, %v4494_v38 }
 0x57a   :  { %v9839_v58 = vmul.f32 %v9836_v15, %v4386_v57  ;;  %v4387_v7 = vmax.f32 %v4358_v10, 0.0  ;;  %v9903_v10 = vld [vmem:[#allocation2 + $0x28] sm:$0xff] }
 0x57b   :  { %10729 = vst [vmem:[#allocation21_spill] sm:$0xff] %v9903_v10  ;;  %v8230_v15 = vld [vmem:[#allocation5 + $0xa80] sm:$0xff]  }
 0x57c   :  { %v9844_v11 = vmul.f32 %v9841_v12, %v4387_v7  ;;  %v4427_v9 = vrot.slane %v9839_v58, 7  ;;  %v4404_v56 = vrot.slane %v9839_v58, 6  ;;  %v9850_v41 = vpack.c.bf16 %v9839_v58, %v9799_v32 }
 0x57d   :  { %v4362_v59 = vpop.f32.mrb[188].mxu1  ;;  %v4465_v2 = vrot.slane %v9839_v58, 1  ;;  %v4495_v31 = vrot.slane %v9839_v58, 2 }
 0x57e   :  { %v4363_v45 = vadd.f32 %v4362_v59, %v9780_v39  ;;  %v7703_v28 = vpop.f32.mrb[189].mxu1  ;;  %v9857_v60 = vsel %vm127_vm0, %v4426_v0, %v4427_v9  ;;  %v4428_v33 = vrot.slane %v9844_v11, 7  ;;  %v9862_v18 = vsel %vm103_vm1, %v4403_v22, %v4404_v56 }
 0x57f   :  { %v4365_v48 = vpop.f32.mrb[190].mxu1  ;;  %v4405_v39 = vrot.slane %v9844_v11, 6  ;;  %v9871_v49 = vsel %vm166_vm3, %v4464_v55, %v4465_v2  ;;  %v4466_v34 = vrot.slane %v9844_v11, 1  ;;  %v4496_v55 = vrot.slane %v9844_v11, 2 }
 0x580   :  { %v4388_v16 = vmax.f32 %v4363_v45, 0.0  ;;  %v4366_v44 = vadd.f32 %v4365_v48, %v9782_v21  ;;  %v7704_v47 = vpop.f32.mrb[191].mxu1  ;;  %v9876_v26 = vsel %vm127_vm0, %v4427_v9, %v4428_v33  ;;  %v9897_v50 = vsel %vm197_vm2, %v4494_v38, %v4495_v31 }
 0x581   :  { %v9884_v20 = vsel %vm103_vm1, %v4404_v56, %v4405_v39  ;;  %v9901_v57 = vsel %vm166_vm3, %v4465_v2, %v4466_v34  ;;  %v9919_v45 = vsel %vm197_vm2, %v4495_v31, %v4496_v55 }
 0x582   :  { %v9892_v0 = vmul.f32 %v9889_v54, %v4388_v16  ;;  %v4389_v22 = vmax.f32 %v4366_v44, 0.0 }
 0x584   :  { %v9906_v52 = vmul.f32 %v9903_v10, %v4389_v22  ;;  %v4429_v7 = vrot.slane %v9892_v0, 7  ;;  %v4406_v9 = vrot.slane %v9892_v0, 6  ;;  %v9912_v56 = vpack.c.bf16 %v9892_v0, %v9844_v11 }
 0x585   :  { %v4370_v59 = vpop.f32.mrb[192].mxu1  ;;  %v4467_v2 = vrot.slane %v9892_v0, 1  ;;  %v4497_v28 = vrot.slane %v9892_v0, 2 }
 0x586   :  { %v4371_v48 = vadd.f32 %v4370_v59, %v9786_v42  ;;  %v7707_v16 = vpop.f32.mrb[193].mxu1  ;;  %v9925_v44 = vsel %vm127_vm0, %v4428_v33, %v4429_v7  ;;  %v4430_v47 = vrot.slane %v9906_v52, 7  ;;  %v9930_v22 = vsel %vm103_vm1, %v4405_v39, %v4406_v9 }
 0x587   :  { %v4373_v21 = vpop.f32.mrb[194].mxu1  ;;  %v4407_v42 = vrot.slane %v9906_v52, 6  ;;  %v9939_v59 = vsel %vm166_vm3, %v4466_v34, %v4467_v2  ;;  %v4468_v34 = vrot.slane %v9906_v52, 1  ;;  %v4498_v27 = vrot.slane %v9906_v52, 2 }
 0x588   :  { %v4390_v33 = vmax.f32 %v4371_v48, 0.0  ;;  %v4374_v16 = vadd.f32 %v4373_v21, %v9788_v30  ;;  %v7708_v38 = vpop.f32.mrb[195].mxu1  ;;  %v9944_v39 = vsel %vm127_vm0, %v4429_v7, %v4430_v47  ;;  %v9957_v21 = vld [vmem:[#allocation2 + $0x30] sm:$0xff]  ;;  %v9971_v8 = vsel %vm197_vm2, %v4496_v55, %v4497_v28  ;;  %v9973_v30 = vld [vmem:[#allocation2 + $0x38] sm:$0xff] }
 0x589   :  { %v9952_v31 = vsel %vm103_vm1, %v4406_v9, %v4407_v42  ;;  %10730 = vst [vmem:[#allocation22_spill] sm:$0xff] %v9957_v21  ;;  %v9967_v9 = vsel %vm166_vm3, %v4467_v2, %v4468_v34  ;;  %10731 = vst [vmem:[#allocation23_spill] sm:$0xff] %v9973_v30  ;;  %v9989_v13 = vsel %vm197_vm2, %v4497_v28, %v4498_v27 }
 0x58a   :  { %v9960_v7 = vmul.f32 %v9957_v21, %v4390_v33  ;;  %v4391_v38 = vmax.f32 %v4374_v16, 0.0  ;;  %v10023_v21 = vld [vmem:[#allocation2 + $0x40] sm:$0xff] }
 0x58b   :  { %10732 = vst [vmem:[#allocation24_spill] sm:$0xff] %v10023_v21 }
 0x58c   :  { %v9976_v43 = vmul.f32 %v9973_v30, %v4391_v38  ;;  %v4431_v33 = vrot.slane %v9960_v7, 7  ;;  %v4408_v16 = vrot.slane %v9960_v7, 6  ;;  %v9982_v48 = vpack.c.bf16 %v9960_v7, %v9906_v52 }
 0x58d   :  { %v4378_v5 = vpop.f32.mrb[196].mxu1  ;;  %v4469_v55 = vrot.slane %v9960_v7, 1 }
 0x58e   :  { %v4379_v38 = vadd.f32 %v4378_v5, %v9791_v24  ;;  %v7711_v14 = vpop.f32.mrb[197].mxu1  ;;  %v4432_v17 = vrot.slane %v9976_v43, 7  ;;  %v4409_v63 = vrot.slane %v9976_v43, 6  ;;  %v9996_v6 = vsel %vm127_vm0, %v4430_v47, %v4431_v33 }
 0x58f   :  { %v4381_v30 = vpop.f32.mrb[198].mxu1  ;;  %v10002_v23 = vsel %vm103_vm1, %v4407_v42, %v4408_v16  ;;  %v10006_v24 = vsel %vm166_vm3, %v4468_v34, %v4469_v55  ;;  %v4499_v14 = vrot.slane %v9960_v7, 2 }
 0x590   :  { %v4392_v5 = vmax.f32 %v4379_v38, 0.0  ;;  %v7712_v28 = vpop.f32.mrb[199].mxu1  ;;  %v10011_v47 = vsel %vm127_vm0, %v4431_v33, %v4432_v17  ;;  %v10017_v2 = vsel %vm103_vm1, %v4408_v16, %v4409_v63  ;;  %v4470_v33 = vrot.slane %v9976_v43, 1 }
 0x591   :  { %v4500_v30 = vrot.slane %v9976_v43, 2  ;;  %v10036_v42 = vsel %vm197_vm2, %v4498_v27, %v4499_v14 }
 0x592   :  { %v10026_v38 = vmul.f32 %v10023_v21, %v4392_v5  ;;  %v10044_v21 = vsel %vm166_vm3, %v4469_v55, %v4470_v33 }
 0x594   :  { %v4433_v34 = vrot.slane %v10026_v38, 7  ;;  %v4410_v62 = vrot.slane %v10026_v38, 6  ;;  %v4448_v5 = vpack.c.bf16 %v9796_v25, %v10026_v38  ;;  %v4471_v28 = vrot.slane %v10026_v38, 1 }
 0x596   :  { %v10053_v10 = vsel %vm127_vm0, %v4432_v17, %v4433_v34  ;;  %v4442_v54 = vsel %vm127_vm0, %v4433_v34, %v10733_v3  ;;  %v4411_v55 = vsel %vm103_vm1, %v4409_v63, %v4410_v62  ;;  %v4419_v16 = vsel %vm103_vm1, %v4410_v62, %v10734_v4  ;;  %v8226_v17 = vld [vmem:[#allocation5 + $0xa00] sm:$0xff]   ;;  %v8233_v34 = vld [vmem:[#allocation5 + $0xac8] sm:$0xff]  }
 0x597   :  { %v4443_v12 = vpack.c.bf16 %v4442_v54, %v10053_v10  ;;  %v4453_v27 = vpack.c.bf16 %v9816_v19, %v4442_v54  ;;  %v4420_v53 = vpack.c.bf16 %v4419_v16, %v4411_v55  ;;  %v10069_v46 = vsel %vm166_vm3, %v4470_v33, %v4471_v28  ;;  %v8227_v54 = vld [vmem:[#allocation5 + $0xa48] sm:$0xff]  }
 0x598   :  { %v10735_v3 = vrot.slane %v9796_v25, 1  ;;  %v10079_v62 = vsel %vm197_vm2, %v4499_v14, %v4500_v30  ;;  %v4501_v4 = vrot.slane %v10026_v38, 2  ;;  %v4484_v33 = vpack.c.bf16 %v10069_v46, %v10044_v21 }
 0x599   :  { %5130 = vmatprep.mubr.bf16.mxu0 %v4443_v12  ;;  %5202 = vmatprep.mubr.bf16.mxu1 %v4453_v27  ;;  %v10736_v12 = vrot.slane %v9796_v25, 2  ;;  %v10737_v55 = vpack.c.bf16 %v9857_v60, %v9816_v19  ;;  %v8238_v19 = vld [vmem:[#allocation5 + $0xa90] sm:$0xff]  }
 0x59a   :  { %v10075_v63 = vsel %vm166_vm3, %v4471_v28, %v10735_v3  ;;  %5131 = vmatmul.mubr.bf16.vlgmr.msra.gmra.mrb[200].mxu0 %v4420_v53  ;;  %5203 = vmatmul.mubr.bf16.vlgmr.msra.gmra.mrb[200].mxu1 %v4448_v5  ;;  %v10090_v14 = vsel %vm197_vm2, %v4500_v30, %v4501_v4  ;;  %v10738_v53 = vpack.c.bf16 %v9876_v26, %v9857_v60  ;;  %v8228_v30 = vld [vmem:[#allocation5 + $0xa08] sm:$0xff]   ;;  %v8231_v28 = vld [vmem:[#allocation5 + $0xa50] sm:$0xff]   ;;  %v8240_v60 = vld [vmem:[#allocation5 + $0xad8] sm:$0xff]  }
 0x59b   :  { %v4491_v16 = vpack.c.bf16 %v10075_v63, %v10069_v46  ;;  %v10096_v27 = vsel %vm197_vm2, %v4501_v4, %v10736_v12  ;;  %5138 = vmatprep.mubr.bf16.mxu0 %v10737_v55  ;;  %7431 = vmatpush3.bf16.msra.mxu0 %v8226_v17  ;;  %v8234_v3 = vld [vmem:[#allocation5 + $0xa88] sm:$0xff]   ;;  %v8232_v4 = vld [vmem:[#allocation5 + $0xa10] sm:$0xff]   ;;  %v8235_v12 = vld [vmem:[#allocation5 + $0xa58] sm:$0xff]   ;;  %v10739_v55 = vpack.c.bf16 %v9862_v18, %v9822_v51 }
 0x59c   :  { %5210 = vmatprep.mubr.bf16.mxu1 %v10738_v53  ;;  %v4514_v5 = vpack.c.bf16 %v10096_v27, %v10090_v14  ;;  %7477 = vmatpush3.bf16.msra.mxu1 %v8230_v15  ;;  %v10740_v15 = vpack.c.bf16 %v9925_v44, %v9876_v26  ;;  %v10741_v17 = vpack.c.bf16 %v9944_v39, %v9925_v44  ;;  %v8243_v53 = vld [vmem:[#allocation5 + $0xae0] sm:$0xff]   ;;  %v8244_v26 = vld [vmem:[#allocation5 + $0xa68] sm:$0xff]   ;;  %v5493_v14 = vld [vmem:[%s10642_s4 + $0x38] sm:$0xff] }
 0x59d   :  { %7432 = vmatprep.subr.bf16.mxu0 %v8227_v54  ;;  %7478 = vmatprep.subr.bf16.mxu1 %v8233_v34  ;;  %v8236_v54 = vld [vmem:[#allocation5 + $0xa18] sm:$0xff]   ;;  %v8241_v51 = vld [vmem:[#allocation5 + $0xa20] sm:$0xff]   ;;  %v10742_v44 = vpack.c.bf16 %v9930_v22, %v9884_v20  ;;  %v8250_v20 = vld [vmem:[#allocation5 + $0xa30] sm:$0xff]   ;;  %v10756_v46 = vpack.c.bf16 %v10026_v38, %v9976_v43 }
 0x59e   :  { %v8242_v34 = vld [vmem:[#allocation5 + $0xa98] sm:$0xff]   ;;  %v8245_v18 = vld [vmem:[#allocation5 + $0xaa0] sm:$0xff]   ;;  %v8252_v22 = vld [vmem:[#allocation5 + $0xab0] sm:$0xff]  }
 0x59f   :  { %7433 = vmatpush3.bf16.msra.mxu0 %v8228_v30  ;;  %v8247_v30 = vld [vmem:[#allocation5 + $0xae8] sm:$0xff]  }
 0x5a0   :  { %7479 = vmatpush3.bf16.msra.mxu1 %v8234_v3  ;;  %7434 = vmatprep.subr.bf16.mxu0 %v8231_v28  ;;  %v8239_v28 = vld [vmem:[#allocation5 + $0xa60] sm:$0xff]   ;;  %v10743_v3 = vpack.c.bf16 %v9996_v6, %v9944_v39  ;;  %v4447_v39 = vpack.c.bf16 %v10011_v47, %v10011_v47 }
 0x5a1   :  { %7480 = vmatprep.subr.bf16.mxu1 %v8237_v29  ;;  %v10744_v29 = vpack.c.bf16 %v10011_v47, %v9996_v6  ;;  %v8253_v6 = vld [vmem:[#allocation5 + $0xa78] sm:$0xff]   ;;  %v4452_v47 = vpack.c.bf16 %v9976_v43, %v9976_v43 }
 0x5a2   :  { %5139 = vmatmul.mubr.bf16.gmra.mrb[204].mxu0 %v10739_v55  ;;  %5211 = vmatmul.mubr.bf16.gmra.mrb[204].mxu1 %v9850_v41  ;;  %v4457_v55 = vpack.c.bf16 %v10053_v10, %v10053_v10  ;;  %v4424_v10 = vpack.c.bf16 %v10017_v2, %v10017_v2  ;;  %v10748_v2 = vpack.c.bf16 %v9799_v32, %v9796_v25 }
 0x5a3   :  { %5146 = vmatprep.mubr.bf16.mxu0 %v10740_v15  ;;  %5218 = vmatprep.mubr.bf16.mxu1 %v10741_v17  ;;  %v8255_v15 = vld [vmem:[#allocation5 + $0xaf8] sm:$0xff]   ;;  %v10745_v17 = vpack.c.bf16 %v10002_v23, %v9952_v31  ;;  %v10746_v23 = vpack.c.bf16 %v9871_v49, %v9828_v36  ;;  %v10747_v31 = vpack.c.bf16 %v9901_v57, %v9871_v49  ;;  %v8259_v49 = vld [vmem:[#allocation5 + $0xb10] sm:$0xff]  }
 0x5a4   :  { %7435 = vmatpush3.bf16.msra.mxu0 %v8232_v4  ;;  %7481 = vmatpush3.bf16.msra.mxu1 %v8238_v19  ;;  %v8246_v4 = vld [vmem:[#allocation5 + $0xa28] sm:$0xff]   ;;  %v10751_v32 = vpack.c.bf16 %v9844_v11, %v9839_v58  ;;  %v10754_v58 = vpack.c.bf16 %v9906_v52, %v9892_v0  ;;  %v4485_v0 = vpack.c.bf16 %v10075_v63, %v10075_v63  ;;  %v5490_v63 = vld [vmem:[%s10642_s4 + $0x20] sm:$0xff] }
 0x5a5   :  { %7436 = vmatprep.subr.bf16.mxu0 %v8235_v12  ;;  %7482 = vmatprep.subr.bf16.mxu1 %v8240_v60  ;;  %v8248_v19 = vld [vmem:[#allocation5 + $0xaa8] sm:$0xff]   ;;  %v8249_v12 = vld [vmem:[#allocation5 + $0xa70] sm:$0xff]   ;;  %v4492_v52 = vpack.c.bf16 %v9828_v36, %v9828_v36  ;;  %v4487_v36 = vpack.c.bf16 %v9796_v25, %v9796_v25  ;;  %v10759_v25 = vpack.c.bf16 %v10079_v62, %v10036_v42  ;;  %v5491_v62 = vld [vmem:[%s10642_s4 + $0x28] sm:$0xff] }
 0x5a6   :  { %v8251_v60 = vld [vmem:[#allocation5 + $0xaf0] sm:$0xff]   ;;  %v8262_v11 = vld [vmem:[#allocation5 + $0xb28] sm:$0xff]  }
 0x5a7   :  { %v5488_v42 = vld [vmem:[%s10642_s4 + $0x10] sm:$0xff] }
 0x5a8   :  { %7437 = vmatpush3.bf16.msra.mxu0 %v8236_v54  ;;  %7483 = vmatpush3.bf16.msra.mxu1 %v8242_v34  ;;  %v8254_v54 = vld [vmem:[#allocation5 + $0xa38] sm:$0xff]  }
 0x5a9   :  { %7438 = vmatprep.subr.bf16.mxu0 %v8239_v28  ;;  %7484 = vmatprep.subr.bf16.mxu1 %v8243_v53  ;;  %v8256_v34 = vld [vmem:[#allocation5 + $0xab8] sm:$0xff]   ;;  %v8257_v28 = vld [vmem:[#allocation5 + $0xb00] sm:$0xff]   ;;  %v10749_v53 = vpack.c.bf16 %v9939_v59, %v9901_v57  ;;  %v10753_v57 = vpack.c.bf16 %v10044_v21, %v10006_v24  ;;  %v10755_v21 = vpack.c.bf16 %v9976_v43, %v9960_v7 }
 0x5aa   :  { %5147 = vmatmul.mubr.bf16.gmra.mrb[208].mxu0 %v10742_v44  ;;  %5219 = vmatmul.mubr.bf16.gmra.mrb[208].mxu1 %v9912_v56  ;;  %v10757_v43 = vpack.c.bf16 %v9919_v45, %v9897_v50  ;;  %v10758_v7 = vpack.c.bf16 %v9989_v13, %v9971_v8  ;;  %v4515_v8 = vpack.c.bf16 %v9834_v40, %v9834_v40  ;;  %v5486_v13 = vld [vmem:[%s10642_s4] sm:$0xff]  ;;  %v5487_v50 = vld [vmem:[%s10642_s4 + $0x8] sm:$0xff]  ;;  %v8393_v45 = vmov 0.0|0.0   ;;  %v5489_v40 = vld [vmem:[%s10642_s4 + $0x18] sm:$0xff] }
 0x5ab   :  { %5154 = vmatprep.mubr.bf16.mxu0 %v10743_v3  ;;  %5226 = vmatprep.mubr.bf16.mxu1 %v10744_v29  ;;  %v5496_v3 = vld [vmem:[%s10642_s4 + $0x50] sm:$0xff]  ;;  %v5497_v29 = vld [vmem:[%s10642_s4 + $0x58] sm:$0xff] }
 0x5ac   :  { %7439 = vmatpush3.bf16.msra.mxu0 %v8241_v51  ;;  %7485 = vmatpush3.bf16.msra.mxu1 %v8245_v18  ;;  %v10750_v51 = vpack.c.bf16 %v9967_v9, %v9939_v59  ;;  %v8258_v18 = vld [vmem:[#allocation5 + $0xb08] sm:$0xff]   ;;  %v8260_v59 = vld [vmem:[#allocation5 + $0xb18] sm:$0xff]  }
 0x5ad   :  { %7440 = vmatprep.subr.bf16.mxu0 %v8244_v26  ;;  %7486 = vmatprep.subr.bf16.mxu1 %v8247_v30  ;;  %v8261_v26 = vld [vmem:[#allocation5 + $0xb20] sm:$0xff]  }
 0x5ae   :  { %v5495_v30 = vld [vmem:[%s10642_s4 + $0x48] sm:$0xff] }
 0x5b0   :  { %7441 = vmatpush3.bf16.msra.mxu0 %v8246_v4  ;;  %7487 = vmatpush3.bf16.msra.mxu1 %v8248_v19  ;;  %v7843_v4 = vpack.c.bf16 %v5497_v29, %v5496_v3  ;;  %v5498_v19 = vld [vmem:[%s10642_s4 + $0x60] sm:$0xff] }
 0x5b1   :  { %7442 = vmatprep.subr.bf16.mxu0 %v8249_v12  ;;  %7488 = vmatprep.subr.bf16.mxu1 %v8251_v60  ;;  %v5499_v12 = vld [vmem:[%s10642_s4 + $0x68] sm:$0xff]  ;;  %v5500_v60 = vld [vmem:[%s10642_s4 + $0x70] sm:$0xff] }
 0x5b2   :  { %5155 = vmatmul.mubr.bf16.gmra.mrb[212].mxu0 %v10745_v17  ;;  %5227 = vmatmul.mubr.bf16.gmra.mrb[212].mxu1 %v9982_v48 }
 0x5b3   :  { %5162 = vmatprep.mubr.bf16.mxu0 %v4447_v39  ;;  %5234 = vmatprep.mubr.bf16.mxu1 %v4457_v55 }
 0x5b4   :  { %7443 = vmatpush3.bf16.msra.mxu0 %v8250_v20  ;;  %7489 = vmatpush3.bf16.msra.mxu1 %v8252_v22  ;;  %v7846_v20 = vpack.c.bf16 %v5499_v12, %v5498_v19  ;;  %v5501_v22 = vld [vmem:[%s10642_s4 + $0x78] sm:$0xff] }
 0x5b5   :  { %7444 = vmatprep.subr.bf16.mxu0 %v8253_v6  ;;  %7490 = vmatprep.subr.bf16.mxu1 %v8255_v15  ;;  %v7849_v39 = vpack.c.bf16 %v5501_v22, %v5500_v60  ;;  %v10279_v15 = vld [vmem:[#allocation7 + $0x4] ss:$0 sm:$0xff] }
 0x5b8   :  { %7445 = vmatpush3.bf16.msra.mxu0 %v8254_v54  ;;  %7491 = vmatpush3.bf16.msra.mxu1 %v8256_v34 }
 0x5b9   :  { %7713 = vmatprep.subr.bf16.mxu0 %v10698_v1  ;;  %7827 = vmatprep.subr.bf16.mxu1 %v8393_v45 }
 0x5ba   :  { %5163 = vmatmul.mubr.bf16.gmra.mrb[216].mxu0 %v4424_v10  ;;  %5235 = vmatmul.mubr.bf16.gmra.mrb[216].mxu1 %v4452_v47 }
 0x5bb   :  { %5274 = vmatprep.mubr.bf16.mxu0 %v10746_v23  ;;  %5346 = vmatprep.mubr.bf16.mxu1 %v10747_v31 }
 0x5c2   :  { %5275 = vmatmul.mubr.bf16.vlgmr.msra.gmra.mrb[220].mxu0 %v10748_v2  ;;  %5347 = vmatmul.mubr.bf16.vlgmr.msra.gmra.mrb[220].mxu1 %v9850_v41  ;;  %v10752_v41 = vpack.c.bf16 %v10006_v24, %v9967_v9  ;;  %v4462_v9 = vpack.c.bf16 %v10026_v38, %v10026_v38  ;;  %v7828_v24 = vpack.c.bf16 %v5487_v50, %v5486_v13 }
 0x5c3   :  { %5282 = vmatprep.mubr.bf16.mxu0 %v10749_v53  ;;  %5354 = vmatprep.mubr.bf16.mxu1 %v10750_v51  ;;  %v7831_v38 = vpack.c.bf16 %v5489_v40, %v5488_v42 }
 0x5c4   :  { %7714 = vmatpush3.bf16.msra.mxu0 %v8257_v28  ;;  %7829 = vmatpush3.bf16.msra.mxu1 %v7828_v24 }
 0x5c5   :  { %7715 = vmatprep.subr.bf16.mxu0 %v10698_v1  ;;  %7830 = vmatprep.subr.bf16.mxu1 %v8393_v45 }
 0x5c8   :  { %7716 = vmatpush3.bf16.msra.mxu0 %v8258_v18  ;;  %7832 = vmatpush3.bf16.msra.mxu1 %v7831_v38 }
 0x5c9   :  { %7717 = vmatprep.subr.bf16.mxu0 %v10698_v1  ;;  %7833 = vmatprep.subr.bf16.mxu1 %v8393_v45 }
 0x5ca   :  { %5283 = vmatmul.mubr.bf16.gmra.mrb[224].mxu0 %v10751_v32  ;;  %5355 = vmatmul.mubr.bf16.gmra.mrb[224].mxu1 %v9912_v56  ;;  %v8263_v56 = vld [vmem:[#allocation5 + $0xb30] sm:$0xff]  }
 0x5cb   :  { %5290 = vmatprep.mubr.bf16.mxu0 %v10752_v41  ;;  %5362 = vmatprep.mubr.bf16.mxu1 %v10753_v57 }
 0x5cc   :  { %7718 = vmatpush3.bf16.msra.mxu0 %v8259_v49 }
 0x5cd   :  { %7719 = vmatprep.subr.bf16.mxu0 %v10698_v1 }
 0x5d0   :  { %7720 = vmatpush3.bf16.msra.mxu0 %v8260_v59 }
 0x5d1   :  { %7721 = vmatprep.subr.bf16.mxu0 %v10698_v1 }
 0x5d2   :  { %5291 = vmatmul.mubr.bf16.gmra.mrb[228].mxu0 %v10754_v58  ;;  %5363 = vmatmul.mubr.bf16.gmra.mrb[228].mxu1 %v9982_v48  ;;  %v8264_v48 = vld [vmem:[#allocation5 + $0xb38] sm:$0xff]  }
 0x5d3   :  { %5298 = vmatprep.mubr.bf16.mxu0 %v4484_v33  ;;  %5370 = vmatprep.mubr.bf16.mxu1 %v4491_v16  ;;  %v7834_v33 = vpack.c.bf16 %v5491_v62, %v5490_v63  ;;  %v5492_v16 = vld [vmem:[%s10642_s4 + $0x30] sm:$0xff] }
 0x5d4   :  { %7722 = vmatpush3.bf16.msra.mxu0 %v8261_v26  ;;  %v7837_v27 = vpack.c.bf16 %v5493_v14, %v5492_v16 }
 0x5d5   :  { %7723 = vmatprep.subr.bf16.mxu0 %v10698_v1  ;;  %7835 = vmatpush3.bf16.msra.mxu1 %v7834_v33 }
 0x5d6   :  { %7836 = vmatprep.subr.bf16.mxu1 %v8393_v45 }
 0x5d8   :  { %7724 = vmatpush3.bf16.msra.mxu0 %v8262_v11 }
 0x5d9   :  { %7725 = vmatprep.subr.bf16.mxu0 %v10698_v1  ;;  %7838 = vmatpush3.bf16.msra.mxu1 %v7837_v27 }
 0x5da   :  { %5299 = vmatmul.mubr.bf16.gmra.mrb[232].mxu0 %v10755_v21  ;;  %5371 = vmatmul.mubr.bf16.gmra.mrb[232].mxu1 %v10756_v46 }
 0x5db   :  { %5306 = vmatprep.mubr.bf16.mxu0 %v4485_v0  ;;  %5378 = vmatprep.mubr.bf16.mxu1 %v4492_v52 }
 0x5dc   :  { %7726 = vmatpush3.bf16.msra.mxu0 %v8263_v56  ;;  %7839 = vmatprep.subr.bf16.mxu1 %v8393_v45 }
 0x5dd   :  { %7727 = vmatprep.subr.bf16.mxu0 %v10698_v1 }
 0x5e0   :  { %7728 = vmatpush3.bf16.msra.mxu0 %v8264_v48 }
 0x5e2   :  { %5307 = vmatmul.mubr.bf16.gmra.mrb[236].mxu0 %v4462_v9  ;;  %5379 = vmatmul.mubr.bf16.gmra.mrb[236].mxu1 %v4487_v36 }
 0x5e3   :  { %7729 = vmatprep.mubr.msk.bf16.mxu0 %vm8392_vm4, %v10698_v1  ;;  %7781 = vmatprep.mubr.msk.f32.mxu1 %vm8392_vm4, %v10698_v1 }
 0x5ea   :  { %7730 = vmatmul.mubr.bf16.vlgmr.msra.gmra.mrb[240].mxu0 %v10757_v43 }
 0x5eb   :  { %7733 = vmatprep.mubr.msk.bf16.mxu0 %vm8392_vm4, %v10698_v1 }
 0x5f2   :  { %7734 = vmatmul.mubr.bf16.gmra.mrb[244].mxu0 %v10758_v7 }
 0x5f3   :  { %7737 = vmatprep.mubr.msk.bf16.mxu0 %vm8392_vm4, %v10698_v1 }
 0x5fa   :  { %7738 = vmatmul.mubr.bf16.gmra.mrb[248].mxu0 %v10759_v25 }
 0x5fb   :  { %7741 = vmatprep.mubr.msk.bf16.mxu0 %vm8392_vm4, %v10698_v1 }
 0x602   :  { %7742 = vmatmul.mubr.bf16.gmra.mrb[252].mxu0 %v4514_v5  ;;  %v5494_v5 = vld [vmem:[%s10642_s4 + $0x40] sm:$0xff] }
 0x603   :  { %7745 = vmatprep.mubr.msk.bf16.mxu0 %vm8392_vm4, %v10698_v1  ;;  %v7840_v44 = vpack.c.bf16 %v5495_v30, %v5494_v5 }
 0x605   :  { %7841 = vmatpush3.bf16.msra.mxu1 %v7840_v44 }
 0x606   :  { %7842 = vmatprep.subr.bf16.mxu1 %v8393_v45 }
 0x609   :  { %7844 = vmatpush3.bf16.msra.mxu1 %v7843_v4 }
 0x60a   :  { %7746 = vmatmul.mubr.bf16.gmra.mrb[0].mxu0 %v4515_v8  ;;  %7845 = vmatprep.subr.bf16.mxu1 %v8393_v45 }
 0x60d   :  { %7847 = vmatpush3.bf16.msra.mxu1 %v7846_v20 }
 0x60e   :  { %7848 = vmatprep.subr.bf16.mxu1 %v8393_v45 }
 0x611   :  { %7850 = vmatpush3.bf16.msra.mxu1 %v7849_v39 }
 0x612   :  { %7851 = vmatprep.subr.bf16.mxu1 %v8393_v45 }
 0x66d   :  { %v7354_v55 = vpop.f32.mrb[200].mxu0  ;;  %v7400_v6 = vpop.f32.mrb[200].mxu1 }
 0x66e   :  { %v7355_v17 = vpop.f32.mrb[201].mxu0  ;;  %v7401_v54 = vpop.f32.mrb[201].mxu1 }
 0x66f   :  { %v7356_v34 = vadd.f32 %v7355_v17, %v7354_v55  ;;  %v7402_v10 = vadd.f32 %v7401_v54, %v7400_v6  ;;  %v7357_v47 = vpop.f32.mrb[202].mxu0  ;;  %v7403_v23 = vpop.f32.mrb[202].mxu1 }
 0x670   :  { %v7358_v31 = vpop.f32.mrb[203].mxu0  ;;  %v7404_v28 = vpop.f32.mrb[203].mxu1 }
 0x671   :  { %v5133_v2 = vadd.f32 %v7356_v34, %v10279_v15  ;;  %v7359_v53 = vadd.f32 %v7358_v31, %v7357_v47  ;;  %v7405_v51 = vadd.f32 %v7404_v28, %v7403_v23 }
 0x673   :  { %v10282_v18 = vadd.f32 %v7402_v10, %v5133_v2  ;;  %v5136_v49 = vadd.f32 %v7359_v53, %v10279_v15 }
 0x675   :  { %v10285_v32 = vadd.f32 %v7405_v51, %v5136_v49  ;;  %v7360_v41 = vpop.f32.mrb[204].mxu0  ;;  %v7406_v57 = vpop.f32.mrb[204].mxu1 }
 0x676   :  { %v7361_v59 = vpop.f32.mrb[205].mxu0  ;;  %v7407_v26 = vpop.f32.mrb[205].mxu1 }
 0x677   :  { %v7362_v58 = vadd.f32 %v7361_v59, %v7360_v41  ;;  %v7408_v11 = vadd.f32 %v7407_v26, %v7406_v57  ;;  %v7363_v56 = vpop.f32.mrb[206].mxu0  ;;  %v7409_v0 = vpop.f32.mrb[206].mxu1 }
 0x678   :  { %v7364_v52 = vpop.f32.mrb[207].mxu0  ;;  %v7410_v21 = vpop.f32.mrb[207].mxu1 }
 0x679   :  { %v5141_v46 = vadd.f32 %v7362_v58, %v10279_v15  ;;  %v7365_v48 = vadd.f32 %v7364_v52, %v7363_v56  ;;  %v7411_v9 = vadd.f32 %v7410_v21, %v7409_v0 }
 0x67b   :  { %v10288_v36 = vadd.f32 %v7408_v11, %v5141_v46  ;;  %v5144_v43 = vadd.f32 %v7365_v48, %v10279_v15 }
 0x67d   :  { %v10291_v7 = vadd.f32 %v7411_v9, %v5144_v43  ;;  %v7366_v25 = vpop.f32.mrb[208].mxu0  ;;  %v7412_v8 = vpop.f32.mrb[208].mxu1 }
 0x67e   :  { %v7367_v13 = vpop.f32.mrb[209].mxu0  ;;  %v7413_v50 = vpop.f32.mrb[209].mxu1 }
 0x67f   :  { %v7368_v24 = vadd.f32 %v7367_v13, %v7366_v25  ;;  %v7414_v42 = vadd.f32 %v7413_v50, %v7412_v8  ;;  %v7369_v40 = vpop.f32.mrb[210].mxu0  ;;  %v7415_v38 = vpop.f32.mrb[210].mxu1 }
 0x680   :  { %v7370_v63 = vpop.f32.mrb[211].mxu0  ;;  %v7416_v62 = vpop.f32.mrb[211].mxu1 }
 0x681   :  { %v5149_v33 = vadd.f32 %v7368_v24, %v10279_v15  ;;  %v7371_v16 = vadd.f32 %v7370_v63, %v7369_v40  ;;  %v7417_v14 = vadd.f32 %v7416_v62, %v7415_v38 }
 0x683   :  { %v10294_v27 = vadd.f32 %v7414_v42, %v5149_v33  ;;  %v5152_v5 = vadd.f32 %v7371_v16, %v10279_v15 }
 0x685   :  { %v10297_v30 = vadd.f32 %v7417_v14, %v5152_v5  ;;  %v7372_v44 = vpop.f32.mrb[212].mxu0  ;;  %v7418_v3 = vpop.f32.mrb[212].mxu1 }
 0x686   :  { %v7373_v29 = vpop.f32.mrb[213].mxu0  ;;  %v7419_v4 = vpop.f32.mrb[213].mxu1 }
 0x687   :  { %v7374_v19 = vadd.f32 %v7373_v29, %v7372_v44  ;;  %v7420_v12 = vadd.f32 %v7419_v4, %v7418_v3  ;;  %v7375_v60 = vpop.f32.mrb[214].mxu0  ;;  %v7421_v20 = vpop.f32.mrb[214].mxu1 }
 0x688   :  { %v7376_v22 = vpop.f32.mrb[215].mxu0  ;;  %v7422_v39 = vpop.f32.mrb[215].mxu1 }
 0x689   :  { %v5157_v55 = vadd.f32 %v7374_v19, %v10279_v15  ;;  %v7377_v6 = vadd.f32 %v7376_v22, %v7375_v60  ;;  %v7423_v17 = vadd.f32 %v7422_v39, %v7421_v20 }
 0x68b   :  { %v10300_v54 = vadd.f32 %v7420_v12, %v5157_v55  ;;  %v5160_v34 = vadd.f32 %v7377_v6, %v10279_v15 }
 0x68d   :  { %v10303_v10 = vadd.f32 %v7423_v17, %v5160_v34  ;;  %v7378_v47 = vpop.f32.mrb[216].mxu0  ;;  %v7424_v23 = vpop.f32.mrb[216].mxu1 }
 0x68e   :  { %v7379_v31 = vpop.f32.mrb[217].mxu0  ;;  %v7425_v28 = vpop.f32.mrb[217].mxu1 }
 0x68f   :  { %v7380_v2 = vadd.f32 %v7379_v31, %v7378_v47  ;;  %v7426_v53 = vadd.f32 %v7425_v28, %v7424_v23  ;;  %v7381_v51 = vpop.f32.mrb[218].mxu0  ;;  %v7427_v49 = vpop.f32.mrb[218].mxu1 }
 0x690   :  { %v7382_v41 = vpop.f32.mrb[219].mxu0  ;;  %v7428_v57 = vpop.f32.mrb[219].mxu1 }
 0x691   :  { %v5165_v59 = vadd.f32 %v7380_v2, %v10279_v15 }
 0x693   :  { %v10306_v26 = vadd.f32 %v7426_v53, %v5165_v59 }
 0x695   :  { %v7446_v58 = vpop.f32.mrb[220].mxu0  ;;  %v7492_v11 = vpop.f32.mrb[220].mxu1 }
 0x696   :  { %v7447_v56 = vpop.f32.mrb[221].mxu0  ;;  %v7493_v0 = vpop.f32.mrb[221].mxu1 }
 0x697   :  { %v7448_v52 = vadd.f32 %v7447_v56, %v7446_v58  ;;  %v7494_v21 = vadd.f32 %v7493_v0, %v7492_v11  ;;  %v7449_v46 = vpop.f32.mrb[222].mxu0  ;;  %v7495_v48 = vpop.f32.mrb[222].mxu1 }
 0x698   :  { %v7450_v9 = vpop.f32.mrb[223].mxu0  ;;  %v7496_v43 = vpop.f32.mrb[223].mxu1 }
 0x699   :  { %v5277_v25 = vadd.f32 %v7448_v52, %v10282_v18  ;;  %v7451_v8 = vadd.f32 %v7450_v9, %v7449_v46  ;;  %v7497_v13 = vadd.f32 %v7496_v43, %v7495_v48 }
 0x69b   :  { %v5280_v50 = vadd.f32 %v7451_v8, %v10285_v32  ;;  %v10310_v24 = vadd.f32 %v7494_v21, %v5277_v25 }
 0x69d   :  { %v7452_v15 = vpop.f32.mrb[224].mxu0  ;;  %v7498_v42 = vpop.f32.mrb[224].mxu1  ;;  %v10312_v40 = vadd.f32 %v7497_v13, %v5280_v50 }
 0x69e   :  { %v7453_v38 = vpop.f32.mrb[225].mxu0  ;;  %v7499_v63 = vpop.f32.mrb[225].mxu1 }
 0x69f   :  { %v7454_v62 = vadd.f32 %v7453_v38, %v7452_v15  ;;  %v7500_v33 = vadd.f32 %v7499_v63, %v7498_v42  ;;  %v7455_v16 = vpop.f32.mrb[226].mxu0  ;;  %v7501_v14 = vpop.f32.mrb[226].mxu1 }
 0x6a0   :  { %v7456_v5 = vpop.f32.mrb[227].mxu0  ;;  %v7502_v44 = vpop.f32.mrb[227].mxu1 }
 0x6a1   :  { %v5285_v18 = vadd.f32 %v7454_v62, %v10288_v36  ;;  %v7457_v3 = vadd.f32 %v7456_v5, %v7455_v16  ;;  %v7503_v29 = vadd.f32 %v7502_v44, %v7501_v14 }
 0x6a3   :  { %v5288_v32 = vadd.f32 %v7457_v3, %v10291_v7  ;;  %v5357_v4 = vadd.f32 %v7500_v33, %v5285_v18 }
 0x6a5   :  { %v7458_v19 = vpop.f32.mrb[228].mxu0  ;;  %v7504_v12 = vpop.f32.mrb[228].mxu1  ;;  %v5360_v60 = vadd.f32 %v7503_v29, %v5288_v32  ;;  %v8288_v32 = vld [vmem:[#allocation2] sm:$0xff] }
 0x6a6   :  { %v7459_v20 = vpop.f32.mrb[229].mxu0  ;;  %v7505_v22 = vpop.f32.mrb[229].mxu1 }
 0x6a7   :  { %v7460_v39 = vadd.f32 %v7459_v20, %v7458_v19  ;;  %v7506_v55 = vadd.f32 %v7505_v22, %v7504_v12  ;;  %v7461_v6 = vpop.f32.mrb[230].mxu0  ;;  %v7507_v17 = vpop.f32.mrb[230].mxu1 }
 0x6a8   :  { %v7462_v34 = vpop.f32.mrb[231].mxu0  ;;  %v7508_v47 = vpop.f32.mrb[231].mxu1 }
 0x6a9   :  { %v5293_v23 = vadd.f32 %v7460_v39, %v10294_v27  ;;  %v7463_v31 = vadd.f32 %v7462_v34, %v7461_v6  ;;  %v7509_v36 = vadd.f32 %v7508_v47, %v7507_v17  ;;  %v10760_v34 = vld [vmem:[#allocation12_spill] sm:$0xff] }
 0x6aa   :  { %v10761_v47 = vld [vmem:[#allocation16_spill] sm:$0xff] }
 0x6ab   :  { %v5296_v28 = vadd.f32 %v7463_v31, %v10297_v30  ;;  %v5365_v2 = vadd.f32 %v7506_v55, %v5293_v23 }
 0x6ad   :  { %v7464_v7 = vpop.f32.mrb[232].mxu0  ;;  %v7510_v53 = vpop.f32.mrb[232].mxu1  ;;  %v10318_v51 = vadd.f32 %v7509_v36, %v5296_v28 }
 0x6ae   :  { %v7465_v49 = vpop.f32.mrb[233].mxu0  ;;  %v7511_v41 = vpop.f32.mrb[233].mxu1 }
 0x6af   :  { %v7466_v57 = vadd.f32 %v7465_v49, %v7464_v7  ;;  %v7512_v59 = vadd.f32 %v7511_v41, %v7510_v53  ;;  %v7467_v58 = vpop.f32.mrb[234].mxu0  ;;  %v7513_v11 = vpop.f32.mrb[234].mxu1  ;;  %v10763_v41 = vld [vmem:[#allocation19_spill] sm:$0xff] }
 0x6b0   :  { %v7468_v56 = vpop.f32.mrb[235].mxu0  ;;  %v7514_v0 = vpop.f32.mrb[235].mxu1 }
 0x6b1   :  { %v5301_v52 = vadd.f32 %v7466_v57, %v10300_v54  ;;  %v7469_v27 = vadd.f32 %v7468_v56, %v7467_v58  ;;  %v7515_v21 = vadd.f32 %v7514_v0, %v7513_v11  ;;  %v10764_v58 = vld [vmem:[#allocation17_spill] sm:$0xff]  ;;  %v10765_v56 = vld [vmem:[#allocation20_spill] sm:$0xff] }
 0x6b3   :  { %v5304_v46 = vadd.f32 %v7469_v27, %v10303_v10  ;;  %v5373_v30 = vadd.f32 %v7512_v59, %v5301_v52 }
 0x6b5   :  { %v7470_v48 = vpop.f32.mrb[236].mxu0  ;;  %v7516_v9 = vpop.f32.mrb[236].mxu1  ;;  %v10322_v43 = vadd.f32 %v7515_v21, %v5304_v46 }
 0x6b6   :  { %v7471_v25 = vpop.f32.mrb[237].mxu0  ;;  %v7517_v8 = vpop.f32.mrb[237].mxu1 }
 0x6b7   :  { %v7472_v13 = vadd.f32 %v7471_v25, %v7470_v48  ;;  %v7518_v50 = vadd.f32 %v7517_v8, %v7516_v9  ;;  %v7473_v15 = vpop.f32.mrb[238].mxu0  ;;  %v7519_v42 = vpop.f32.mrb[238].mxu1  ;;  %v10767_v8 = vld [vmem:[#allocation21_spill] sm:$0xff] }
 0x6b8   :  { %v7474_v38 = vpop.f32.mrb[239].mxu0  ;;  %v7520_v63 = vpop.f32.mrb[239].mxu1  ;;  %v10768_v15 = vld [vmem:[#allocation14_spill] sm:$0xff] }
 0x6b9   :  { %v5309_v62 = vadd.f32 %v7472_v13, %v10306_v26  ;;  %v10769_v38 = vld [vmem:[#allocation22_spill] sm:$0xff] }
 0x6bb   :  { %v10325_v54 = vadd.f32 %v7518_v50, %v5309_v62 }
 0x6bd   :  { %v5420_v33 = vpop.f32.mrb[240].mxu0 }
 0x6be   :  { %v5421_v10 = vadd.f32 %v5420_v33, %v10310_v24  ;;  %v7731_v16 = vpop.f32.mrb[241].mxu0 }
 0x6bf   :  { %v5423_v14 = vpop.f32.mrb[242].mxu0 }
 0x6c0   :  { %v5458_v5 = vadd.f32 %v5421_v10, %v9539_v61  ;;  %v5424_v44 = vadd.f32 %v5423_v14, %v10312_v40  ;;  %v7732_v18 = vpop.f32.mrb[243].mxu0  ;;  %v8289_v40 = vld [vmem:[#allocation2 + $0x8] sm:$0xff] }
 0x6c2   :  { %v5467_v3 = vmax.f32 %v5458_v5, 0.0  ;;  %v5459_v29 = vadd.f32 %v5424_v44, %v9532_v37  ;;  %v10771_v44 = vld [vmem:[#allocation23_spill] sm:$0xff] }
 0x6c4   :  { %v5476_v19 = vmul.f32 %v8288_v32, %v5467_v3  ;;  %v5468_v12 = vmax.f32 %v5459_v29, 0.0  ;;  %v10772_v29 = vld [vmem:[#allocation24_spill] sm:$0xff] }
 0x6c5   :  { %v5428_v20 = vpop.f32.mrb[244].mxu0 }
 0x6c6   :  { %v5429_v26 = vadd.f32 %v5428_v20, %v5357_v4  ;;  %v7735_v22 = vpop.f32.mrb[245].mxu0  ;;  %7782 = vmatmul.mubr.f32.vlgmr.msra.gmra.mrb[240].mxu1 %v5476_v19  ;;  %v5477_v6 = vmul.f32 %v8289_v40, %v5468_v12  ;;  %v8395_v19 = vmov 4   ;;  %v6536_v12 = vld [vmem:[#allocation7 + $0x5] ss:$0 sm:$0xff] }
 0x6c7   :  { %v5431_v39 = vpop.f32.mrb[246].mxu0  ;;  %7784 = vmatprep.mubr.msk.f32.mxu1 %vm8392_vm4, %v10698_v1  ;;  %7880 = vset.pattern.permute.xlu0 %v8395_v19  ;;  %v5646_v19 = vld [vmem:[%s10644_s6 + $0x10] sm:$0xff] }
 0x6c8   :  { %v5460_v24 = vadd.f32 %v5429_v26, %v9534_v35  ;;  %v5432_v61 = vadd.f32 %v5431_v39, %v5360_v60  ;;  %v7736_v55 = vpop.f32.mrb[247].mxu0  ;;  %v10762_v35 = vld [vmem:[#allocation13_spill] sm:$0xff] }
 0x6ca   :  { %v5469_v17 = vmax.f32 %v5460_v24, 0.0  ;;  %v5461_v37 = vadd.f32 %v5432_v61, %v10760_v34  ;;  %7785 = vmatmul.mubr.f32.gmra.mrb[242].mxu1 %v5477_v6 }
 0x6cb   :  { %7787 = vmatprep.mubr.msk.f32.mxu1 %vm8392_vm4, %v10698_v1 }
 0x6cc   :  { %v5470_v4 = vmax.f32 %v5461_v37, 0.0  ;;  %v5478_v23 = vmul.f32 %v10761_v47, %v5469_v17 }
 0x6cd   :  { %v5436_v31 = vpop.f32.mrb[248].mxu0 }
 0x6ce   :  { %v5437_v36 = vadd.f32 %v5436_v31, %v5365_v2  ;;  %v7739_v28 = vpop.f32.mrb[249].mxu0  ;;  %7788 = vmatmul.mubr.f32.gmra.mrb[244].mxu1 %v5478_v23  ;;  %v5479_v57 = vmul.f32 %v10763_v41, %v5470_v4 }
 0x6cf   :  { %v5439_v7 = vpop.f32.mrb[250].mxu0  ;;  %7790 = vmatprep.mubr.msk.f32.mxu1 %vm8392_vm4, %v10698_v1 }
 0x6d0   :  { %v5462_v60 = vadd.f32 %v5437_v36, %v10762_v35  ;;  %v5440_v53 = vadd.f32 %v5439_v7, %v10318_v51  ;;  %v7740_v49 = vpop.f32.mrb[251].mxu0  ;;  %v10766_v51 = vld [vmem:[#allocation18_spill] sm:$0xff] }
 0x6d2   :  { %v5471_v59 = vmax.f32 %v5462_v60, 0.0  ;;  %v5463_v11 = vadd.f32 %v5440_v53, %v10764_v58  ;;  %7791 = vmatmul.mubr.f32.gmra.mrb[246].mxu1 %v5479_v57  ;;  %v6061_v57 = vld [vmem:[%s10645_s7] sm:$0xff] }
 0x6d3   :  { %7793 = vmatprep.mubr.msk.f32.mxu1 %vm8392_vm4, %v10698_v1 }
 0x6d4   :  { %v5472_v2 = vmax.f32 %v5463_v11, 0.0  ;;  %v5480_v0 = vmul.f32 %v10765_v56, %v5471_v59  ;;  %v6062_v59 = vld [vmem:[%s10645_s7 + $0x8] sm:$0xff] }
 0x6d5   :  { %v5444_v52 = vpop.f32.mrb[252].mxu0 }
 0x6d6   :  { %v5445_v27 = vadd.f32 %v5444_v52, %v5373_v30  ;;  %v7743_v21 = vpop.f32.mrb[253].mxu0  ;;  %7794 = vmatmul.mubr.f32.gmra.mrb[248].mxu1 %v5480_v0  ;;  %v5481_v13 = vmul.f32 %v10767_v8, %v5472_v2  ;;  %v7852_v2 = vpack.c.bf16 %v6062_v59, %v6061_v57  ;;  %v6064_v8 = vld [vmem:[%s10645_s7 + $0x18] sm:$0xff] }
 0x6d7   :  { %v5447_v46 = vpop.f32.mrb[254].mxu0  ;;  %7796 = vmatprep.mubr.msk.f32.mxu1 %vm8392_vm4, %v10698_v1 }
 0x6d8   :  { %v5464_v48 = vadd.f32 %v5445_v27, %v10766_v51  ;;  %v5448_v9 = vadd.f32 %v5447_v46, %v10322_v43  ;;  %v7744_v25 = vpop.f32.mrb[255].mxu0  ;;  %v10770_v43 = vld [vmem:[#allocation15_spill] sm:$0xff]  ;;  %7853 = vmatpush3.bf16.msra.mxu1 %v7852_v2 }
 0x6d9   :  { %7854 = vmatprep.subr.bf16.mxu1 %v8393_v45  ;;  %v6063_v25 = vld [vmem:[%s10645_s7 + $0x10] sm:$0xff] }
 0x6da   :  { %v5473_v50 = vmax.f32 %v5464_v48, 0.0  ;;  %v5465_v42 = vadd.f32 %v5448_v9, %v10768_v15  ;;  %7797 = vmatmul.mubr.f32.gmra.mrb[250].mxu1 %v5481_v13  ;;  %v7855_v13 = vpack.c.bf16 %v6064_v8, %v6063_v25  ;;  %v6065_v15 = vld [vmem:[%s10645_s7 + $0x20] sm:$0xff]  ;;  %v5651_v25 = vld [vmem:[%s10644_s6 + $0x38] sm:$0xff] }
 0x6db   :  { %7799 = vmatprep.mubr.msk.f32.mxu1 %vm8392_vm4, %v10698_v1 }
 0x6dc   :  { %v5474_v30 = vmax.f32 %v5465_v42, 0.0  ;;  %v5482_v63 = vmul.f32 %v10769_v38, %v5473_v50  ;;  %7856 = vmatpush3.bf16.msra.mxu1 %v7855_v13  ;;  %v8396_v50 = vmov 0   ;;  %v6066_v42 = vld [vmem:[%s10645_s7 + $0x28] sm:$0xff]  ;;  %v8398_v38 = vmov 3  }
 0x6dd   :  { %v5452_v62 = vpop.f32.mrb[0].mxu0  ;;  %7857 = vmatprep.subr.bf16.mxu1 %v8393_v45 }
 0x6de   :  { %v5453_v33 = vadd.f32 %v5452_v62, %v10325_v54  ;;  %v7747_v10 = vpop.f32.mrb[1].mxu0  ;;  %7800 = vmatmul.mubr.f32.gmra.mrb[252].mxu1 %v5482_v63  ;;  %v5483_v18 = vmul.f32 %v10771_v44, %v5474_v30  ;;  %v8394_v54 = vmov 5   ;;  %v8397_v30 = vmov 1   ;;  %v6067_v62 = vld [vmem:[%s10645_s7 + $0x30] sm:$0xff] }
 0x6df   :  { %v5455_v16 = vpop.f32.mrb[2].mxu0  ;;  %7802 = vmatprep.mubr.msk.f32.mxu1 %vm8392_vm4, %v10698_v1  ;;  %7881 = vset.pattern.permute.xlu1 %v8394_v54  ;;  %v7858_v63 = vpack.c.bf16 %v6066_v42, %v6065_v15 }
 0x6e0   :  { %v5466_v14 = vadd.f32 %v5453_v33, %v10770_v43  ;;  %v7748_v5 = vpop.f32.mrb[3].mxu0  ;;  %v6068_v33 = vld [vmem:[%s10645_s7 + $0x38] sm:$0xff]  ;;  %v8399_v16 = vmov 2  }
 0x6e1   :  { %7859 = vmatpush3.bf16.msra.mxu1 %v7858_v63  ;;  %v7861_v10 = vpack.c.bf16 %v6068_v33, %v6067_v62 }
 0x6e2   :  { %v5475_v3 = vmax.f32 %v5466_v14, 0.0  ;;  %7803 = vmatmul.mubr.f32.gmra.mrb[254].mxu1 %v5483_v18  ;;  %7860 = vmatprep.subr.bf16.mxu1 %v8393_v45 }
 0x6e3   :  { %7805 = vmatprep.mubr.msk.f32.mxu1 %vm8392_vm4, %v10698_v1 }
 0x6e4   :  { %v5484_v32 = vmul.f32 %v10772_v29, %v5475_v3  ;;  %v5645_v3 = vld [vmem:[%s10644_s6 + $0x8] sm:$0xff] }
 0x6e5   :  { %7862 = vmatpush3.bf16.msra.mxu1 %v7861_v10 }
 0x6e6   :  { %7806 = vmatmul.mubr.f32.gmra.mrb[0].mxu1 %v5484_v32 }
 0x6e7   :  { %7824 = vmatprep.mubr.msk.f32.mxu1 %vm8392_vm4, %v10698_v1 }
 0x799   :  { %v5572_v20 = vpop.f32.mrb[240].mxu1 }
 0x79a   :  { %v5573_v26 = vadd.f32 %v6536_v12, %v5572_v20  ;;  %v7783_v22 = vpop.f32.mrb[241].mxu1 }
 0x79c   :  { %v10367_v39 = vmax.f32 %v5573_v26, 0.0 }
 0x79d   :  { %v5577_v24 = vpop.f32.mrb[242].mxu1 }
 0x79e   :  { %v5578_v61 = vadd.f32 %v6536_v12, %v5577_v24  ;;  %5977 = vperm.xlu1 %7881, %v10367_v39   ;;  %5786 = vperm.xlu0 %7880, %v10367_v39   ;;  %v7786_v55 = vpop.f32.mrb[243].mxu1 }
 0x7a0   :  { %v10371_v40 = vmax.f32 %v5578_v61, 0.0 }
 0x7a1   :  { %v5582_v1 = vpop.f32.mrb[244].mxu1 }
 0x7a2   :  { %v5583_v6 = vadd.f32 %v6536_v12, %v5582_v1  ;;  %5981 = vperm.xlu1 %7881, %v10371_v40   ;;  %5790 = vperm.xlu0 %7880, %v10371_v40   ;;  %v7789_v17 = vpop.f32.mrb[245].mxu1  ;;  %v5648_v1 = vld [vmem:[%s10644_s6 + $0x20] sm:$0xff] }
 0x7a4   :  { %v10375_v34 = vmax.f32 %v5583_v6, 0.0 }
 0x7a5   :  { %v5587_v37 = vpop.f32.mrb[246].mxu1 }
 0x7a6   :  { %v5588_v4 = vadd.f32 %v6536_v12, %v5587_v37  ;;  %5985 = vperm.xlu1 %7881, %v10375_v34   ;;  %5794 = vperm.xlu0 %7880, %v10375_v34   ;;  %v7792_v47 = vpop.f32.mrb[247].mxu1 }
 0x7a8   :  { %v10379_v23 = vmax.f32 %v5588_v4, 0.0 }
 0x7a9   :  { %v5592_v31 = vpop.f32.mrb[248].mxu1 }
 0x7aa   :  { %v5593_v36 = vadd.f32 %v6536_v12, %v5592_v31  ;;  %5989 = vperm.xlu1 %7881, %v10379_v23   ;;  %5798 = vperm.xlu0 %7880, %v10379_v23   ;;  %v7795_v28 = vpop.f32.mrb[249].mxu1 }
 0x7ac   :  { %v10383_v7 = vmax.f32 %v5593_v36, 0.0 }
 0x7ad   :  { %v5597_v35 = vpop.f32.mrb[250].mxu1 }
 0x7ae   :  { %v5598_v60 = vadd.f32 %v6536_v12, %v5597_v35  ;;  %5993 = vperm.xlu1 %7881, %v10383_v7   ;;  %5802 = vperm.xlu0 %7880, %v10383_v7   ;;  %v7798_v53 = vpop.f32.mrb[251].mxu1 }
 0x7b0   :  { %v10387_v49 = vmax.f32 %v5598_v60, 0.0 }
 0x7b1   :  { %v5602_v41 = vpop.f32.mrb[252].mxu1 }
 0x7b2   :  { %v5603_v58 = vadd.f32 %v6536_v12, %v5602_v41  ;;  %5997 = vperm.xlu1 %7881, %v10387_v49   ;;  %5806 = vperm.xlu0 %7880, %v10387_v49   ;;  %v7801_v11 = vpop.f32.mrb[253].mxu1  ;;  %v5650_v41 = vld [vmem:[%s10644_s6 + $0x30] sm:$0xff] }
 0x7b4   :  { %v10397_v56 = vmax.f32 %v5603_v58, 0.0 }
 0x7b5   :  { %v5607_v0 = vpop.f32.mrb[254].mxu1 }
 0x7b6   :  { %v5608_v52 = vadd.f32 %v6536_v12, %v5607_v0  ;;  %6001 = vperm.xlu1 %7881, %v10397_v56   ;;  %5810 = vperm.xlu0 %7880, %v10397_v56   ;;  %v7804_v27 = vpop.f32.mrb[255].mxu1 }
 0x7b8   :  { %v10402_v21 = vmax.f32 %v5608_v52, 0.0 }
 0x7b9   :  { %v5612_v46 = vpop.f32.mrb[0].mxu1 }
 0x7ba   :  { %v5613_v51 = vadd.f32 %v6536_v12, %v5612_v46  ;;  %6005 = vperm.xlu1 %7881, %v10402_v21   ;;  %5814 = vperm.xlu0 %7880, %v10402_v21   ;;  %v7807_v48 = vpop.f32.mrb[1].mxu1 }
 0x7bc   :  { %v10406_v9 = vmax.f32 %v5613_v51, 0.0 }
 0x7be   :  { %6009 = vperm.xlu1 %7881, %v10406_v9   ;;  %5818 = vperm.xlu0 %7880, %v10406_v9  }
 0x7c2   :  { %7883 = vset.pattern.permute.xlu1 %v8396_v50  ;;  %7882 = vset.pattern.permute.xlu0 %v8396_v50 }
 0x7c3   :  { %5660 = vperm.xlu1 %7883, %v10371_v40   ;;  %5655 = vperm.xlu0 %7882, %v10367_v39  }
 0x7c7   :  { %5665 = vperm.xlu1 %7883, %v10375_v34   ;;  %5670 = vperm.xlu0 %7882, %v10379_v23  }
 0x7cb   :  { %5675 = vperm.xlu1 %7883, %v10383_v7   ;;  %5680 = vperm.xlu0 %7882, %v10387_v49  }
 0x7cf   :  { %5685 = vperm.xlu1 %7883, %v10397_v56   ;;  %5690 = vperm.xlu0 %7882, %v10402_v21  }
 0x7d3   :  { %7884 = vset.pattern.permute.xlu1 %v8397_v30  ;;  %7890 = vset.pattern.permute.xlu0 %v8398_v38 }
 0x7d4   :  { %5712 = vperm.xlu1 %7884, %v10371_v40   ;;  %5912 = vperm.xlu0 %7890, %v10379_v23  }
 0x7d8   :  { %7885 = vset.pattern.permute.xlu1 %v8399_v16  ;;  %5916 = vperm.xlu0 %7890, %v10383_v7  }
 0x7d9   :  { %5855 = vperm.xlu1 %7885, %v10367_v39  }
 0x7dc   :  { %7893 = vset.pattern.permute.xlu0 %v8399_v16 }
 0x7dd   :  { %7886 = vset.pattern.permute.xlu1 %v8398_v38  ;;  %5859 = vperm.xlu0 %7893, %v10371_v40  }
 0x7de   :  { %5900 = vperm.xlu1 %7886, %v10367_v39  }
 0x7e1   :  { %5875 = vperm.xlu0 %7893, %v10387_v49  }
 0x7e2   :  { %5904 = vperm.xlu1 %7886, %v10371_v40  }
 0x7e5   :  { %5879 = vperm.xlu0 %7893, %v10397_v56  }
 0x7e6   :  { %7887 = vset.pattern.permute.xlu1 %v8399_v16 }
 0x7e7   :  { %5863 = vperm.xlu1 %7887, %v10375_v34  }
 0x7e9   :  { %7897 = vset.pattern.permute.xlu0 %v8397_v30 }
 0x7ea   :  { %5708 = vperm.xlu0 %7897, %v10367_v39   ;;  %v5647_v39 = vld [vmem:[%s10644_s6 + $0x18] sm:$0xff] }
 0x7eb   :  { %7888 = vset.pattern.permute.xlu1 %v8398_v38 }
 0x7ec   :  { %5908 = vperm.xlu1 %7888, %v10375_v34  }
 0x7ee   :  { %5716 = vperm.xlu0 %7897, %v10375_v34  }
 0x7f0   :  { %7889 = vset.pattern.permute.xlu1 %v8399_v16 }
 0x7f1   :  { %5867 = vperm.xlu1 %7889, %v10379_v23  }
 0x7f2   :  { %5720 = vperm.xlu0 %7897, %v10379_v23   ;;  %v5649_v23 = vld [vmem:[%s10644_s6 + $0x28] sm:$0xff] }
 0x7f5   :  { %7891 = vset.pattern.permute.xlu1 %v8397_v30 }
 0x7f6   :  { %5724 = vperm.xlu1 %7891, %v10383_v7   ;;  %5736 = vperm.xlu0 %7897, %v10402_v21  }
 0x7fa   :  { %7892 = vset.pattern.permute.xlu1 %v8399_v16  ;;  %5740 = vperm.xlu0 %7897, %v10406_v9  }
 0x7fb   :  { %5871 = vperm.xlu1 %7892, %v10383_v7  }
 0x7fe   :  { %7903 = vset.pattern.permute.xlu0 %v8398_v38 }
 0x7ff   :  { %7894 = vset.pattern.permute.xlu1 %v8397_v30  ;;  %5932 = vperm.xlu0 %7903, %v10406_v9  }
 0x800   :  { %5728 = vperm.xlu1 %7894, %v10387_v49  }
 0x803   :  { %7904 = vset.pattern.permute.xlu0 %v8394_v54  ;;  %v5644_v54 = vld [vmem:[%s10644_s6] sm:$0xff] }
 0x804   :  { %7895 = vset.pattern.permute.xlu1 %v8398_v38 }
 0x805   :  { %5920 = vperm.xlu1 %7895, %v10387_v49  }
 0x809   :  { %7896 = vset.pattern.permute.xlu1 %v8397_v30 }
 0x80a   :  { %5732 = vperm.xlu1 %7896, %v10397_v56  }
 0x80e   :  { %7898 = vset.pattern.permute.xlu1 %v8398_v38 }
 0x80f   :  { %5924 = vperm.xlu1 %7898, %v10397_v56  }
 0x813   :  { %7899 = vset.pattern.permute.xlu1 %v8399_v16 }
 0x814   :  { %5883 = vperm.xlu1 %7899, %v10402_v21  }
 0x818   :  { %7900 = vset.pattern.permute.xlu1 %v8398_v38 }
 0x819   :  { %5928 = vperm.xlu1 %7900, %v10402_v21  }
 0x81d   :  { %v5978_v45 = vpop.permute.xlu1 %5977  ;;  %v5787_v43 = vpop.permute.xlu0 %5786  ;;  %7901 = vset.pattern.permute.xlu1 %v8396_v50 }
 0x81e   :  { %5695 = vperm.xlu1 %7901, %v10406_v9   ;;  %v6012_v26 = vmul.f32 %v5978_v45, %v5644_v54  ;;  %v5821_v22 = vmul.f32 %v5787_v43, %v5644_v54  ;;  %v5652_v45 = vld [vmem:[%s10644_s6 + $0x40] sm:$0xff] }
 0x820   :  { %v6021_v4 = vsel %vm5830_vm5, %v6012_v26, 0.0  ;;  %v5831_v47 = vsel %vm5830_vm5, %v5821_v22, 0.0 }
 0x821   :  { %v5982_v14 = vpop.permute.xlu1 %5981  ;;  %v5791_v5 = vpop.permute.xlu0 %5790 }
 0x822   :  { %7902 = vset.pattern.permute.xlu1 %v8399_v16  ;;  %v6013_v12 = vmul.f32 %v5982_v14, %v5645_v3  ;;  %v5822_v20 = vmul.f32 %v5791_v5, %v5645_v3 }
 0x823   :  { %5887 = vperm.xlu1 %7902, %v10406_v9  }
 0x824   :  { %v6022_v6 = vsel %vm5830_vm5, %v6013_v12, 0.0  ;;  %v5832_v17 = vsel %vm5830_vm5, %v5822_v20, 0.0 }
 0x825   :  { %v5986_v44 = vpop.permute.xlu1 %5985  ;;  %v5795_v18 = vpop.permute.xlu0 %5794  ;;  %v6023_v53 = vadd.f32 %v6022_v6, %v6021_v4  ;;  %v5833_v49 = vadd.f32 %v5832_v17, %v5831_v47 }
 0x826   :  { %v6014_v55 = vmul.f32 %v5986_v44, %v5646_v19  ;;  %v5823_v40 = vmul.f32 %v5795_v18, %v5646_v19 }
 0x828   :  { %v6024_v28 = vsel %vm5830_vm5, %v6014_v55, 0.0  ;;  %v5834_v7 = vsel %vm5830_vm5, %v5823_v40, 0.0 }
 0x829   :  { %v5990_v29 = vpop.permute.xlu1 %5989  ;;  %v5799_v32 = vpop.permute.xlu0 %5798  ;;  %v6025_v2 = vadd.f32 %v6024_v28, %v6023_v53  ;;  %v5835_v56 = vadd.f32 %v5834_v7, %v5833_v49 }
 0x82a   :  { %v6015_v34 = vmul.f32 %v5990_v29, %v5647_v39  ;;  %v5824_v37 = vmul.f32 %v5799_v32, %v5647_v39 }
 0x82c   :  { %v6026_v57 = vsel %vm5830_vm5, %v6015_v34, 0.0  ;;  %v5836_v59 = vsel %vm5830_vm5, %v5824_v37, 0.0 }
 0x82d   :  { %v5994_v24 = vpop.permute.xlu1 %5993  ;;  %v5803_v61 = vpop.permute.xlu0 %5802  ;;  %v6027_v48 = vadd.f32 %v6026_v57, %v6025_v2  ;;  %v5837_v9 = vadd.f32 %v5836_v59, %v5835_v56 }
 0x82e   :  { %v6016_v35 = vmul.f32 %v5994_v24, %v5648_v1  ;;  %v5825_v60 = vmul.f32 %v5803_v61, %v5648_v1 }
 0x830   :  { %v6028_v27 = vsel %vm5830_vm5, %v6016_v35, 0.0  ;;  %v5838_v21 = vsel %vm5830_vm5, %v5825_v60, 0.0  ;;  %v6547_v35 = vld [vmem:[#allocation7 + $0x7] ss:$0 sm:$0xff] }
 0x831   :  { %v5998_v31 = vpop.permute.xlu1 %5997  ;;  %v5807_v36 = vpop.permute.xlu0 %5806  ;;  %v6029_v50 = vadd.f32 %v6028_v27, %v6027_v48  ;;  %v5839_v15 = vadd.f32 %v5838_v21, %v5837_v9  ;;  %v5626_v9 = vld [vmem:[%s10643_s5 + $0x8] sm:$0xff] }
 0x832   :  { %v6017_v58 = vmul.f32 %v5998_v31, %v5649_v23  ;;  %v5826_v11 = vmul.f32 %v5807_v36, %v5649_v23 }
 0x834   :  { %v6030_v8 = vsel %vm5830_vm5, %v6017_v58, 0.0  ;;  %v5840_v13 = vsel %vm5830_vm5, %v5826_v11, 0.0 }
 0x835   :  { %v6002_v0 = vpop.permute.xlu1 %6001  ;;  %v5811_v52 = vpop.permute.xlu0 %5810  ;;  %v6031_v10 = vadd.f32 %v6030_v8, %v6029_v50  ;;  %v5841_v16 = vadd.f32 %v5840_v13, %v5839_v15  ;;  %v6537_v13 = vld [vmem:[%s10643_s5 + $0x48] sm:$0xff] }
 0x836   :  { %v6018_v46 = vmul.f32 %v6002_v0, %v5650_v41  ;;  %v5827_v51 = vmul.f32 %v5811_v52, %v5650_v41 }
 0x838   :  { %v6032_v38 = vsel %vm5830_vm5, %v6018_v46, 0.0  ;;  %v5842_v63 = vsel %vm5830_vm5, %v5827_v51, 0.0  ;;  %v6538_v51 = vld [vmem:[%s10643_s5 + $0x50] sm:$0xff] }
 0x839   :  { %v6006_v42 = vpop.permute.xlu1 %6005  ;;  %v5815_v30 = vpop.permute.xlu0 %5814  ;;  %v6033_v5 = vadd.f32 %v6032_v38, %v6031_v10  ;;  %v5843_v44 = vadd.f32 %v5842_v63, %v5841_v16  ;;  %v5627_v38 = vld [vmem:[%s10643_s5 + $0x10] sm:$0xff]  ;;  %v6539_v10 = vld [vmem:[%s10643_s5 + $0x58] sm:$0xff] }
 0x83a   :  { %v6019_v62 = vmul.f32 %v6006_v42, %v5651_v25  ;;  %v5828_v33 = vmul.f32 %v5815_v30, %v5651_v25  ;;  %v5625_v25 = vld [vmem:[%s10643_s5] sm:$0xff] }
 0x83c   :  { %v6034_v43 = vsel %vm5830_vm5, %v6019_v62, 0.0  ;;  %v5844_v14 = vsel %vm5830_vm5, %v5828_v33, 0.0 }
 0x83d   :  { %v6010_v18 = vpop.permute.xlu1 %6009  ;;  %v5819_v3 = vpop.permute.xlu0 %5818  ;;  %v6035_v54 = vadd.f32 %v6034_v43, %v6033_v5  ;;  %v5845_v19 = vadd.f32 %v5844_v14, %v5843_v44  ;;  %v5628_v5 = vld [vmem:[%s10643_s5 + $0x18] sm:$0xff] }
 0x83e   :  { %v6020_v29 = vmul.f32 %v6010_v18, %v5652_v45  ;;  %v5829_v32 = vmul.f32 %v5819_v3, %v5652_v45 }
 0x840   :  { %v6036_v12 = vsel %vm5830_vm5, %v6020_v29, 0.0  ;;  %v5846_v20 = vsel %vm5830_vm5, %v5829_v32, 0.0  ;;  %v6540_v29 = vld [vmem:[%s10643_s5 + $0x60] sm:$0xff] }
 0x841   :  { %v6037_v26 = vadd.f32 %v6036_v12, %v6035_v54  ;;  %v5847_v22 = vadd.f32 %v5846_v20, %v5845_v19 }
 0x842   :  { %v5661_v39 = vpop.permute.xlu1 %5660  ;;  %v5656_v24 = vpop.permute.xlu0 %5655 }
 0x843   :  { %v6038_v61 = vrot.slane %v6037_v26, 4  ;;  %v5848_v55 = vrot.slane %v5847_v22, 4  ;;  %v5699_v15 = vmul.f32 %v5661_v39, %v5626_v9  ;;  %v5698_v42 = vmul.f32 %v5656_v24, %v5625_v25  ;;  %v6541_v24 = vld [vmem:[%s10643_s5 + $0x68] sm:$0xff] }
 0x845   :  { %v6039_v40 = vadd.f32 %v6038_v61, %v6037_v26  ;;  %v5849_v1 = vadd.f32 %v5848_v55, %v5847_v22  ;;  %v5629_v26 = vld [vmem:[%s10643_s5 + $0x20] sm:$0xff] }
 0x846   :  { %v5666_v6 = vpop.permute.xlu1 %5665  ;;  %v5671_v17 = vpop.permute.xlu0 %5670 }
 0x847   :  { %v6040_v34 = vrot.slane %v6039_v40, 2  ;;  %v5850_v37 = vrot.slane %v5849_v1, 2  ;;  %v5700_v45 = vmul.f32 %v5666_v6, %v5627_v38  ;;  %v5701_v19 = vmul.f32 %v5671_v17, %v5628_v5 }
 0x849   :  { %v6041_v4 = vadd.f32 %v6040_v34, %v6039_v40  ;;  %v5851_v47 = vadd.f32 %v5850_v37, %v5849_v1 }
 0x84a   :  { %v5676_v23 = vpop.permute.xlu1 %5675  ;;  %v10515_v31 = vpop.permute.xlu0 %5680 }
 0x84b   :  { %v6042_v36 = vrot.slane %v6041_v4, 1  ;;  %v5852_v28 = vrot.slane %v5851_v47, 1  ;;  %v5702_v55 = vmul.f32 %v5676_v23, %v5629_v26 }
 0x84d   :  { %v6043_v7 = vadd.f32 %v6042_v36, %v6041_v4  ;;  %v5853_v60 = vadd.f32 %v5852_v28, %v5851_v47  ;;  %v6542_v47 = vld [vmem:[%s10643_s5 + $0x70] sm:$0xff]  ;;  %v5630_v28 = vld [vmem:[%s10643_s5 + $0x28] sm:$0xff] }
 0x84e   :  { %v10517_v53 = vpop.permute.xlu1 %5685  ;;  %v10519_v49 = vpop.permute.xlu0 %5690  ;;  %v5703_v23 = vmul.f32 %v10515_v31, %v5630_v28 }
 0x84f   :  { %v6054_v41 = vsel %vm6047_vm6, %v5853_v60, %v6043_v7 }
 0x850   :  { %v6059_v57 = vadd.f32 %v6547_v35, %v6054_v41  ;;  %v5631_v41 = vld [vmem:[%s10643_s5 + $0x30] sm:$0xff] }
 0x852   :  { %v6060_v59 = vmax.f32 %v6059_v57, 0.0  ;;  %v6543_v57 = vld [vmem:[%s10643_s5 + $0x78] sm:$0xff] }
 0x853   :  { %v5713_v58 = vpop.permute.xlu1 %5712  ;;  %v10522_v11 = vpop.permute.xlu0 %5912 }
 0x854   :  { %7825 = vmatmul.mubr.msk.f32.vlgmr.msra.gmra.mrb[2].mxu1 %vm5830_vm5, %v6060_v59  ;;  %v5744_v8 = vmul.f32 %v6538_v51, %v5713_v58  ;;  %v5704_v58 = vmul.f32 %v10517_v53, %v5631_v41 }
 0x856   :  { %v5753_v62 = vadd.f32 %v5744_v8, %v5699_v15 }
 0x857   :  { %v10525_v2 = vpop.permute.xlu0 %5916 }
 0x858   :  { %v10527_v56 = vpop.permute.xlu1 %5855  ;;  %v5763_v44 = vsel %vm5761_vm7, %v5753_v62, 0.0 }
 0x85c   :  { %v10529_v0 = vpop.permute.xlu0 %5859 }
 0x85d   :  { %v10531_v52 = vpop.permute.xlu1 %5900 }
 0x860   :  { %v10533_v27 = vpop.permute.xlu0 %5875 }
 0x861   :  { %v5905_v21 = vpop.permute.xlu1 %5904 }
 0x862   :  { %v5936_v62 = vmul.f32 %v6538_v51, %v5905_v21  ;;  %v6544_v21 = vld [vmem:[%s10643_s5 + $0x80] sm:$0xff] }
 0x864   :  { %v10535_v46 = vpop.permute.xlu0 %5879 }
 0x866   :  { %v10540_v48 = vpop.permute.xlu1 %5863 }
 0x867   :  { %v5892_v53 = vmul.f32 %v10540_v48, %v5627_v38 }
 0x869   :  { %v5709_v50 = vpop.permute.xlu0 %5708 }
 0x86a   :  { %v5743_v30 = vmul.f32 %v6537_v13, %v5709_v50 }
 0x86b   :  { %v5909_v63 = vpop.permute.xlu1 %5908 }
 0x86c   :  { %v5752_v33 = vadd.f32 %v5743_v30, %v5698_v42 }
 0x86d   :  { %v5717_v16 = vpop.permute.xlu0 %5716 }
 0x86e   :  { %v5762_v43 = vsel %vm5761_vm7, %v5752_v33, 0.0  ;;  %v5745_v14 = vmul.f32 %v6539_v10, %v5717_v16  ;;  %v5891_v16 = vmul.f32 %v10529_v0, %v5626_v9 }
 0x86f   :  { %v5764_v32 = vadd.f32 %v5763_v44, %v5762_v43  ;;  %v5937_v43 = vmul.f32 %v6539_v10, %v5909_v63 }
 0x870   :  { %v5754_v18 = vadd.f32 %v5745_v14, %v5700_v45  ;;  %v5868_v3 = vpop.permute.xlu1 %5867  ;;  %v5935_v45 = vmul.f32 %v6537_v13, %v10531_v52  ;;  %v5890_v14 = vmul.f32 %v10527_v56, %v5625_v25  ;;  %v5945_v44 = vadd.f32 %v5936_v62, %v5891_v16  ;;  %v5632_v52 = vld [vmem:[%s10643_s5 + $0x38] sm:$0xff] }
 0x871   :  { %v5721_v54 = vpop.permute.xlu0 %5720  ;;  %v5939_v56 = vmul.f32 %v6541_v24, %v10525_v2  ;;  %v5895_v25 = vmul.f32 %v10533_v27, %v5630_v28  ;;  %v5896_v2 = vmul.f32 %v10535_v46, %v5631_v41  ;;  %v6545_v27 = vld [vmem:[%s10643_s5 + $0x88] sm:$0xff] }
 0x872   :  { %v5765_v12 = vsel %vm5761_vm7, %v5754_v18, 0.0  ;;  %v5746_v20 = vmul.f32 %v6540_v29, %v5721_v54  ;;  %v5893_v18 = vmul.f32 %v5868_v3, %v5628_v5  ;;  %v5954_v51 = vsel %vm5761_vm7, %v5945_v44, 0.0 }
 0x873   :  { %v5766_v22 = vadd.f32 %v5765_v12, %v5764_v32  ;;  %v5944_v12 = vadd.f32 %v5935_v45, %v5890_v14  ;;  %v5705_v3 = vmul.f32 %v10519_v49, %v5632_v52 }
 0x874   :  { %v5755_v39 = vadd.f32 %v5746_v20, %v5701_v19  ;;  %v5938_v19 = vmul.f32 %v6540_v29, %v10522_v11  ;;  %v5946_v20 = vadd.f32 %v5937_v43, %v5892_v53 }
 0x875   :  { %v5725_v61 = vpop.permute.xlu1 %5724  ;;  %v5737_v54 = vpop.permute.xlu0 %5736  ;;  %v5953_v38 = vsel %vm5761_vm7, %v5944_v12, 0.0 }
 0x876   :  { %v5767_v40 = vsel %vm5761_vm7, %v5755_v39, 0.0  ;;  %v5747_v1 = vmul.f32 %v6541_v24, %v5725_v61  ;;  %v5947_v48 = vadd.f32 %v5938_v19, %v5893_v18  ;;  %v5750_v11 = vmul.f32 %v6544_v21, %v5737_v54  ;;  %v5633_v61 = vld [vmem:[%s10643_s5 + $0x40] sm:$0xff]  ;;  %s8400_s5 = smov [#allocation8]  }
 0x877   :  { %v5768_v17 = vadd.f32 %v5767_v40, %v5766_v22  ;;  %v5956_v63 = vsel %vm5761_vm7, %v5946_v20, 0.0  ;;  %v5955_v29 = vadd.f32 %v5954_v51, %v5953_v38  ;;  %s6157_s16 = sshll.u32 %s8400_s5, 4  ;;  %s6158_s16 = int_to_ptr.vmem [resolvable:$true] %s6157_s16 }
 0x878   :  { %v5756_v6 = vadd.f32 %v5747_v1, %v5702_v55  ;;  %v5958_v22 = vsel %vm5761_vm7, %v5947_v48, 0.0  ;;  %v5759_v40 = vadd.f32 %v5750_v11, %v5705_v3  ;;  %s8356_s17 = scalar_lea.vmem %s6158_s16, 32  ;;  %p8361_p11 = scmp.lt.s32.totalorder %s6158_s16, %s6158_s16 }
 0x879   :  { %v5957_v55 = vadd.f32 %v5956_v63, %v5955_v29  ;;  %p8357_p10 = scmp.ne.s32.totalorder %s6158_s16, %s8356_s17  ;;  %p8362_p12 = scmp.lt.s32.totalorder %s8356_s17, %s8356_s17 }
 0x87a   :  { %v5769_v34 = vsel %vm5761_vm7, %v5756_v6, 0.0  ;;  %v5872_v37 = vpop.permute.xlu1 %5871 }
 0x87b   :  { %v5770_v4 = vadd.f32 %v5769_v34, %v5768_v17  ;;  %v5894_v0 = vmul.f32 %v5872_v37, %v5629_v26  ;;  %v5741_v26 = vpop.permute.xlu0 %5740  ;;  %v5959_v46 = vadd.f32 %v5958_v22, %v5957_v55  ;;  %p8363_p13 = por %p8362_p12, %p8361_p11 }
 0x87c   :  { %v5751_v34 = vmul.f32 %v6545_v27, %v5741_v26 }
 0x87d   :  { %v5948_v10 = vadd.f32 %v5939_v56, %v5894_v0  ;;  %p8364_p0 = pnand %p8363_p13, %p8357_p10 }
 0x87f   :  { %v5729_v36 = vpop.permute.xlu1 %5728  ;;  %v5960_v49 = vsel %vm5761_vm7, %v5948_v10, 0.0 }
 0x880   :  { %v5748_v7 = vmul.f32 %v6542_v47, %v5729_v36  ;;  %v5775_v36 = vsel %vm5761_vm7, %v5759_v40, 0.0  ;;  %v5961_v28 = vadd.f32 %v5960_v49, %v5959_v46 }
 0x882   :  { %v5757_v60 = vadd.f32 %v5748_v7, %v5703_v23  ;;  %v5933_v7 = vpop.permute.xlu0 %5932 }
 0x884   :  { %v5921_v35 = vpop.permute.xlu1 %5920  ;;  %v5771_v8 = vsel %vm5761_vm7, %v5757_v60, 0.0 }
 0x885   :  { %v5772_v42 = vadd.f32 %v5771_v8, %v5770_v4  ;;  %v5940_v9 = vmul.f32 %v6542_v47, %v5921_v35 }
 0x887   :  { %v5949_v39 = vadd.f32 %v5940_v9, %v5895_v25 }
 0x889   :  { %v5733_v59 = vpop.permute.xlu1 %5732  ;;  %v5962_v4 = vsel %vm5761_vm7, %v5949_v39, 0.0 }
 0x88a   :  { %v5749_v50 = vmul.f32 %v6543_v57, %v5733_v59  ;;  %v5963_v41 = vadd.f32 %v5962_v4, %v5961_v28 }
 0x88c   :  { %v5758_v15 = vadd.f32 %v5749_v50, %v5704_v58  ;;  %v5943_v58 = vmul.f32 %v6545_v27, %v5933_v7 }
 0x88e   :  { %v5773_v31 = vsel %vm5761_vm7, %v5758_v15, 0.0  ;;  %v5925_v30 = vpop.permute.xlu1 %5924 }
 0x88f   :  { %v5774_v33 = vadd.f32 %v5773_v31, %v5772_v42  ;;  %v5941_v5 = vmul.f32 %v6543_v57, %v5925_v30 }
 0x891   :  { %v5950_v1 = vadd.f32 %v5941_v5, %v5896_v2  ;;  %v5776_v60 = vadd.f32 %v5775_v36, %v5774_v33 }
 0x893   :  { %v5884_v32 = vpop.permute.xlu1 %5883  ;;  %v5964_v35 = vsel %vm5761_vm7, %v5950_v1, 0.0 }
 0x894   :  { %v5897_v6 = vmul.f32 %v5884_v32, %v5632_v52  ;;  %v5965_v42 = vadd.f32 %v5964_v35, %v5963_v41 }
 0x898   :  { %v5929_v13 = vpop.permute.xlu1 %5928 }
 0x899   :  { %v5942_v24 = vmul.f32 %v6544_v21, %v5929_v13  ;;  %v6546_v21 = vld [vmem:[#allocation7 + $0x6] ss:$0 sm:$0xff] }
 0x89b   :  { %v5951_v47 = vadd.f32 %v5942_v24, %v5897_v6 }
 0x89d   :  { %v5696_v17 = vpop.permute.xlu1 %5695  ;;  %v5966_v8 = vsel %vm5761_vm7, %v5951_v47, 0.0 }
 0x89e   :  { %v5706_v37 = vmul.f32 %v5696_v17, %v5633_v61  ;;  %v5967_v62 = vadd.f32 %v5966_v8, %v5965_v42 }
 0x8a0   :  { %v5760_v23 = vadd.f32 %v5751_v34, %v5706_v37 }
 0x8a2   :  { %v5777_v57 = vsel %vm5761_vm7, %v5760_v23, 0.0  ;;  %v5888_v59 = vpop.permute.xlu1 %5887 }
 0x8a3   :  { %v5778_v50 = vadd.f32 %v5777_v57, %v5776_v60  ;;  %v5898_v15 = vmul.f32 %v5888_v59, %v5633_v61 }
 0x8a5   :  { %v5779_v31 = vrot.slane %v5778_v50, 4  ;;  %v5952_v30 = vadd.f32 %v5943_v58, %v5898_v15 }
 0x8a7   :  { %v5780_v16 = vadd.f32 %v5779_v31, %v5778_v50  ;;  %v5968_v45 = vsel %vm5761_vm7, %v5952_v30, 0.0 }
 0x8a8   :  { %v5969_v43 = vadd.f32 %v5968_v45, %v5967_v62 }
 0x8a9   :  { %v5781_v14 = vrot.slane %v5780_v16, 2 }
 0x8aa   :  { %v5970_v44 = vrot.slane %v5969_v43, 4 }
 0x8ab   :  { %v5782_v33 = vadd.f32 %v5781_v14, %v5780_v16 }
 0x8ac   :  { %v5971_v53 = vadd.f32 %v5970_v44, %v5969_v43 }
 0x8ad   :  { %v5783_v32 = vrot.slane %v5782_v33, 1 }
 0x8ae   :  { %v5972_v18 = vrot.slane %v5971_v53, 2 }
 0x8af   :  { %v5784_v12 = vadd.f32 %v5783_v32, %v5782_v33 }
 0x8b0   :  { %v5973_v54 = vadd.f32 %v5972_v18, %v5971_v53 }
 0x8b2   :  { %v5974_v19 = vrot.slane %v5973_v54, 1 }
 0x8b4   :  { %v5975_v20 = vadd.f32 %v5974_v19, %v5973_v54 }
 0x8b6   :  { %v6048_v0 = vsel %vm6047_vm6, %v5784_v12, %v5975_v20 }
 0x8b7   :  { %v6053_v52 = vadd.f32 %v6546_v21, %v6048_v0 }
 0x8b9   :  { %6148 = vst.msk [vmem:[#allocation8] sm:$0x3] %vm6147_vm8, %v6053_v52 }
 0x8ba   :  { %8367 = shalt.err (!%p8364_p0)
}
 0x8bb   :  { %s8368_s19 = scalar_lea.hbm %s10646_s8, 32 }
 0x8bc   :  { %p8369_p1 = scmp.ne.s32.totalorder %s10646_s8, %s8368_s19  ;;  %p8372_p2 = scmp.lt.u32.totalorder %s8368_s19, %s10646_s8 }
 0x8be   :  { %p8374_p3 = pnand %p8372_p2, %p8369_p1 }
 0x8c0   :  { %8377 = shalt.err (!%p8374_p3)
}
 0x8c1   :  { %6160 = dma.vmem_to_hbm [thread:$0]  %s6158_s16, 32, %s10646_s8, [#allocation4]   ;;  %v6548_v56 = vld [vmem:[#allocation7 + $0x8] ss:$0 sm:$0xff]  ;;  %vm6149_vm9 = vcmask 1024  }
 0x927   :  { %v6142_v51 = vpop.f32.mrb[2].mxu1 }
 0x928   :  { %v6143_v48 = vadd.f32 %v6548_v56, %v6142_v51  ;;  %v7826_v9 = vpop.f32.mrb[3].mxu1 }
 0x92a   :  { %8265 = vtanh.f32 %v6143_v48 }
 0x934   :  { %v8266_v25 = vpop.eup %8265 }
 0x935   :  { %6150 = vst.msk [vmem:[%s10647_s9] sm:$0x3] %vm6149_vm9, %v8266_v25 }
 0x936   :  { %8382 = dma.done.wait [#allocation4], 32  }
 0x937   :  { %8383 = vsyncadd [#allocation4], 4294967264 }
 0x938   :  { %6168 = vsyncpa [#allocation3], 1 }
 0x939   :  { %6169 = vsyncpa [#allocation6], 1 }
 0x93a   :  { %6170 = vsyncpa [#allocation4], 1 }

</bundles_post_ra>
